<compile_context>
chip_gen: v7x
topology: tpu7x:2x2x1
jax: 0.10.0
libtpu: 0.0.40
codegen_flags: <defaults>
</compile_context>

<pallas_src>
import functools

import jax
import jax.numpy as jnp
from jax.experimental import pallas as pl
from jax.experimental.pallas import tpu as pltpu


# ----------------------------- in-kernel helpers -----------------------------

def _silu(v):
    # sigmoid = 1 / (1 + exp(-v)); exp + approx reciprocal both go to the EUP
    # slot, keeping the VALU free for the surrounding multiply-adds.
    return v * pl.reciprocal(1.0 + jnp.exp(-v), approx=True)


# ----------------------------- the fused kernel -----------------------------

def _fused_effnet_kernel(
    patches_ref,                       # (1, HW, 9*Cin)  bf16  im2col'd stem input
    stem_w_ref, stem_b_ref,            # (9*Cin, c_stem) bf16 (BN-folded), (1, c_stem) f32
    exp_w_ref, exp_b_ref,              # (c_stem, c_exp) bf16, (1, c_exp)
    dw_w_ref, dw_b_ref,                # (3, 3, c_exp)   f32 (BN-folded), (1, c_exp)
    se1_w_ref, se1_b_ref,              # (c_exp, c_se)   f32, (1, c_se)
    se2_w_ref, se2_b_ref,              # (c_se, c_exp)   f32, (1, c_exp)
    proj_w_ref, proj_b_ref,            # (c_exp, c_stem) bf16, (1, c_stem)
    head_w_ref, head_b_ref,            # (c_stem, c_feat) bf16, (1, c_feat)
    cls_w_ref, cls_b_ref,              # (c_feat, n_cls) f32, (1, n_cls)
    o_ref,                             # (1, 1, n_cls)   f32
    res_buf,                           # VMEM (HW, c_stem) f32  — residual stash
    dw_buf,                            # VMEM (H+2, W+2, c_exp) f32 — padded dw input
    d_buf,                             # VMEM (HW, c_exp) f32 — flattened dw output
    *, H, W,
):
    HW = H * W
    inv_hw = 1.0 / HW

    # ---- stem: conv3x3 s2 (im2col GEMM) + folded-BN + SiLU ----
    y = jnp.dot(patches_ref[0], stem_w_ref[...],
                preferred_element_type=jnp.float32) + stem_b_ref[...]
    y = _silu(y)                                       # (HW, c_stem) f32
    res_buf[...] = y                                   # keep for the residual add

    # ---- MBConv expand 1x1 + folded-BN + SiLU ----
    e = jnp.dot(y.astype(jnp.bfloat16), exp_w_ref[...],
                preferred_element_type=jnp.float32) + exp_b_ref[...]
    e = _silu(e)                                       # (HW, c_exp) f32

    # ---- depthwise 3x3 (stride 1, pad 1) via zero-padded VMEM scratch ----
    dw_buf[...] = jnp.zeros_like(dw_buf)               # zero border (cheap, per step)
    for h in range(H):                                 # scatter rows into the interior
        dw_buf[h + 1, 1:W + 1, :] = e[h * W:(h + 1) * W, :]

    dww = dw_w_ref[...]                                # (3, 3, c_exp), BN scale folded
    c_exp = dww.shape[-1]
    acc = jnp.zeros((H, W, c_exp), jnp.float32)
    for dy in range(3):                                # slice the ref per tap: only acc
        for dx in range(3):                            # stays live (low vreg pressure)
            acc = acc + dw_buf[dy:dy + H, dx:dx + W, :] * dww[dy, dx, :]
    yd = _silu(acc + dw_b_ref[...])                    # (H, W, c_exp) f32

    # SE squeeze: spatial mean of the post-BN/SiLU dw activation
    pool = jnp.sum(yd, axis=(0, 1), keepdims=True)[0] * inv_hw      # (1, c_exp)

    # stash the dw activation flattened (3D -> 2D without a vector reshape)
    for h in range(H):
        d_buf[h * W:(h + 1) * W, :] = yd[h]

    # ---- squeeze-excite MLP: fc1 + SiLU + fc2 + sigmoid ----
    se_h = jnp.dot(pool, se1_w_ref[...],
                   preferred_element_type=jnp.float32) + se1_b_ref[...]
    se_h = se_h * jax.nn.sigmoid(se_h)
    gate = jax.nn.sigmoid(jnp.dot(se_h, se2_w_ref[...],
                                  preferred_element_type=jnp.float32)
                          + se2_b_ref[...])            # (1, c_exp)

    # ---- SE gate + project 1x1 + folded-BN + residual add ----
    a = (d_buf[...] * gate).astype(jnp.bfloat16)       # (HW, c_exp)
    y2 = jnp.dot(a, proj_w_ref[...],
                 preferred_element_type=jnp.float32) + proj_b_ref[...]
    y2 = y2 + res_buf[...]                             # (HW, c_stem)

    # ---- head 1x1 + folded-BN + SiLU + global average pool + classifier ----
    hf = jnp.dot(y2.astype(jnp.bfloat16), head_w_ref[...],
                 preferred_element_type=jnp.float32) + head_b_ref[...]
    hf = _silu(hf)                                     # (HW, c_feat)
    pooled = jnp.sum(hf, axis=0, keepdims=True) * inv_hw            # (1, c_feat)
    logits = jnp.dot(pooled, cls_w_ref[...],
                     preferred_element_type=jnp.float32) + cls_b_ref[...]
    o_ref[0] = logits.astype(o_ref.dtype)


def fused_effnet(patches_bf16, p, *, H, W):
    """One pallas_call for the whole network; grid iterates over the batch."""
    N, HW, k_stem = patches_bf16.shape
    c_stem = p["stem_w"].shape[1]
    c_exp = p["exp_w"].shape[1]
    c_se = p["se1_w"].shape[1]
    c_feat = p["head_w"].shape[1]
    n_cls = p["cls_w"].shape[1]

    full2 = lambda shape: pl.BlockSpec(shape, lambda n: (0, 0))
    full3 = lambda shape: pl.BlockSpec(shape, lambda n: (0, 0, 0))

    out = pl.pallas_call(
        functools.partial(_fused_effnet_kernel, H=H, W=W),
        out_shape=jax.ShapeDtypeStruct((N, 1, n_cls), jnp.float32),
        grid=(N,),
        in_specs=[
            pl.BlockSpec((1, HW, k_stem), lambda n: (n, 0, 0)),
            full2((k_stem, c_stem)), full2((1, c_stem)),
            full2((c_stem, c_exp)), full2((1, c_exp)),
            full3((3, 3, c_exp)), full2((1, c_exp)),
            full2((c_exp, c_se)), full2((1, c_se)),
            full2((c_se, c_exp)), full2((1, c_exp)),
            full2((c_exp, c_stem)), full2((1, c_stem)),
            full2((c_stem, c_feat)), full2((1, c_feat)),
            full2((c_feat, n_cls)), full2((1, n_cls)),
        ],
        out_specs=pl.BlockSpec((1, 1, n_cls), lambda n: (n, 0, 0)),
        scratch_shapes=[
            pltpu.VMEM((HW, c_stem), jnp.float32),
            pltpu.VMEM((H + 2, W + 2, c_exp), jnp.float32),
            pltpu.VMEM((HW, c_exp), jnp.float32),
        ],
        compiler_params=pltpu.CompilerParams(
            dimension_semantics=("parallel",)),
    )(patches_bf16,
      p["stem_w"], p["stem_b"],
      p["exp_w"], p["exp_b"],
      p["dw_w"], p["dw_b"],
      p["se1_w"], p["se1_b"],
      p["se2_w"], p["se2_b"],
      p["proj_w"], p["proj_b"],
      p["head_w"], p["head_b"],
      p["cls_w"], p["cls_b"])
    return out.reshape(N, n_cls)


# ----------------------------- JAX glue -----------------------------

def _im2col(x, k, s, p):
    """NHWC -> (N, Ho*Wo, k*k*C) patch matrix (weight order: kh, kw, Cin)."""
    # TODO(synk): for real 224x224 inputs, replace with an H-row-tiled / halo-DMA
    # stem stage and row-tile the depthwise block (v7x's 64 MiB VMEM); at this
    # toy size the patch matrix and whole-image blocks are cheap.
    N, H, W, C = x.shape
    xp = jnp.pad(x, ((0, 0), (p, p), (p, p), (0, 0)))
    Ho = (H + 2 * p - k) // s + 1
    Wo = (W + 2 * p - k) // s + 1
    cols = []
    for dy in range(k):
        for dx in range(k):
            cols.append(xp[:, dy:dy + (Ho - 1) * s + 1:s,
                           dx:dx + (Wo - 1) * s + 1:s, :])
    patches = jnp.concatenate(cols, axis=-1)           # (N, Ho, Wo, k*k*C)
    return patches.reshape(N, Ho * Wo, k * k * C), (N, Ho, Wo)


# ------------------------ model config / parameters ------------------------

class Config:
    """Mimics the fields the PyTorch module reads; weights are synthetic."""
    model_factory = "timm"
    effnet = "efficientnet_lite0_mini"
    paths = {"model_weight_path_folder": None}
    num_classes = 10


def init_params(key, c_in=3, c_stem=16, expand=4, n_features=64, num_classes=10):
    """Deterministic synthetic weights for a small EfficientNet-style backbone."""
    c_exp = c_stem * expand
    c_se = max(1, c_stem // 4)
    ks = jax.random.split(key, 16)

    def nrm(k, shape, scale):
        return scale * jax.random.normal(k, shape, jnp.float32)

    def bn(k, c):
        k1, k2, k3, k4 = jax.random.split(k, 4)
        gamma = 1.0 + 0.05 * jax.random.normal(k1, (c,), jnp.float32)
        beta = 0.05 * jax.random.normal(k2, (c,), jnp.float32)
        mean = 0.05 * jax.random.normal(k3, (c,), jnp.float32)
        var = 1.0 + 0.05 * jnp.abs(jax.random.normal(k4, (c,), jnp.float32))
        scale = gamma / jnp.sqrt(var + 1e-5)     # folded eval-mode BatchNorm
        bias = beta - mean * scale
        return scale, bias

    p = {}
    p["stem_w"] = nrm(ks[0], (3 * 3 * c_in, c_stem), 0.2)     # conv3x3 s2 (im2col GEMM)
    p["stem_bn"] = bn(ks[1], c_stem)
    p["exp_w"] = nrm(ks[2], (c_stem, c_exp), 0.2)             # MBConv expand 1x1
    p["exp_bn"] = bn(ks[3], c_exp)
    p["dw_w"] = nrm(ks[4], (3, 3, c_exp), 0.2)                # depthwise 3x3
    p["dw_bn"] = bn(ks[5], c_exp)
    p["se_fc1_w"] = nrm(ks[6], (c_exp, c_se), 0.2)            # squeeze-excite
    p["se_fc1_b"] = nrm(ks[7], (1, c_se), 0.05)
    p["se_fc2_w"] = nrm(ks[8], (c_se, c_exp), 0.2)
    p["se_fc2_b"] = nrm(ks[9], (1, c_exp), 0.05)
    p["proj_w"] = nrm(ks[10], (c_exp, c_stem), 0.2)           # MBConv project 1x1
    p["proj_bn"] = bn(ks[11], c_stem)
    p["head_w"] = nrm(ks[12], (c_stem, n_features), 0.2)      # head 1x1 conv
    p["head_bn"] = bn(ks[13], n_features)
    p["cls_w"] = nrm(ks[14], (n_features, num_classes), 0.2)  # replaced nn.Linear classifier
    p["cls_b"] = nrm(ks[15], (1, num_classes), 0.05)
    return p


def prepare_params(p):
    """Fold eval-mode BN scales into the weight columns (in f32), reshape biases,
    and pre-cast MXU weights to bf16 ONCE, outside the jitted forward."""
    def fold(w, scale):
        return w * scale.reshape((1,) * (w.ndim - 1) + (-1,))

    stem_s, stem_b = p["stem_bn"]
    exp_s, exp_b = p["exp_bn"]
    dw_s, dw_b = p["dw_bn"]
    proj_s, proj_b = p["proj_bn"]
    head_s, head_b = p["head_bn"]
    return {
        "stem_w": fold(p["stem_w"], stem_s).astype(jnp.bfloat16),
        "stem_b": stem_b.reshape(1, -1),
        "exp_w": fold(p["exp_w"], exp_s).astype(jnp.bfloat16),
        "exp_b": exp_b.reshape(1, -1),
        "dw_w": fold(p["dw_w"], dw_s).astype(jnp.float32),
        "dw_b": dw_b.reshape(1, -1),
        "se1_w": p["se_fc1_w"].astype(jnp.float32),
        "se1_b": p["se_fc1_b"].reshape(1, -1),
        "se2_w": p["se_fc2_w"].astype(jnp.float32),
        "se2_b": p["se_fc2_b"].reshape(1, -1),
        "proj_w": fold(p["proj_w"], proj_s).astype(jnp.bfloat16),
        "proj_b": proj_b.reshape(1, -1),
        "head_w": fold(p["head_w"], head_s).astype(jnp.bfloat16),
        "head_b": head_b.reshape(1, -1),
        "cls_w": p["cls_w"].astype(jnp.float32),
        "cls_b": p["cls_b"].reshape(1, -1),
    }


# ----------------------------- forward pass -----------------------------

def custom_efficientnet_forward(x_nchw, prep):
    """EfficientNet-style forward: stem -> MBConv (expand/dw/SE/project + residual)
    -> head conv -> global pool -> Linear classifier. Returns (N, num_classes)."""
    # layout: NCHW (PyTorch) -> NHWC
    x = jnp.transpose(x_nchw, (0, 2, 3, 1)).astype(jnp.float32)
    patches, (N, Ho, Wo) = _im2col(x, k=3, s=2, p=1)   # (N, HW, 27)
    patches = patches.astype(jnp.bfloat16)             # only HBM activation read
    return fused_effnet(patches, prep, H=Ho, W=Wo)


# TODO(synk): full timm/geffnet EfficientNet has many MBConv stages and pretrained
# checkpoint loading; this implements one representative stage with synthetic weights.


if __name__ == "__main__":
    cfg = Config()
    key = jax.random.PRNGKey(0)
    kp, kx = jax.random.split(key)
    params = init_params(kp, num_classes=cfg.num_classes)
    prep = prepare_params(params)          # BN-fold + bf16 cast once, outside jit

    # PyTorch-style NCHW image batch.
    x = jax.random.normal(kx, (2, 3, 32, 32), jnp.float32)

    fwd = jax.jit(custom_efficientnet_forward)
    out = jax.block_until_ready(fwd(x, prep))

    assert out.shape == (2, cfg.num_classes), out.shape
    assert bool(jnp.all(jnp.isfinite(out)))
    print("KERNEL_OK")
</pallas_src>

<mosaic_0001>
module attributes {stable_mosaic.version = 11 : i64} {
  func.func @_fused_effnet_kernel(%arg0: i32, %arg1: memref<1x256x27xbf16, #tpu.memory_space<vmem>>, %arg2: memref<27x16xbf16, #tpu.memory_space<vmem>>, %arg3: memref<1x16xf32, #tpu.memory_space<vmem>>, %arg4: memref<16x64xbf16, #tpu.memory_space<vmem>>, %arg5: memref<1x64xf32, #tpu.memory_space<vmem>>, %arg6: memref<3x3x64xf32, #tpu.memory_space<vmem>>, %arg7: memref<1x64xf32, #tpu.memory_space<vmem>>, %arg8: memref<64x4xf32, #tpu.memory_space<vmem>>, %arg9: memref<1x4xf32, #tpu.memory_space<vmem>>, %arg10: memref<4x64xf32, #tpu.memory_space<vmem>>, %arg11: memref<1x64xf32, #tpu.memory_space<vmem>>, %arg12: memref<64x16xbf16, #tpu.memory_space<vmem>>, %arg13: memref<1x16xf32, #tpu.memory_space<vmem>>, %arg14: memref<16x64xbf16, #tpu.memory_space<vmem>>, %arg15: memref<1x64xf32, #tpu.memory_space<vmem>>, %arg16: memref<64x10xf32, #tpu.memory_space<vmem>>, %arg17: memref<1x10xf32, #tpu.memory_space<vmem>>, %arg18: memref<1x1x10xf32, #tpu.memory_space<vmem>>, %arg19: memref<256x16xf32, #tpu.memory_space<vmem>>, %arg20: memref<18x18x64xf32, #tpu.memory_space<vmem>>, %arg21: memref<256x64xf32, #tpu.memory_space<vmem>>) attributes {dimension_semantics = [#tpu.dimension_semantics<parallel>], iteration_bounds = array<i64: 2>, scalar_prefetch = 0 : i64, scratch_operands = 3 : i64, tpu.core_type = #tpu.core_type<tc>, window_params = [{transform_indices = @transform_0, window_bounds = array<i64: 1, 256, 27>}, {pipeline_mode = #tpu.pipeline_mode<synchronous>, transform_indices = @transform_1, window_bounds = array<i64: 27, 16>}, {pipeline_mode = #tpu.pipeline_mode<synchronous>, transform_indices = @transform_2, window_bounds = array<i64: 1, 16>}, {pipeline_mode = #tpu.pipeline_mode<synchronous>, transform_indices = @transform_3, window_bounds = array<i64: 16, 64>}, {pipeline_mode = #tpu.pipeline_mode<synchronous>, transform_indices = @transform_4, window_bounds = array<i64: 1, 64>}, {pipeline_mode = #tpu.pipeline_mode<synchronous>, transform_indices = @transform_5, window_bounds = array<i64: 3, 3, 64>}, {pipeline_mode = #tpu.pipeline_mode<synchronous>, transform_indices = @transform_6, window_bounds = array<i64: 1, 64>}, {pipeline_mode = #tpu.pipeline_mode<synchronous>, transform_indices = @transform_7, window_bounds = array<i64: 64, 4>}, {pipeline_mode = #tpu.pipeline_mode<synchronous>, transform_indices = @transform_8, window_bounds = array<i64: 1, 4>}, {pipeline_mode = #tpu.pipeline_mode<synchronous>, transform_indices = @transform_9, window_bounds = array<i64: 4, 64>}, {pipeline_mode = #tpu.pipeline_mode<synchronous>, transform_indices = @transform_10, window_bounds = array<i64: 1, 64>}, {pipeline_mode = #tpu.pipeline_mode<synchronous>, transform_indices = @transform_11, window_bounds = array<i64: 64, 16>}, {pipeline_mode = #tpu.pipeline_mode<synchronous>, transform_indices = @transform_12, window_bounds = array<i64: 1, 16>}, {pipeline_mode = #tpu.pipeline_mode<synchronous>, transform_indices = @transform_13, window_bounds = array<i64: 16, 64>}, {pipeline_mode = #tpu.pipeline_mode<synchronous>, transform_indices = @transform_14, window_bounds = array<i64: 1, 64>}, {pipeline_mode = #tpu.pipeline_mode<synchronous>, transform_indices = @transform_15, window_bounds = array<i64: 64, 10>}, {pipeline_mode = #tpu.pipeline_mode<synchronous>, transform_indices = @transform_16, window_bounds = array<i64: 1, 10>}, {transform_indices = @transform_17, window_bounds = array<i64: 1, 1, 10>}]} {
    %c0 = arith.constant 0 : index
    %c0_0 = arith.constant 0 : index
    %c0_1 = arith.constant 0 : index
    %0 = vector.load %arg1[%c0, %c0_0, %c0_1] : memref<1x256x27xbf16, #tpu.memory_space<vmem>>, vector<1x256x27xbf16>
    %1 = vector.shape_cast %0 : vector<1x256x27xbf16> to vector<256x27xbf16>
    %c0_2 = arith.constant 0 : index
    %c0_3 = arith.constant 0 : index
    %2 = vector.load %arg2[%c0_2, %c0_3] : memref<27x16xbf16, #tpu.memory_space<vmem>>, vector<27x16xbf16>
    %cst = arith.constant dense<0.000000e+00> : vector<256x16xf32>
    %3 = tpu.matmul %1, %2, %cst {dimension_numbers = #tpu.dot_dimension_numbers<[1], [0], [0], [1], [0, 0, 1, 1], [], []>} : vector<256x27xbf16>, vector<27x16xbf16>, vector<256x16xf32> -> vector<256x16xf32>
    %c0_4 = arith.constant 0 : index
    %c0_5 = arith.constant 0 : index
    %4 = vector.load %arg3[%c0_4, %c0_5] : memref<1x16xf32, #tpu.memory_space<vmem>>, vector<1x16xf32>
    %5 = vector.broadcast %4 : vector<1x16xf32> to vector<256x16xf32>
    %6 = arith.addf %3, %5 : vector<256x16xf32>
    %cst_6 = arith.constant 0.000000e+00 : f32
    %7 = vector.broadcast %cst_6 : f32 to vector<256x16xf32>
    %8 = arith.subf %7, %6 : vector<256x16xf32>
    %9 = math.exp %8 : vector<256x16xf32>
    %cst_7 = arith.constant 1.000000e+00 : f32
    %10 = vector.broadcast %cst_7 : f32 to vector<256x16xf32>
    %11 = arith.addf %10, %9 : vector<256x16xf32>
    %12 = tpu.reciprocal %11 {approx = true} : vector<256x16xf32> -> vector<256x16xf32>
    %13 = arith.mulf %6, %12 : vector<256x16xf32>
    %c0_8 = arith.constant 0 : index
    %c0_9 = arith.constant 0 : index
    %14 = vector.load %arg19[%c0_8, %c0_9] : memref<256x16xf32, #tpu.memory_space<vmem>>, vector<256x16xf32>
    tpu.vector_store %arg19[%c0_8, %c0_9], %13 {strides = array<i32>} : memref<256x16xf32, #tpu.memory_space<vmem>>, vector<256x16xf32>,
    %15 = arith.truncf %13 : vector<256x16xf32> to vector<256x16xbf16>
    %c0_10 = arith.constant 0 : index
    %c0_11 = arith.constant 0 : index
    %16 = vector.load %arg4[%c0_10, %c0_11] : memref<16x64xbf16, #tpu.memory_space<vmem>>, vector<16x64xbf16>
    %cst_12 = arith.constant dense<0.000000e+00> : vector<256x64xf32>
    %17 = tpu.matmul %15, %16, %cst_12 {dimension_numbers = #tpu.dot_dimension_numbers<[1], [0], [0], [1], [0, 0, 1, 1], [], []>} : vector<256x16xbf16>, vector<16x64xbf16>, vector<256x64xf32> -> vector<256x64xf32>
    %c0_13 = arith.constant 0 : index
    %c0_14 = arith.constant 0 : index
    %18 = vector.load %arg5[%c0_13, %c0_14] : memref<1x64xf32, #tpu.memory_space<vmem>>, vector<1x64xf32>
    %19 = vector.broadcast %18 : vector<1x64xf32> to vector<256x64xf32>
    %20 = arith.addf %17, %19 : vector<256x64xf32>
    %cst_15 = arith.constant 0.000000e+00 : f32
    %21 = vector.broadcast %cst_15 : f32 to vector<256x64xf32>
    %22 = arith.subf %21, %20 : vector<256x64xf32>
    %23 = math.exp %22 : vector<256x64xf32>
    %cst_16 = arith.constant 1.000000e+00 : f32
    %24 = vector.broadcast %cst_16 : f32 to vector<256x64xf32>
    %25 = arith.addf %24, %23 : vector<256x64xf32>
    %26 = tpu.reciprocal %25 {approx = true} : vector<256x64xf32> -> vector<256x64xf32>
    %27 = arith.mulf %20, %26 : vector<256x64xf32>
    %cst_17 = arith.constant 0.000000e+00 : f32
    %28 = vector.broadcast %cst_17 : f32 to vector<18x18x64xf32>
    %c0_18 = arith.constant 0 : index
    %c0_19 = arith.constant 0 : index
    %c0_20 = arith.constant 0 : index
    %29 = vector.load %arg20[%c0_18, %c0_19, %c0_20] : memref<18x18x64xf32, #tpu.memory_space<vmem>>, vector<18x18x64xf32>
    tpu.vector_store %arg20[%c0_18, %c0_19, %c0_20], %28 {strides = array<i32>} : memref<18x18x64xf32, #tpu.memory_space<vmem>>, vector<18x18x64xf32>,
    %30 = vector.extract_strided_slice %27 {offsets = [0, 0], sizes = [16, 64], strides = [1, 1]} : vector<256x64xf32> to vector<16x64xf32>
    %c1 = arith.constant 1 : index
    %c1_21 = arith.constant 1 : index
    %c0_22 = arith.constant 0 : index
    %31 = vector.load %arg20[%c1, %c1_21, %c0_22] : memref<18x18x64xf32, #tpu.memory_space<vmem>>, vector<1x16x64xf32>
    %32 = vector.shape_cast %31 : vector<1x16x64xf32> to vector<16x64xf32>
    %33 = vector.shape_cast %30 : vector<16x64xf32> to vector<1x16x64xf32>
    tpu.vector_store %arg20[%c1, %c1_21, %c0_22], %33 {strides = array<i32>} : memref<18x18x64xf32, #tpu.memory_space<vmem>>, vector<1x16x64xf32>,
    %34 = vector.extract_strided_slice %27 {offsets = [16, 0], sizes = [16, 64], strides = [1, 1]} : vector<256x64xf32> to vector<16x64xf32>
    %c2 = arith.constant 2 : index
    %c1_23 = arith.constant 1 : index
    %c0_24 = arith.constant 0 : index
    %35 = vector.load %arg20[%c2, %c1_23, %c0_24] : memref<18x18x64xf32, #tpu.memory_space<vmem>>, vector<1x16x64xf32>
    %36 = vector.shape_cast %35 : vector<1x16x64xf32> to vector<16x64xf32>
    %37 = vector.shape_cast %34 : vector<16x64xf32> to vector<1x16x64xf32>
    tpu.vector_store %arg20[%c2, %c1_23, %c0_24], %37 {strides = array<i32>} : memref<18x18x64xf32, #tpu.memory_space<vmem>>, vector<1x16x64xf32>,
    %38 = vector.extract_strided_slice %27 {offsets = [32, 0], sizes = [16, 64], strides = [1, 1]} : vector<256x64xf32> to vector<16x64xf32>
    %c3 = arith.constant 3 : index
    %c1_25 = arith.constant 1 : index
    %c0_26 = arith.constant 0 : index
    %39 = vector.load %arg20[%c3, %c1_25, %c0_26] : memref<18x18x64xf32, #tpu.memory_space<vmem>>, vector<1x16x64xf32>
    %40 = vector.shape_cast %39 : vector<1x16x64xf32> to vector<16x64xf32>
    %41 = vector.shape_cast %38 : vector<16x64xf32> to vector<1x16x64xf32>
    tpu.vector_store %arg20[%c3, %c1_25, %c0_26], %41 {strides = array<i32>} : memref<18x18x64xf32, #tpu.memory_space<vmem>>, vector<1x16x64xf32>,
    %42 = vector.extract_strided_slice %27 {offsets = [48, 0], sizes = [16, 64], strides = [1, 1]} : vector<256x64xf32> to vector<16x64xf32>
    %c4 = arith.constant 4 : index
    %c1_27 = arith.constant 1 : index
    %c0_28 = arith.constant 0 : index
    %43 = vector.load %arg20[%c4, %c1_27, %c0_28] : memref<18x18x64xf32, #tpu.memory_space<vmem>>, vector<1x16x64xf32>
    %44 = vector.shape_cast %43 : vector<1x16x64xf32> to vector<16x64xf32>
    %45 = vector.shape_cast %42 : vector<16x64xf32> to vector<1x16x64xf32>
    tpu.vector_store %arg20[%c4, %c1_27, %c0_28], %45 {strides = array<i32>} : memref<18x18x64xf32, #tpu.memory_space<vmem>>, vector<1x16x64xf32>,
    %46 = vector.extract_strided_slice %27 {offsets = [64, 0], sizes = [16, 64], strides = [1, 1]} : vector<256x64xf32> to vector<16x64xf32>
    %c5 = arith.constant 5 : index
    %c1_29 = arith.constant 1 : index
    %c0_30 = arith.constant 0 : index
    %47 = vector.load %arg20[%c5, %c1_29, %c0_30] : memref<18x18x64xf32, #tpu.memory_space<vmem>>, vector<1x16x64xf32>
    %48 = vector.shape_cast %47 : vector<1x16x64xf32> to vector<16x64xf32>
    %49 = vector.shape_cast %46 : vector<16x64xf32> to vector<1x16x64xf32>
    tpu.vector_store %arg20[%c5, %c1_29, %c0_30], %49 {strides = array<i32>} : memref<18x18x64xf32, #tpu.memory_space<vmem>>, vector<1x16x64xf32>,
    %50 = vector.extract_strided_slice %27 {offsets = [80, 0], sizes = [16, 64], strides = [1, 1]} : vector<256x64xf32> to vector<16x64xf32>
    %c6 = arith.constant 6 : index
    %c1_31 = arith.constant 1 : index
    %c0_32 = arith.constant 0 : index
    %51 = vector.load %arg20[%c6, %c1_31, %c0_32] : memref<18x18x64xf32, #tpu.memory_space<vmem>>, vector<1x16x64xf32>
    %52 = vector.shape_cast %51 : vector<1x16x64xf32> to vector<16x64xf32>
    %53 = vector.shape_cast %50 : vector<16x64xf32> to vector<1x16x64xf32>
    tpu.vector_store %arg20[%c6, %c1_31, %c0_32], %53 {strides = array<i32>} : memref<18x18x64xf32, #tpu.memory_space<vmem>>, vector<1x16x64xf32>,
    %54 = vector.extract_strided_slice %27 {offsets = [96, 0], sizes = [16, 64], strides = [1, 1]} : vector<256x64xf32> to vector<16x64xf32>
    %c7 = arith.constant 7 : index
    %c1_33 = arith.constant 1 : index
    %c0_34 = arith.constant 0 : index
    %55 = vector.load %arg20[%c7, %c1_33, %c0_34] : memref<18x18x64xf32, #tpu.memory_space<vmem>>, vector<1x16x64xf32>
    %56 = vector.shape_cast %55 : vector<1x16x64xf32> to vector<16x64xf32>
    %57 = vector.shape_cast %54 : vector<16x64xf32> to vector<1x16x64xf32>
    tpu.vector_store %arg20[%c7, %c1_33, %c0_34], %57 {strides = array<i32>} : memref<18x18x64xf32, #tpu.memory_space<vmem>>, vector<1x16x64xf32>,
    %58 = vector.extract_strided_slice %27 {offsets = [112, 0], sizes = [16, 64], strides = [1, 1]} : vector<256x64xf32> to vector<16x64xf32>
    %c8 = arith.constant 8 : index
    %c1_35 = arith.constant 1 : index
    %c0_36 = arith.constant 0 : index
    %59 = vector.load %arg20[%c8, %c1_35, %c0_36] : memref<18x18x64xf32, #tpu.memory_space<vmem>>, vector<1x16x64xf32>
    %60 = vector.shape_cast %59 : vector<1x16x64xf32> to vector<16x64xf32>
    %61 = vector.shape_cast %58 : vector<16x64xf32> to vector<1x16x64xf32>
    tpu.vector_store %arg20[%c8, %c1_35, %c0_36], %61 {strides = array<i32>} : memref<18x18x64xf32, #tpu.memory_space<vmem>>, vector<1x16x64xf32>,
    %62 = vector.extract_strided_slice %27 {offsets = [128, 0], sizes = [16, 64], strides = [1, 1]} : vector<256x64xf32> to vector<16x64xf32>
    %c9 = arith.constant 9 : index
    %c1_37 = arith.constant 1 : index
    %c0_38 = arith.constant 0 : index
    %63 = vector.load %arg20[%c9, %c1_37, %c0_38] : memref<18x18x64xf32, #tpu.memory_space<vmem>>, vector<1x16x64xf32>
    %64 = vector.shape_cast %63 : vector<1x16x64xf32> to vector<16x64xf32>
    %65 = vector.shape_cast %62 : vector<16x64xf32> to vector<1x16x64xf32>
    tpu.vector_store %arg20[%c9, %c1_37, %c0_38], %65 {strides = array<i32>} : memref<18x18x64xf32, #tpu.memory_space<vmem>>, vector<1x16x64xf32>,
    %66 = vector.extract_strided_slice %27 {offsets = [144, 0], sizes = [16, 64], strides = [1, 1]} : vector<256x64xf32> to vector<16x64xf32>
    %c10 = arith.constant 10 : index
    %c1_39 = arith.constant 1 : index
    %c0_40 = arith.constant 0 : index
    %67 = vector.load %arg20[%c10, %c1_39, %c0_40] : memref<18x18x64xf32, #tpu.memory_space<vmem>>, vector<1x16x64xf32>
    %68 = vector.shape_cast %67 : vector<1x16x64xf32> to vector<16x64xf32>
    %69 = vector.shape_cast %66 : vector<16x64xf32> to vector<1x16x64xf32>
    tpu.vector_store %arg20[%c10, %c1_39, %c0_40], %69 {strides = array<i32>} : memref<18x18x64xf32, #tpu.memory_space<vmem>>, vector<1x16x64xf32>,
    %70 = vector.extract_strided_slice %27 {offsets = [160, 0], sizes = [16, 64], strides = [1, 1]} : vector<256x64xf32> to vector<16x64xf32>
    %c11 = arith.constant 11 : index
    %c1_41 = arith.constant 1 : index
    %c0_42 = arith.constant 0 : index
    %71 = vector.load %arg20[%c11, %c1_41, %c0_42] : memref<18x18x64xf32, #tpu.memory_space<vmem>>, vector<1x16x64xf32>
    %72 = vector.shape_cast %71 : vector<1x16x64xf32> to vector<16x64xf32>
    %73 = vector.shape_cast %70 : vector<16x64xf32> to vector<1x16x64xf32>
    tpu.vector_store %arg20[%c11, %c1_41, %c0_42], %73 {strides = array<i32>} : memref<18x18x64xf32, #tpu.memory_space<vmem>>, vector<1x16x64xf32>,
    %74 = vector.extract_strided_slice %27 {offsets = [176, 0], sizes = [16, 64], strides = [1, 1]} : vector<256x64xf32> to vector<16x64xf32>
    %c12 = arith.constant 12 : index
    %c1_43 = arith.constant 1 : index
    %c0_44 = arith.constant 0 : index
    %75 = vector.load %arg20[%c12, %c1_43, %c0_44] : memref<18x18x64xf32, #tpu.memory_space<vmem>>, vector<1x16x64xf32>
    %76 = vector.shape_cast %75 : vector<1x16x64xf32> to vector<16x64xf32>
    %77 = vector.shape_cast %74 : vector<16x64xf32> to vector<1x16x64xf32>
    tpu.vector_store %arg20[%c12, %c1_43, %c0_44], %77 {strides = array<i32>} : memref<18x18x64xf32, #tpu.memory_space<vmem>>, vector<1x16x64xf32>,
    %78 = vector.extract_strided_slice %27 {offsets = [192, 0], sizes = [16, 64], strides = [1, 1]} : vector<256x64xf32> to vector<16x64xf32>
    %c13 = arith.constant 13 : index
    %c1_45 = arith.constant 1 : index
    %c0_46 = arith.constant 0 : index
    %79 = vector.load %arg20[%c13, %c1_45, %c0_46] : memref<18x18x64xf32, #tpu.memory_space<vmem>>, vector<1x16x64xf32>
    %80 = vector.shape_cast %79 : vector<1x16x64xf32> to vector<16x64xf32>
    %81 = vector.shape_cast %78 : vector<16x64xf32> to vector<1x16x64xf32>
    tpu.vector_store %arg20[%c13, %c1_45, %c0_46], %81 {strides = array<i32>} : memref<18x18x64xf32, #tpu.memory_space<vmem>>, vector<1x16x64xf32>,
    %82 = vector.extract_strided_slice %27 {offsets = [208, 0], sizes = [16, 64], strides = [1, 1]} : vector<256x64xf32> to vector<16x64xf32>
    %c14 = arith.constant 14 : index
    %c1_47 = arith.constant 1 : index
    %c0_48 = arith.constant 0 : index
    %83 = vector.load %arg20[%c14, %c1_47, %c0_48] : memref<18x18x64xf32, #tpu.memory_space<vmem>>, vector<1x16x64xf32>
    %84 = vector.shape_cast %83 : vector<1x16x64xf32> to vector<16x64xf32>
    %85 = vector.shape_cast %82 : vector<16x64xf32> to vector<1x16x64xf32>
    tpu.vector_store %arg20[%c14, %c1_47, %c0_48], %85 {strides = array<i32>} : memref<18x18x64xf32, #tpu.memory_space<vmem>>, vector<1x16x64xf32>,
    %86 = vector.extract_strided_slice %27 {offsets = [224, 0], sizes = [16, 64], strides = [1, 1]} : vector<256x64xf32> to vector<16x64xf32>
    %c15 = arith.constant 15 : index
    %c1_49 = arith.constant 1 : index
    %c0_50 = arith.constant 0 : index
    %87 = vector.load %arg20[%c15, %c1_49, %c0_50] : memref<18x18x64xf32, #tpu.memory_space<vmem>>, vector<1x16x64xf32>
    %88 = vector.shape_cast %87 : vector<1x16x64xf32> to vector<16x64xf32>
    %89 = vector.shape_cast %86 : vector<16x64xf32> to vector<1x16x64xf32>
    tpu.vector_store %arg20[%c15, %c1_49, %c0_50], %89 {strides = array<i32>} : memref<18x18x64xf32, #tpu.memory_space<vmem>>, vector<1x16x64xf32>,
    %90 = vector.extract_strided_slice %27 {offsets = [240, 0], sizes = [16, 64], strides = [1, 1]} : vector<256x64xf32> to vector<16x64xf32>
    %c16 = arith.constant 16 : index
    %c1_51 = arith.constant 1 : index
    %c0_52 = arith.constant 0 : index
    %91 = vector.load %arg20[%c16, %c1_51, %c0_52] : memref<18x18x64xf32, #tpu.memory_space<vmem>>, vector<1x16x64xf32>
    %92 = vector.shape_cast %91 : vector<1x16x64xf32> to vector<16x64xf32>
    %93 = vector.shape_cast %90 : vector<16x64xf32> to vector<1x16x64xf32>
    tpu.vector_store %arg20[%c16, %c1_51, %c0_52], %93 {strides = array<i32>} : memref<18x18x64xf32, #tpu.memory_space<vmem>>, vector<1x16x64xf32>,
    %c0_53 = arith.constant 0 : index
    %c0_54 = arith.constant 0 : index
    %c0_55 = arith.constant 0 : index
    %94 = vector.load %arg6[%c0_53, %c0_54, %c0_55] : memref<3x3x64xf32, #tpu.memory_space<vmem>>, vector<3x3x64xf32>
    %cst_56 = arith.constant 0.000000e+00 : f32
    %95 = vector.broadcast %cst_56 : f32 to vector<16x16x64xf32>
    %c0_57 = arith.constant 0 : index
    %c0_58 = arith.constant 0 : index
    %c0_59 = arith.constant 0 : index
    %96 = vector.load %arg20[%c0_57, %c0_58, %c0_59] : memref<18x18x64xf32, #tpu.memory_space<vmem>>, vector<16x16x64xf32>
    %97 = vector.extract_strided_slice %94 {offsets = [0, 0, 0], sizes = [1, 1, 64], strides = [1, 1, 1]} : vector<3x3x64xf32> to vector<1x1x64xf32>
    %98 = vector.shape_cast %97 : vector<1x1x64xf32> to vector<64xf32>
    %99 = vector.shape_cast %98 : vector<64xf32> to vector<1x1x64xf32>
    %100 = vector.broadcast %99 : vector<1x1x64xf32> to vector<16x16x64xf32>
    %101 = arith.mulf %96, %100 : vector<16x16x64xf32>
    %102 = arith.addf %95, %101 : vector<16x16x64xf32>
    %c0_60 = arith.constant 0 : index
    %c1_61 = arith.constant 1 : index
    %c0_62 = arith.constant 0 : index
    %103 = vector.load %arg20[%c0_60, %c1_61, %c0_62] : memref<18x18x64xf32, #tpu.memory_space<vmem>>, vector<16x16x64xf32>
    %104 = vector.extract_strided_slice %94 {offsets = [0, 1, 0], sizes = [1, 1, 64], strides = [1, 1, 1]} : vector<3x3x64xf32> to vector<1x1x64xf32>
    %105 = vector.shape_cast %104 : vector<1x1x64xf32> to vector<64xf32>
    %106 = vector.shape_cast %105 : vector<64xf32> to vector<1x1x64xf32>
    %107 = vector.broadcast %106 : vector<1x1x64xf32> to vector<16x16x64xf32>
    %108 = arith.mulf %103, %107 : vector<16x16x64xf32>
    %109 = arith.addf %102, %108 : vector<16x16x64xf32>
    %c0_63 = arith.constant 0 : index
    %c2_64 = arith.constant 2 : index
    %c0_65 = arith.constant 0 : index
    %110 = vector.load %arg20[%c0_63, %c2_64, %c0_65] : memref<18x18x64xf32, #tpu.memory_space<vmem>>, vector<16x16x64xf32>
    %111 = vector.extract_strided_slice %94 {offsets = [0, 2, 0], sizes = [1, 1, 64], strides = [1, 1, 1]} : vector<3x3x64xf32> to vector<1x1x64xf32>
    %112 = vector.shape_cast %111 : vector<1x1x64xf32> to vector<64xf32>
    %113 = vector.shape_cast %112 : vector<64xf32> to vector<1x1x64xf32>
    %114 = vector.broadcast %113 : vector<1x1x64xf32> to vector<16x16x64xf32>
    %115 = arith.mulf %110, %114 : vector<16x16x64xf32>
    %116 = arith.addf %109, %115 : vector<16x16x64xf32>
    %c1_66 = arith.constant 1 : index
    %c0_67 = arith.constant 0 : index
    %c0_68 = arith.constant 0 : index
    %117 = vector.load %arg20[%c1_66, %c0_67, %c0_68] : memref<18x18x64xf32, #tpu.memory_space<vmem>>, vector<16x16x64xf32>
    %118 = vector.extract_strided_slice %94 {offsets = [1, 0, 0], sizes = [1, 1, 64], strides = [1, 1, 1]} : vector<3x3x64xf32> to vector<1x1x64xf32>
    %119 = vector.shape_cast %118 : vector<1x1x64xf32> to vector<64xf32>
    %120 = vector.shape_cast %119 : vector<64xf32> to vector<1x1x64xf32>
    %121 = vector.broadcast %120 : vector<1x1x64xf32> to vector<16x16x64xf32>
    %122 = arith.mulf %117, %121 : vector<16x16x64xf32>
    %123 = arith.addf %116, %122 : vector<16x16x64xf32>
    %c1_69 = arith.constant 1 : index
    %c1_70 = arith.constant 1 : index
    %c0_71 = arith.constant 0 : index
    %124 = vector.load %arg20[%c1_69, %c1_70, %c0_71] : memref<18x18x64xf32, #tpu.memory_space<vmem>>, vector<16x16x64xf32>
    %125 = vector.extract_strided_slice %94 {offsets = [1, 1, 0], sizes = [1, 1, 64], strides = [1, 1, 1]} : vector<3x3x64xf32> to vector<1x1x64xf32>
    %126 = vector.shape_cast %125 : vector<1x1x64xf32> to vector<64xf32>
    %127 = vector.shape_cast %126 : vector<64xf32> to vector<1x1x64xf32>
    %128 = vector.broadcast %127 : vector<1x1x64xf32> to vector<16x16x64xf32>
    %129 = arith.mulf %124, %128 : vector<16x16x64xf32>
    %130 = arith.addf %123, %129 : vector<16x16x64xf32>
    %c1_72 = arith.constant 1 : index
    %c2_73 = arith.constant 2 : index
    %c0_74 = arith.constant 0 : index
    %131 = vector.load %arg20[%c1_72, %c2_73, %c0_74] : memref<18x18x64xf32, #tpu.memory_space<vmem>>, vector<16x16x64xf32>
    %132 = vector.extract_strided_slice %94 {offsets = [1, 2, 0], sizes = [1, 1, 64], strides = [1, 1, 1]} : vector<3x3x64xf32> to vector<1x1x64xf32>
    %133 = vector.shape_cast %132 : vector<1x1x64xf32> to vector<64xf32>
    %134 = vector.shape_cast %133 : vector<64xf32> to vector<1x1x64xf32>
    %135 = vector.broadcast %134 : vector<1x1x64xf32> to vector<16x16x64xf32>
    %136 = arith.mulf %131, %135 : vector<16x16x64xf32>
    %137 = arith.addf %130, %136 : vector<16x16x64xf32>
    %c2_75 = arith.constant 2 : index
    %c0_76 = arith.constant 0 : index
    %c0_77 = arith.constant 0 : index
    %138 = vector.load %arg20[%c2_75, %c0_76, %c0_77] : memref<18x18x64xf32, #tpu.memory_space<vmem>>, vector<16x16x64xf32>
    %139 = vector.extract_strided_slice %94 {offsets = [2, 0, 0], sizes = [1, 1, 64], strides = [1, 1, 1]} : vector<3x3x64xf32> to vector<1x1x64xf32>
    %140 = vector.shape_cast %139 : vector<1x1x64xf32> to vector<64xf32>
    %141 = vector.shape_cast %140 : vector<64xf32> to vector<1x1x64xf32>
    %142 = vector.broadcast %141 : vector<1x1x64xf32> to vector<16x16x64xf32>
    %143 = arith.mulf %138, %142 : vector<16x16x64xf32>
    %144 = arith.addf %137, %143 : vector<16x16x64xf32>
    %c2_78 = arith.constant 2 : index
    %c1_79 = arith.constant 1 : index
    %c0_80 = arith.constant 0 : index
    %145 = vector.load %arg20[%c2_78, %c1_79, %c0_80] : memref<18x18x64xf32, #tpu.memory_space<vmem>>, vector<16x16x64xf32>
    %146 = vector.extract_strided_slice %94 {offsets = [2, 1, 0], sizes = [1, 1, 64], strides = [1, 1, 1]} : vector<3x3x64xf32> to vector<1x1x64xf32>
    %147 = vector.shape_cast %146 : vector<1x1x64xf32> to vector<64xf32>
    %148 = vector.shape_cast %147 : vector<64xf32> to vector<1x1x64xf32>
    %149 = vector.broadcast %148 : vector<1x1x64xf32> to vector<16x16x64xf32>
    %150 = arith.mulf %145, %149 : vector<16x16x64xf32>
    %151 = arith.addf %144, %150 : vector<16x16x64xf32>
    %c2_81 = arith.constant 2 : index
    %c2_82 = arith.constant 2 : index
    %c0_83 = arith.constant 0 : index
    %152 = vector.load %arg20[%c2_81, %c2_82, %c0_83] : memref<18x18x64xf32, #tpu.memory_space<vmem>>, vector<16x16x64xf32>
    %153 = vector.extract_strided_slice %94 {offsets = [2, 2, 0], sizes = [1, 1, 64], strides = [1, 1, 1]} : vector<3x3x64xf32> to vector<1x1x64xf32>
    %154 = vector.shape_cast %153 : vector<1x1x64xf32> to vector<64xf32>
    %155 = vector.shape_cast %154 : vector<64xf32> to vector<1x1x64xf32>
    %156 = vector.broadcast %155 : vector<1x1x64xf32> to vector<16x16x64xf32>
    %157 = arith.mulf %152, %156 : vector<16x16x64xf32>
    %158 = arith.addf %151, %157 : vector<16x16x64xf32>
    %c0_84 = arith.constant 0 : index
    %c0_85 = arith.constant 0 : index
    %159 = vector.load %arg7[%c0_84, %c0_85] : memref<1x64xf32, #tpu.memory_space<vmem>>, vector<1x64xf32>
    %160 = vector.shape_cast %159 : vector<1x64xf32> to vector<1x1x64xf32>
    %161 = vector.broadcast %160 : vector<1x1x64xf32> to vector<16x16x64xf32>
    %162 = arith.addf %158, %161 : vector<16x16x64xf32>
    %cst_86 = arith.constant 0.000000e+00 : f32
    %163 = vector.broadcast %cst_86 : f32 to vector<16x16x64xf32>
    %164 = arith.subf %163, %162 : vector<16x16x64xf32>
    %165 = math.exp %164 : vector<16x16x64xf32>
    %cst_87 = arith.constant 1.000000e+00 : f32
    %166 = vector.broadcast %cst_87 : f32 to vector<16x16x64xf32>
    %167 = arith.addf %166, %165 : vector<16x16x64xf32>
    %168 = tpu.reciprocal %167 {approx = true} : vector<16x16x64xf32> -> vector<16x16x64xf32>
    %169 = arith.mulf %162, %168 : vector<16x16x64xf32>
    %cst_88 = arith.constant dense<0.000000e+00> : vector<64xf32>
    %170 = vector.multi_reduction <add>, %169, %cst_88 [0, 1] : vector<16x16x64xf32> to vector<64xf32>
    %171 = vector.shape_cast %170 : vector<64xf32> to vector<1x1x64xf32>
    %172 = vector.shape_cast %171 : vector<1x1x64xf32> to vector<1x64xf32>
    %cst_89 = arith.constant 3.906250e-03 : f32
    %173 = vector.broadcast %cst_89 : f32 to vector<1x64xf32>
    %174 = arith.mulf %172, %173 : vector<1x64xf32>
    %175 = vector.extract_strided_slice %169 {offsets = [0, 0, 0], sizes = [1, 16, 64], strides = [1, 1, 1]} : vector<16x16x64xf32> to vector<1x16x64xf32>
    %176 = vector.shape_cast %175 : vector<1x16x64xf32> to vector<16x64xf32>
    %c0_90 = arith.constant 0 : index
    %c0_91 = arith.constant 0 : index
    %177 = vector.load %arg21[%c0_90, %c0_91] : memref<256x64xf32, #tpu.memory_space<vmem>>, vector<16x64xf32>
    tpu.vector_store %arg21[%c0_90, %c0_91], %176 {strides = array<i32>} : memref<256x64xf32, #tpu.memory_space<vmem>>, vector<16x64xf32>,
    %178 = vector.extract_strided_slice %169 {offsets = [1, 0, 0], sizes = [1, 16, 64], strides = [1, 1, 1]} : vector<16x16x64xf32> to vector<1x16x64xf32>
    %179 = vector.shape_cast %178 : vector<1x16x64xf32> to vector<16x64xf32>
    %c16_92 = arith.constant 16 : index
    %c0_93 = arith.constant 0 : index
    %180 = vector.load %arg21[%c16_92, %c0_93] : memref<256x64xf32, #tpu.memory_space<vmem>>, vector<16x64xf32>
    tpu.vector_store %arg21[%c16_92, %c0_93], %179 {strides = array<i32>} : memref<256x64xf32, #tpu.memory_space<vmem>>, vector<16x64xf32>,
    %181 = vector.extract_strided_slice %169 {offsets = [2, 0, 0], sizes = [1, 16, 64], strides = [1, 1, 1]} : vector<16x16x64xf32> to vector<1x16x64xf32>
    %182 = vector.shape_cast %181 : vector<1x16x64xf32> to vector<16x64xf32>
    %c32 = arith.constant 32 : index
    %c0_94 = arith.constant 0 : index
    %183 = vector.load %arg21[%c32, %c0_94] : memref<256x64xf32, #tpu.memory_space<vmem>>, vector<16x64xf32>
    tpu.vector_store %arg21[%c32, %c0_94], %182 {strides = array<i32>} : memref<256x64xf32, #tpu.memory_space<vmem>>, vector<16x64xf32>,
    %184 = vector.extract_strided_slice %169 {offsets = [3, 0, 0], sizes = [1, 16, 64], strides = [1, 1, 1]} : vector<16x16x64xf32> to vector<1x16x64xf32>
    %185 = vector.shape_cast %184 : vector<1x16x64xf32> to vector<16x64xf32>
    %c48 = arith.constant 48 : index
    %c0_95 = arith.constant 0 : index
    %186 = vector.load %arg21[%c48, %c0_95] : memref<256x64xf32, #tpu.memory_space<vmem>>, vector<16x64xf32>
    tpu.vector_store %arg21[%c48, %c0_95], %185 {strides = array<i32>} : memref<256x64xf32, #tpu.memory_space<vmem>>, vector<16x64xf32>,
    %187 = vector.extract_strided_slice %169 {offsets = [4, 0, 0], sizes = [1, 16, 64], strides = [1, 1, 1]} : vector<16x16x64xf32> to vector<1x16x64xf32>
    %188 = vector.shape_cast %187 : vector<1x16x64xf32> to vector<16x64xf32>
    %c64 = arith.constant 64 : index
    %c0_96 = arith.constant 0 : index
    %189 = vector.load %arg21[%c64, %c0_96] : memref<256x64xf32, #tpu.memory_space<vmem>>, vector<16x64xf32>
    tpu.vector_store %arg21[%c64, %c0_96], %188 {strides = array<i32>} : memref<256x64xf32, #tpu.memory_space<vmem>>, vector<16x64xf32>,
    %190 = vector.extract_strided_slice %169 {offsets = [5, 0, 0], sizes = [1, 16, 64], strides = [1, 1, 1]} : vector<16x16x64xf32> to vector<1x16x64xf32>
    %191 = vector.shape_cast %190 : vector<1x16x64xf32> to vector<16x64xf32>
    %c80 = arith.constant 80 : index
    %c0_97 = arith.constant 0 : index
    %192 = vector.load %arg21[%c80, %c0_97] : memref<256x64xf32, #tpu.memory_space<vmem>>, vector<16x64xf32>
    tpu.vector_store %arg21[%c80, %c0_97], %191 {strides = array<i32>} : memref<256x64xf32, #tpu.memory_space<vmem>>, vector<16x64xf32>,
    %193 = vector.extract_strided_slice %169 {offsets = [6, 0, 0], sizes = [1, 16, 64], strides = [1, 1, 1]} : vector<16x16x64xf32> to vector<1x16x64xf32>
    %194 = vector.shape_cast %193 : vector<1x16x64xf32> to vector<16x64xf32>
    %c96 = arith.constant 96 : index
    %c0_98 = arith.constant 0 : index
    %195 = vector.load %arg21[%c96, %c0_98] : memref<256x64xf32, #tpu.memory_space<vmem>>, vector<16x64xf32>
    tpu.vector_store %arg21[%c96, %c0_98], %194 {strides = array<i32>} : memref<256x64xf32, #tpu.memory_space<vmem>>, vector<16x64xf32>,
    %196 = vector.extract_strided_slice %169 {offsets = [7, 0, 0], sizes = [1, 16, 64], strides = [1, 1, 1]} : vector<16x16x64xf32> to vector<1x16x64xf32>
    %197 = vector.shape_cast %196 : vector<1x16x64xf32> to vector<16x64xf32>
    %c112 = arith.constant 112 : index
    %c0_99 = arith.constant 0 : index
    %198 = vector.load %arg21[%c112, %c0_99] : memref<256x64xf32, #tpu.memory_space<vmem>>, vector<16x64xf32>
    tpu.vector_store %arg21[%c112, %c0_99], %197 {strides = array<i32>} : memref<256x64xf32, #tpu.memory_space<vmem>>, vector<16x64xf32>,
    %199 = vector.extract_strided_slice %169 {offsets = [8, 0, 0], sizes = [1, 16, 64], strides = [1, 1, 1]} : vector<16x16x64xf32> to vector<1x16x64xf32>
    %200 = vector.shape_cast %199 : vector<1x16x64xf32> to vector<16x64xf32>
    %c128 = arith.constant 128 : index
    %c0_100 = arith.constant 0 : index
    %201 = vector.load %arg21[%c128, %c0_100] : memref<256x64xf32, #tpu.memory_space<vmem>>, vector<16x64xf32>
    tpu.vector_store %arg21[%c128, %c0_100], %200 {strides = array<i32>} : memref<256x64xf32, #tpu.memory_space<vmem>>, vector<16x64xf32>,
    %202 = vector.extract_strided_slice %169 {offsets = [9, 0, 0], sizes = [1, 16, 64], strides = [1, 1, 1]} : vector<16x16x64xf32> to vector<1x16x64xf32>
    %203 = vector.shape_cast %202 : vector<1x16x64xf32> to vector<16x64xf32>
    %c144 = arith.constant 144 : index
    %c0_101 = arith.constant 0 : index
    %204 = vector.load %arg21[%c144, %c0_101] : memref<256x64xf32, #tpu.memory_space<vmem>>, vector<16x64xf32>
    tpu.vector_store %arg21[%c144, %c0_101], %203 {strides = array<i32>} : memref<256x64xf32, #tpu.memory_space<vmem>>, vector<16x64xf32>,
    %205 = vector.extract_strided_slice %169 {offsets = [10, 0, 0], sizes = [1, 16, 64], strides = [1, 1, 1]} : vector<16x16x64xf32> to vector<1x16x64xf32>
    %206 = vector.shape_cast %205 : vector<1x16x64xf32> to vector<16x64xf32>
    %c160 = arith.constant 160 : index
    %c0_102 = arith.constant 0 : index
    %207 = vector.load %arg21[%c160, %c0_102] : memref<256x64xf32, #tpu.memory_space<vmem>>, vector<16x64xf32>
    tpu.vector_store %arg21[%c160, %c0_102], %206 {strides = array<i32>} : memref<256x64xf32, #tpu.memory_space<vmem>>, vector<16x64xf32>,
    %208 = vector.extract_strided_slice %169 {offsets = [11, 0, 0], sizes = [1, 16, 64], strides = [1, 1, 1]} : vector<16x16x64xf32> to vector<1x16x64xf32>
    %209 = vector.shape_cast %208 : vector<1x16x64xf32> to vector<16x64xf32>
    %c176 = arith.constant 176 : index
    %c0_103 = arith.constant 0 : index
    %210 = vector.load %arg21[%c176, %c0_103] : memref<256x64xf32, #tpu.memory_space<vmem>>, vector<16x64xf32>
    tpu.vector_store %arg21[%c176, %c0_103], %209 {strides = array<i32>} : memref<256x64xf32, #tpu.memory_space<vmem>>, vector<16x64xf32>,
    %211 = vector.extract_strided_slice %169 {offsets = [12, 0, 0], sizes = [1, 16, 64], strides = [1, 1, 1]} : vector<16x16x64xf32> to vector<1x16x64xf32>
    %212 = vector.shape_cast %211 : vector<1x16x64xf32> to vector<16x64xf32>
    %c192 = arith.constant 192 : index
    %c0_104 = arith.constant 0 : index
    %213 = vector.load %arg21[%c192, %c0_104] : memref<256x64xf32, #tpu.memory_space<vmem>>, vector<16x64xf32>
    tpu.vector_store %arg21[%c192, %c0_104], %212 {strides = array<i32>} : memref<256x64xf32, #tpu.memory_space<vmem>>, vector<16x64xf32>,
    %214 = vector.extract_strided_slice %169 {offsets = [13, 0, 0], sizes = [1, 16, 64], strides = [1, 1, 1]} : vector<16x16x64xf32> to vector<1x16x64xf32>
    %215 = vector.shape_cast %214 : vector<1x16x64xf32> to vector<16x64xf32>
    %c208 = arith.constant 208 : index
    %c0_105 = arith.constant 0 : index
    %216 = vector.load %arg21[%c208, %c0_105] : memref<256x64xf32, #tpu.memory_space<vmem>>, vector<16x64xf32>
    tpu.vector_store %arg21[%c208, %c0_105], %215 {strides = array<i32>} : memref<256x64xf32, #tpu.memory_space<vmem>>, vector<16x64xf32>,
    %217 = vector.extract_strided_slice %169 {offsets = [14, 0, 0], sizes = [1, 16, 64], strides = [1, 1, 1]} : vector<16x16x64xf32> to vector<1x16x64xf32>
    %218 = vector.shape_cast %217 : vector<1x16x64xf32> to vector<16x64xf32>
    %c224 = arith.constant 224 : index
    %c0_106 = arith.constant 0 : index
    %219 = vector.load %arg21[%c224, %c0_106] : memref<256x64xf32, #tpu.memory_space<vmem>>, vector<16x64xf32>
    tpu.vector_store %arg21[%c224, %c0_106], %218 {strides = array<i32>} : memref<256x64xf32, #tpu.memory_space<vmem>>, vector<16x64xf32>,
    %220 = vector.extract_strided_slice %169 {offsets = [15, 0, 0], sizes = [1, 16, 64], strides = [1, 1, 1]} : vector<16x16x64xf32> to vector<1x16x64xf32>
    %221 = vector.shape_cast %220 : vector<1x16x64xf32> to vector<16x64xf32>
    %c240 = arith.constant 240 : index
    %c0_107 = arith.constant 0 : index
    %222 = vector.load %arg21[%c240, %c0_107] : memref<256x64xf32, #tpu.memory_space<vmem>>, vector<16x64xf32>
    tpu.vector_store %arg21[%c240, %c0_107], %221 {strides = array<i32>} : memref<256x64xf32, #tpu.memory_space<vmem>>, vector<16x64xf32>,
    %c0_108 = arith.constant 0 : index
    %c0_109 = arith.constant 0 : index
    %223 = vector.load %arg8[%c0_108, %c0_109] : memref<64x4xf32, #tpu.memory_space<vmem>>, vector<64x4xf32>
    %cst_110 = arith.constant dense<0.000000e+00> : vector<1x4xf32>
    %224 = tpu.matmul %174, %223, %cst_110 {dimension_numbers = #tpu.dot_dimension_numbers<[1], [0], [0], [1], [0, 0, 1, 1], [], []>} : vector<1x64xf32>, vector<64x4xf32>, vector<1x4xf32> -> vector<1x4xf32>
    %c0_111 = arith.constant 0 : index
    %c0_112 = arith.constant 0 : index
    %225 = vector.load %arg9[%c0_111, %c0_112] : memref<1x4xf32, #tpu.memory_space<vmem>>, vector<1x4xf32>
    %226 = arith.addf %224, %225 : vector<1x4xf32>
    %227 = arith.negf %226 : vector<1x4xf32>
    %228 = math.exp %227 : vector<1x4xf32>
    %cst_113 = arith.constant 1.000000e+00 : f32
    %229 = vector.broadcast %cst_113 : f32 to vector<1x4xf32>
    %230 = arith.addf %229, %228 : vector<1x4xf32>
    %231 = arith.divf %229, %230 : vector<1x4xf32>
    %232 = arith.mulf %226, %231 : vector<1x4xf32>
    %c0_114 = arith.constant 0 : index
    %c0_115 = arith.constant 0 : index
    %233 = vector.load %arg10[%c0_114, %c0_115] : memref<4x64xf32, #tpu.memory_space<vmem>>, vector<4x64xf32>
    %cst_116 = arith.constant dense<0.000000e+00> : vector<1x64xf32>
    %234 = tpu.matmul %232, %233, %cst_116 {dimension_numbers = #tpu.dot_dimension_numbers<[1], [0], [0], [1], [0, 0, 1, 1], [], []>} : vector<1x4xf32>, vector<4x64xf32>, vector<1x64xf32> -> vector<1x64xf32>
    %c0_117 = arith.constant 0 : index
    %c0_118 = arith.constant 0 : index
    %235 = vector.load %arg11[%c0_117, %c0_118] : memref<1x64xf32, #tpu.memory_space<vmem>>, vector<1x64xf32>
    %236 = arith.addf %234, %235 : vector<1x64xf32>
    %237 = arith.negf %236 : vector<1x64xf32>
    %238 = math.exp %237 : vector<1x64xf32>
    %cst_119 = arith.constant 1.000000e+00 : f32
    %239 = vector.broadcast %cst_119 : f32 to vector<1x64xf32>
    %240 = arith.addf %239, %238 : vector<1x64xf32>
    %241 = arith.divf %239, %240 : vector<1x64xf32>
    %c0_120 = arith.constant 0 : index
    %c0_121 = arith.constant 0 : index
    %242 = vector.load %arg21[%c0_120, %c0_121] : memref<256x64xf32, #tpu.memory_space<vmem>>, vector<256x64xf32>
    %243 = vector.broadcast %241 : vector<1x64xf32> to vector<256x64xf32>
    %244 = arith.mulf %242, %243 : vector<256x64xf32>
    %245 = arith.truncf %244 : vector<256x64xf32> to vector<256x64xbf16>
    %c0_122 = arith.constant 0 : index
    %c0_123 = arith.constant 0 : index
    %246 = vector.load %arg12[%c0_122, %c0_123] : memref<64x16xbf16, #tpu.memory_space<vmem>>, vector<64x16xbf16>
    %cst_124 = arith.constant dense<0.000000e+00> : vector<256x16xf32>
    %247 = tpu.matmul %245, %246, %cst_124 {dimension_numbers = #tpu.dot_dimension_numbers<[1], [0], [0], [1], [0, 0, 1, 1], [], []>} : vector<256x64xbf16>, vector<64x16xbf16>, vector<256x16xf32> -> vector<256x16xf32>
    %c0_125 = arith.constant 0 : index
    %c0_126 = arith.constant 0 : index
    %248 = vector.load %arg13[%c0_125, %c0_126] : memref<1x16xf32, #tpu.memory_space<vmem>>, vector<1x16xf32>
    %249 = vector.broadcast %248 : vector<1x16xf32> to vector<256x16xf32>
    %250 = arith.addf %247, %249 : vector<256x16xf32>
    %c0_127 = arith.constant 0 : index
    %c0_128 = arith.constant 0 : index
    %251 = vector.load %arg19[%c0_127, %c0_128] : memref<256x16xf32, #tpu.memory_space<vmem>>, vector<256x16xf32>
    %252 = arith.addf %250, %251 : vector<256x16xf32>
    %253 = arith.truncf %252 : vector<256x16xf32> to vector<256x16xbf16>
    %c0_129 = arith.constant 0 : index
    %c0_130 = arith.constant 0 : index
    %254 = vector.load %arg14[%c0_129, %c0_130] : memref<16x64xbf16, #tpu.memory_space<vmem>>, vector<16x64xbf16>
    %cst_131 = arith.constant dense<0.000000e+00> : vector<256x64xf32>
    %255 = tpu.matmul %253, %254, %cst_131 {dimension_numbers = #tpu.dot_dimension_numbers<[1], [0], [0], [1], [0, 0, 1, 1], [], []>} : vector<256x16xbf16>, vector<16x64xbf16>, vector<256x64xf32> -> vector<256x64xf32>
    %c0_132 = arith.constant 0 : index
    %c0_133 = arith.constant 0 : index
    %256 = vector.load %arg15[%c0_132, %c0_133] : memref<1x64xf32, #tpu.memory_space<vmem>>, vector<1x64xf32>
    %257 = vector.broadcast %256 : vector<1x64xf32> to vector<256x64xf32>
    %258 = arith.addf %255, %257 : vector<256x64xf32>
    %cst_134 = arith.constant 0.000000e+00 : f32
    %259 = vector.broadcast %cst_134 : f32 to vector<256x64xf32>
    %260 = arith.subf %259, %258 : vector<256x64xf32>
    %261 = math.exp %260 : vector<256x64xf32>
    %cst_135 = arith.constant 1.000000e+00 : f32
    %262 = vector.broadcast %cst_135 : f32 to vector<256x64xf32>
    %263 = arith.addf %262, %261 : vector<256x64xf32>
    %264 = tpu.reciprocal %263 {approx = true} : vector<256x64xf32> -> vector<256x64xf32>
    %265 = arith.mulf %258, %264 : vector<256x64xf32>
    %cst_136 = arith.constant dense<0.000000e+00> : vector<64xf32>
    %266 = vector.multi_reduction <add>, %265, %cst_136 [0] : vector<256x64xf32> to vector<64xf32>
    %267 = vector.shape_cast %266 : vector<64xf32> to vector<1x64xf32>
    %cst_137 = arith.constant 3.906250e-03 : f32
    %268 = vector.broadcast %cst_137 : f32 to vector<1x64xf32>
    %269 = arith.mulf %267, %268 : vector<1x64xf32>
    %c0_138 = arith.constant 0 : index
    %c0_139 = arith.constant 0 : index
    %270 = vector.load %arg16[%c0_138, %c0_139] : memref<64x10xf32, #tpu.memory_space<vmem>>, vector<64x10xf32>
    %cst_140 = arith.constant dense<0.000000e+00> : vector<1x10xf32>
    %271 = tpu.matmul %269, %270, %cst_140 {dimension_numbers = #tpu.dot_dimension_numbers<[1], [0], [0], [1], [0, 0, 1, 1], [], []>} : vector<1x64xf32>, vector<64x10xf32>, vector<1x10xf32> -> vector<1x10xf32>
    %c0_141 = arith.constant 0 : index
    %c0_142 = arith.constant 0 : index
    %272 = vector.load %arg17[%c0_141, %c0_142] : memref<1x10xf32, #tpu.memory_space<vmem>>, vector<1x10xf32>
    %273 = arith.addf %271, %272 : vector<1x10xf32>
    %c0_143 = arith.constant 0 : index
    %c0_144 = arith.constant 0 : index
    %c0_145 = arith.constant 0 : index
    %274 = vector.load %arg18[%c0_143, %c0_144, %c0_145] : memref<1x1x10xf32, #tpu.memory_space<vmem>>, vector<1x1x10xf32>
    %275 = vector.shape_cast %274 : vector<1x1x10xf32> to vector<1x10xf32>
    %276 = vector.shape_cast %273 : vector<1x10xf32> to vector<1x1x10xf32>
    tpu.vector_store %arg18[%c0_143, %c0_144, %c0_145], %276 {strides = array<i32>} : memref<1x1x10xf32, #tpu.memory_space<vmem>>, vector<1x1x10xf32>,
    return
  }
  func.func @transform_0(%arg0: i32) -> (i32, i32, i32) {
    %c0_i32 = arith.constant 0 : i32
    %c0_i32_0 = arith.constant 0 : i32
    %c0_i32_1 = arith.constant 0 : i32
    return %arg0, %c0_i32, %c0_i32_0 : i32, i32, i32
  }
  func.func @transform_1(%arg0: i32) -> (i32, i32) {
    %c0_i32 = arith.constant 0 : i32
    %c0_i32_0 = arith.constant 0 : i32
    %c0_i32_1 = arith.constant 0 : i32
    return %c0_i32, %c0_i32_0 : i32, i32
  }
  func.func @transform_2(%arg0: i32) -> (i32, i32) {
    %c0_i32 = arith.constant 0 : i32
    %c0_i32_0 = arith.constant 0 : i32
    %c0_i32_1 = arith.constant 0 : i32
    return %c0_i32, %c0_i32_0 : i32, i32
  }
  func.func @transform_3(%arg0: i32) -> (i32, i32) {
    %c0_i32 = arith.constant 0 : i32
    %c0_i32_0 = arith.constant 0 : i32
    %c0_i32_1 = arith.constant 0 : i32
    return %c0_i32, %c0_i32_0 : i32, i32
  }
  func.func @transform_4(%arg0: i32) -> (i32, i32) {
    %c0_i32 = arith.constant 0 : i32
    %c0_i32_0 = arith.constant 0 : i32
    %c0_i32_1 = arith.constant 0 : i32
    return %c0_i32, %c0_i32_0 : i32, i32
  }
  func.func @transform_5(%arg0: i32) -> (i32, i32, i32) {
    %c0_i32 = arith.constant 0 : i32
    %c0_i32_0 = arith.constant 0 : i32
    %c0_i32_1 = arith.constant 0 : i32
    %c0_i32_2 = arith.constant 0 : i32
    return %c0_i32, %c0_i32_0, %c0_i32_1 : i32, i32, i32
  }
  func.func @transform_6(%arg0: i32) -> (i32, i32) {
    %c0_i32 = arith.constant 0 : i32
    %c0_i32_0 = arith.constant 0 : i32
    %c0_i32_1 = arith.constant 0 : i32
    return %c0_i32, %c0_i32_0 : i32, i32
  }
  func.func @transform_7(%arg0: i32) -> (i32, i32) {
    %c0_i32 = arith.constant 0 : i32
    %c0_i32_0 = arith.constant 0 : i32
    %c0_i32_1 = arith.constant 0 : i32
    return %c0_i32, %c0_i32_0 : i32, i32
  }
  func.func @transform_8(%arg0: i32) -> (i32, i32) {
    %c0_i32 = arith.constant 0 : i32
    %c0_i32_0 = arith.constant 0 : i32
    %c0_i32_1 = arith.constant 0 : i32
    return %c0_i32, %c0_i32_0 : i32, i32
  }
  func.func @transform_9(%arg0: i32) -> (i32, i32) {
    %c0_i32 = arith.constant 0 : i32
    %c0_i32_0 = arith.constant 0 : i32
    %c0_i32_1 = arith.constant 0 : i32
    return %c0_i32, %c0_i32_0 : i32, i32
  }
  func.func @transform_10(%arg0: i32) -> (i32, i32) {
    %c0_i32 = arith.constant 0 : i32
    %c0_i32_0 = arith.constant 0 : i32
    %c0_i32_1 = arith.constant 0 : i32
    return %c0_i32, %c0_i32_0 : i32, i32
  }
  func.func @transform_11(%arg0: i32) -> (i32, i32) {
    %c0_i32 = arith.constant 0 : i32
    %c0_i32_0 = arith.constant 0 : i32
    %c0_i32_1 = arith.constant 0 : i32
    return %c0_i32, %c0_i32_0 : i32, i32
  }
  func.func @transform_12(%arg0: i32) -> (i32, i32) {
    %c0_i32 = arith.constant 0 : i32
    %c0_i32_0 = arith.constant 0 : i32
    %c0_i32_1 = arith.constant 0 : i32
    return %c0_i32, %c0_i32_0 : i32, i32
  }
  func.func @transform_13(%arg0: i32) -> (i32, i32) {
    %c0_i32 = arith.constant 0 : i32
    %c0_i32_0 = arith.constant 0 : i32
    %c0_i32_1 = arith.constant 0 : i32
    return %c0_i32, %c0_i32_0 : i32, i32
  }
  func.func @transform_14(%arg0: i32) -> (i32, i32) {
    %c0_i32 = arith.constant 0 : i32
    %c0_i32_0 = arith.constant 0 : i32
    %c0_i32_1 = arith.constant 0 : i32
    return %c0_i32, %c0_i32_0 : i32, i32
  }
  func.func @transform_15(%arg0: i32) -> (i32, i32) {
    %c0_i32 = arith.constant 0 : i32
    %c0_i32_0 = arith.constant 0 : i32
    %c0_i32_1 = arith.constant 0 : i32
    return %c0_i32, %c0_i32_0 : i32, i32
  }
  func.func @transform_16(%arg0: i32) -> (i32, i32) {
    %c0_i32 = arith.constant 0 : i32
    %c0_i32_0 = arith.constant 0 : i32
    %c0_i32_1 = arith.constant 0 : i32
    return %c0_i32, %c0_i32_0 : i32, i32
  }
  func.func @transform_17(%arg0: i32) -> (i32, i32, i32) {
    %c0_i32 = arith.constant 0 : i32
    %c0_i32_0 = arith.constant 0 : i32
    %c0_i32_1 = arith.constant 0 : i32
    return %arg0, %c0_i32, %c0_i32_0 : i32, i32, i32
  }
}

</mosaic_0001>

<bundles_post_ra>
// kernel: custom_efficientnet_forward.1
= control target key start
LH: loop header
LB: loop body
LE: loop exit
PB: predicated region body
PF: predicated region fallthrough
CT: control target
= control target key end

     0   :  { %s7287_s0 = inlined_call_operand.vmem [shape: bf16[2,256,27], index: 0, kind: input, shape index: {}]   ;;  %s7288_s1 = inlined_call_operand.vmem [shape: bf16[27,16], index: 1, kind: input, shape index: {}]   ;;  %s7289_s2 = inlined_call_operand.vmem [shape: f32[1,16], index: 2, kind: input, shape index: {}]   ;;  %s7290_s3 = inlined_call_operand.vmem [shape: bf16[16,64], index: 3, kind: input, shape index: {}]   ;;  %s7291_s4 = inlined_call_operand.vmem [shape: f32[1,64], index: 4, kind: input, shape index: {}]   ;;  %s7292_s5 = inlined_call_operand.vmem [shape: f32[3,3,64], index: 5, kind: input, shape index: {}]   ;;  %s7293_s6 = inlined_call_operand.vmem [shape: f32[1,64], index: 6, kind: input, shape index: {}]   ;;  %s7294_s7 = inlined_call_operand.vmem [shape: f32[64,4], index: 7, kind: input, shape index: {}]   ;;  %s7295_s8 = inlined_call_operand.vmem [shape: f32[1,4], index: 8, kind: input, shape index: {}]   ;;  %s7296_s9 = inlined_call_operand.vmem [shape: f32[4,64], index: 9, kind: input, shape index: {}]   ;;  %s7297_s10 = inlined_call_operand.vmem [shape: f32[1,64], index: 10, kind: input, shape index: {}]   ;;  %s7298_s11 = inlined_call_operand.vmem [shape: bf16[64,16], index: 11, kind: input, shape index: {}]   ;;  %s7299_s12 = inlined_call_operand.vmem [shape: f32[1,16], index: 12, kind: input, shape index: {}]   ;;  %s7300_s13 = inlined_call_operand.vmem [shape: bf16[16,64], index: 13, kind: input, shape index: {}]   ;;  %s7301_s14 = inlined_call_operand.vmem [shape: f32[1,64], index: 14, kind: input, shape index: {}]   ;;  %s7302_s15 = inlined_call_operand.vmem [shape: f32[64,10], index: 15, kind: input, shape index: {}]   ;;  %s7303_s16 = inlined_call_operand.vmem [shape: f32[1,10], index: 16, kind: input, shape index: {}]   ;;  %s7304_s17 = inlined_call_operand.hbm [shape: f32[2,1,10], index: 17, kind: output, shape index: {}]  }
   0x1   :  { %7321 = sst [smem:[#allocation32_spill]] %s7287_s0 }
   0x2   :  { %7322 = sst [smem:[#allocation33_spill]] %s7288_s1 }
   0x3   :  { %7323 = sst [smem:[#allocation34_spill]] %s7289_s2 }
   0x4   :  { %7324 = sst [smem:[#allocation35_spill]] %s7290_s3 }
   0x5   :  { %7325 = sst [smem:[#allocation36_spill]] %s7291_s4 }
   0x6   :  { %22 = vsyncpa [#allocation6], 0 }
   0x7   :  { %24 = vsyncpa [#allocation6 + $0x1], 0  ;;  %s5280_s24 = smov 0   ;;  %s5282_s25 = smov 0  }
   0x8   :  { %s5284_s26 = smov 0   ;;  %s5286_s27 = smov 0  }
   0x9 LB: > { %7326 = sst [smem:[#allocation8_spill]] %s5179_s26  ;;  %s5301_s28 = sadd.s32 4294967295, %s5183_s27   ;;  %s5183_s27 = sphi %s5286_s27, %s7381_s27   ;;  %s5179_s26 = sphi %s5284_s26, %s7383_s26   ;;  %s5175_s25 = sphi %s5282_s25, %s7385_s25   ;;  %s5171_s24 = sphi %s5280_s24, %s7384_s24  }
   0xa   : > { %s4120_s29 = sadd.s32 4294967294, %s5183_s27   ;;  %s5305_s0 = sadd.s32 1, %s5183_s27  }
   0xb   : > { %7327 = sst [smem:[#allocation9_spill]] %s5305_s0  ;;  %s399_s30 = sadd.s32 1, %s5179_s26 }
   0xc   : > { %s396_s18 = ssub.s32 %s5183_s27, %s5305_s0  ;;  %p409_p0 = scmp.ne.s32.totalorder %s5179_s26, %s5175_s25 }
   0xd   : > { %p397_p1 = scmp.eq.s32.totalorder %s396_s18, 0  ;;  %p410_p2 = scmp.eq.s32.totalorder %s5301_s28, 1 }
   0xe   : > { %p415_p3 = scmp.ne.s32.totalorder %s5175_s25, %s5171_s24  ;;  %p416_p4 = scmp.eq.s32.totalorder %s4120_s29, 1 }
   0xf   : > { %s5316_s19 = scalar_select %p397_p1, %s5179_s26, %s399_s30  }
  0x10   : > { %p5318_p5 = por %p410_p2, %p409_p0  ;;  %p5322_p6 = por %p416_p4, %p415_p3 }
  0x11   : > { %7328 = sst [smem:[#allocation10_spill]] %s5316_s19  ;;  %p4123_p7 = scmp.ge.s32.totalorder %s5183_s27, 1 }
  0x12   : > { %p490_p8 = scmp.lt.s32.totalorder %s5183_s27, 3 }
  0x14   : > { %p491_p9 = pnand %p4123_p7, %p490_p8 }
  0x16   : > { %494 = sbr.rel (%p491_p9) target bundleno = 2104 (0x838), region = 88 }
  0x1d   : > { %s7331_s23 = sld [smem:[#allocation33_spill]]  ;;  %vm730_vm0 = vcmask 1044480   ;;  %vm731_vm1 = vcmask 1045504   ;;  %p541_p10 = scmp.lt.s32.totalorder %s5301_s28, 1  ;;  %v5185_v2 = vmov 65535   ;;  %vm681_vm2 = vcmask 220160  }
  0x1e   : > { %v732_v3 = vsel %vm730_vm0, 4294967295, %v5185_v2  ;;  %s7332_s26 = sld [smem:[#allocation32_spill]]  ;;  %s7333_s3 = sld [smem:[#allocation35_spill]]  ;;  %vm1090_vm3 = vcmask 130048   ;;  %vm1555_vm4 = vcmask 523264   ;;  %vm1558_vm5 = vcmask 517120  }
  0x1f   : > { %v733_v4 = vsel %vm731_vm1, %v732_v3, 0  ;;  %s542_s18 = scalar_select %p541_p10, %s5301_s28, 1  ;;  %vm5188_vm6 = vmmov 0   ;;  %vm2990_vm7 = vcmask 1043456   ;;  %vm2986_vm8 = vcmask 31744  }
  0x20   : > { %s7334_s2 = sld [smem:[#allocation34_spill]]  ;;  %s7335_s4 = sld [smem:[#allocation36_spill]]  ;;  %vm4050_vm9 = vcmask 73728  }
  0x21   : > { %s4228_s19 = sshll.u32 %s542_s18, 7  ;;  %s539_s21 = sand.u32 1, %s5175_s25  }
  0x22   : > { %s540_s29 = scalar_lea.vmem [#allocation5], %s539_s21  ;;  %s4053_s22 = scalar_lea.sflag [#allocation6], %s539_s21 }
  0x23   : > { %v4575_v0 = vld [vmem:[%s7331_s23] sm:$0xff]   ;;  %v4576_v1 = vld [vmem:[%s7331_s23 + $0x8] sm:$0x3f]   ;;  %s4065_s30 = sshll.u32 %s540_s29, 4  ;;  %s7247_s30 = int_to_ptr.vmem [resolvable:$true] %s4065_s30 }
  0x24   : > { %4321 = vmatprep.subr.bf16.mxu0 %v4575_v0  ;;  %v735_v5 = vand.u32 %v4576_v1, %v733_v4  ;;  %s5339_s0 = scalar_lea.vmem %s7332_s26, %s4228_s19  ;;  %v4593_v22 = vld [vmem:[%s7333_s3] sm:$0xff]   ;;  %s4225_s19 = sshll.u32 %s5301_s28, 4 }
  0x25   : > { %4322 = vmatpush3.bf16.msra.mxu0 %v4575_v0  ;;  %v4577_v6 = vld [vmem:[%s5339_s0] sm:$0xff]   ;;  %v4578_v7 = vld [vmem:[%s5339_s0 + $0x8] sm:$0xff]   ;;  %v4579_v8 = vld [vmem:[%s5339_s0 + $0x10] sm:$0xff]   ;;  %4357 = vmatprep.subr.bf16.mxu1 %v4593_v22  ;;  %s5121_s26 = scalar_lea.vmem %s7247_s30, 16  ;;  %s5189_s28 = smov [#allocation5]  }
  0x26   : > { %4323 = vmatprep.subr.bf16.mxu0 %v735_v5  ;;  %4325 = vmatprep.mubr.msk.bf16.mxu0 %vm681_vm2, %v4577_v6  ;;  %v4580_v9 = vld [vmem:[%s5339_s0 + $0x18] sm:$0xff]   ;;  %v4581_v10 = vld [vmem:[%s5339_s0 + $0x20] sm:$0xff]   ;;  %v4582_v11 = vld [vmem:[%s5339_s0 + $0x28] sm:$0xff]   ;;  %p5122_p11 = scmp.ne.s32.totalorder %s7247_s30, %s5121_s26  ;;  %s5125_s3 = sshll.u32 %s5189_s28, 4  ;;  %s5126_s3 = int_to_ptr.vmem [resolvable:$false] %s5125_s3 }
  0x27   : > { %v4583_v12 = vld [vmem:[%s5339_s0 + $0x30] sm:$0xff]   ;;  %v4584_v13 = vld [vmem:[%s5339_s0 + $0x38] sm:$0xff]   ;;  %v4585_v14 = vld [vmem:[%s5339_s0 + $0x40] sm:$0xff]   ;;  %4358 = vmatpush3.bf16.msra.mxu1 %v4593_v22  ;;  %p5128_p0 = scmp.lt.s32.totalorder %s7247_s30, %s5126_s3 }
  0x28   : > { %v4586_v15 = vld [vmem:[%s5339_s0 + $0x48] sm:$0xff]   ;;  %v4587_v16 = vld [vmem:[%s5339_s0 + $0x50] sm:$0xff]   ;;  %v4588_v17 = vld [vmem:[%s5339_s0 + $0x58] sm:$0xff]   ;;  %p5123_p12 = pnand %p5122_p11, %p5318_p5 }
  0x29   : > { %4324 = vmatpush3.bf16.msra.mxu0 %v735_v5  ;;  %v4589_v18 = vld [vmem:[%s5339_s0 + $0x60] sm:$0xff]   ;;  %v4590_v19 = vld [vmem:[%s5339_s0 + $0x68] sm:$0xff]   ;;  %v4591_v20 = vld [vmem:[%s5339_s0 + $0x70] sm:$0xff]  }
  0x2a   : > { %v4592_v21 = vld [vmem:[%s5339_s0 + $0x78] sm:$0xff]   ;;  %v5379_v23 = vld [vmem:[%s7334_s2] ss:$0 sm:$0xff]  ;;  %s7245_s2 = scalar_lea.hbm %s7304_s17, %s4225_s19  ;;  %p5124_p13 = pneg %p5123_p12 }
  0x2c   : > { %4326 = vmatmul.mubr.msk.bf16.vlgmr.msra.gmra.mrb[0].mxu0 %vm681_vm2, %v4578_v7 }
  0x2d   : > { %4329 = vmatprep.mubr.msk.bf16.mxu0 %vm681_vm2, %v4579_v8 }
  0x34   : > { %4330 = vmatmul.mubr.msk.bf16.gmra.mrb[4].mxu0 %vm681_vm2, %v4580_v9 }
  0x35   : > { %4333 = vmatprep.mubr.msk.bf16.mxu0 %vm681_vm2, %v4581_v10 }
  0x3c   : > { %4334 = vmatmul.mubr.msk.bf16.gmra.mrb[8].mxu0 %vm681_vm2, %v4582_v11 }
  0x3d   : > { %4337 = vmatprep.mubr.msk.bf16.mxu0 %vm681_vm2, %v4583_v12 }
  0x44   : > { %4338 = vmatmul.mubr.msk.bf16.gmra.mrb[12].mxu0 %vm681_vm2, %v4584_v13 }
  0x45   : > { %4341 = vmatprep.mubr.msk.bf16.mxu0 %vm681_vm2, %v4585_v14 }
  0x4c   : > { %4342 = vmatmul.mubr.msk.bf16.gmra.mrb[16].mxu0 %vm681_vm2, %v4586_v15 }
  0x4d   : > { %4345 = vmatprep.mubr.msk.bf16.mxu0 %vm681_vm2, %v4587_v16 }
  0x54   : > { %4346 = vmatmul.mubr.msk.bf16.gmra.mrb[20].mxu0 %vm681_vm2, %v4588_v17 }
  0x55   : > { %4349 = vmatprep.mubr.msk.bf16.mxu0 %vm681_vm2, %v4589_v18 }
  0x5c   : > { %4350 = vmatmul.mubr.msk.bf16.gmra.mrb[24].mxu0 %vm681_vm2, %v4590_v19 }
  0x5d   : > { %4353 = vmatprep.mubr.msk.bf16.mxu0 %vm681_vm2, %v4591_v20 }
  0x64   : > { %4354 = vmatmul.mubr.msk.bf16.gmra.mrb[28].mxu0 %vm681_vm2, %v4592_v21 }
  0xff   : > { %v4327_v24 = vpop.f32.mrb[0].mxu0 }
 0x100   : > { %v5382_v25 = vadd.f32 %v4327_v24, %v5379_v23  ;;  %v771_v26 = vpop.f32.mrb[1].mxu0 }
 0x101   : > { %v5385_v27 = vadd.f32 %v5379_v23, %v771_v26  ;;  %v4328_v28 = vpop.f32.mrb[2].mxu0 }
 0x102   : > { %v900_v29 = vsub.f32 0.0, %v5382_v25  ;;  %v5389_v30 = vadd.f32 %v4328_v28, %v5379_v23  ;;  %v774_v31 = vpop.f32.mrb[3].mxu0 }
 0x103   : > { %v898_v32 = vsub.f32 0.0, %v5385_v27  ;;  %v5393_v33 = vadd.f32 %v5379_v23, %v774_v31 }
 0x104   : > { %v934_v34 = vmul.f32 1.442695, %v900_v29  ;;  %v901_v35 = vsub.f32 0.0, %v5389_v30 }
 0x105   : > { %v930_v36 = vmul.f32 1.442695, %v898_v32  ;;  %v899_v37 = vsub.f32 0.0, %v5393_v33 }
 0x106   : > { %4599 = vpow2.f32 %v934_v34  ;;  %v936_v38 = vmul.f32 1.442695, %v901_v35 }
 0x107   : > { %4601 = vpow2.f32 %v930_v36  ;;  %v932_v39 = vmul.f32 1.442695, %v899_v37  ;;  %v4331_v40 = vpop.f32.mrb[4].mxu0 }
 0x108   : > { %4603 = vpow2.f32 %v936_v38  ;;  %v5398_v41 = vadd.f32 %v4331_v40, %v5379_v23  ;;  %v787_v42 = vpop.f32.mrb[5].mxu0 }
 0x109   : > { %4605 = vpow2.f32 %v932_v39  ;;  %v5401_v43 = vadd.f32 %v5379_v23, %v787_v42  ;;  %v4332_v44 = vpop.f32.mrb[6].mxu0 }
 0x10a   : > { %v904_v45 = vsub.f32 0.0, %v5398_v41  ;;  %v5405_v46 = vadd.f32 %v4332_v44, %v5379_v23  ;;  %v790_v47 = vpop.f32.mrb[7].mxu0 }
 0x10b   : > { %v902_v48 = vsub.f32 0.0, %v5401_v43  ;;  %v5409_v49 = vadd.f32 %v5379_v23, %v790_v47 }
 0x10c   : > { %v942_v50 = vmul.f32 1.442695, %v904_v45  ;;  %v905_v51 = vsub.f32 0.0, %v5405_v46 }
 0x10d   : > { %v938_v52 = vmul.f32 1.442695, %v902_v48  ;;  %v903_v53 = vsub.f32 0.0, %v5409_v49 }
 0x10e   : > { %4607 = vpow2.f32 %v942_v50  ;;  %v944_v54 = vmul.f32 1.442695, %v905_v51 }
 0x10f   : > { %4609 = vpow2.f32 %v938_v52  ;;  %v940_v55 = vmul.f32 1.442695, %v903_v53  ;;  %v4335_v56 = vpop.f32.mrb[8].mxu0 }
 0x110   : > { %v4600_v57 = vpop.eup %4599  ;;  %4611 = vpow2.f32 %v944_v54  ;;  %v5414_v58 = vadd.f32 %v4335_v56, %v5379_v23  ;;  %v803_v59 = vpop.f32.mrb[9].mxu0 }
 0x111   : > { %v4602_v60 = vpop.eup %4601  ;;  %v996_v61 = vadd.f32 1.0, %v4600_v57  ;;  %4613 = vpow2.f32 %v940_v55  ;;  %v5417_v62 = vadd.f32 %v5379_v23, %v803_v59  ;;  %v4336_v63 = vpop.f32.mrb[10].mxu0 }
 0x112   : > { %v4604_v0 = vpop.eup %4603  ;;  %v994_v1 = vadd.f32 1.0, %v4602_v60  ;;  %v908_v2 = vsub.f32 0.0, %v5414_v58  ;;  %v5421_v3 = vadd.f32 %v4336_v63, %v5379_v23  ;;  %v806_v4 = vpop.f32.mrb[11].mxu0 }
 0x113   : > { %v4606_v5 = vpop.eup %4605  ;;  %4615 = vrcp.f32 %v996_v61  ;;  %v997_v6 = vadd.f32 1.0, %v4604_v0  ;;  %v906_v7 = vsub.f32 0.0, %v5417_v62  ;;  %v5425_v8 = vadd.f32 %v5379_v23, %v806_v4 }
 0x114   : > { %4617 = vrcp.f32 %v994_v1  ;;  %v995_v9 = vadd.f32 1.0, %v4606_v5  ;;  %v950_v10 = vmul.f32 1.442695, %v908_v2  ;;  %v909_v11 = vsub.f32 0.0, %v5421_v3 }
 0x115   : > { %4619 = vrcp.f32 %v997_v6  ;;  %v946_v12 = vmul.f32 1.442695, %v906_v7  ;;  %v907_v13 = vsub.f32 0.0, %v5425_v8 }
 0x116   : > { %4621 = vrcp.f32 %v995_v9  ;;  %v952_v14 = vmul.f32 1.442695, %v909_v11 }
 0x117   : > { %4623 = vpow2.f32 %v950_v10  ;;  %v948_v15 = vmul.f32 1.442695, %v907_v13  ;;  %v4339_v16 = vpop.f32.mrb[12].mxu0 }
 0x118   : > { %v4608_v17 = vpop.eup %4607  ;;  %4625 = vpow2.f32 %v946_v12  ;;  %v5430_v18 = vadd.f32 %v4339_v16, %v5379_v23  ;;  %v819_v19 = vpop.f32.mrb[13].mxu0 }
 0x119   : > { %v4610_v20 = vpop.eup %4609  ;;  %v1000_v21 = vadd.f32 1.0, %v4608_v17  ;;  %4627 = vpow2.f32 %v952_v14  ;;  %v5433_v22 = vadd.f32 %v5379_v23, %v819_v19  ;;  %v4340_v24 = vpop.f32.mrb[14].mxu0 }
 0x11a   : > { %v4612_v26 = vpop.eup %4611  ;;  %v998_v28 = vadd.f32 1.0, %v4610_v20  ;;  %4629 = vpow2.f32 %v948_v15  ;;  %v912_v29 = vsub.f32 0.0, %v5430_v18  ;;  %v5437_v31 = vadd.f32 %v4340_v24, %v5379_v23  ;;  %v822_v32 = vpop.f32.mrb[15].mxu0 }
 0x11b   : > { %v4614_v34 = vpop.eup %4613  ;;  %4631 = vrcp.f32 %v1000_v21  ;;  %v1001_v35 = vadd.f32 1.0, %v4612_v26  ;;  %v910_v36 = vsub.f32 0.0, %v5433_v22  ;;  %v5441_v37 = vadd.f32 %v5379_v23, %v822_v32 }
 0x11c   : > { %4633 = vrcp.f32 %v998_v28  ;;  %v999_v38 = vadd.f32 1.0, %v4614_v34  ;;  %v958_v39 = vmul.f32 1.442695, %v912_v29  ;;  %v913_v40 = vsub.f32 0.0, %v5437_v31 }
 0x11d   : > { %v4616_v42 = vpop.eup %4615  ;;  %4635 = vrcp.f32 %v1001_v35  ;;  %v954_v44 = vmul.f32 1.442695, %v910_v36  ;;  %v911_v45 = vsub.f32 0.0, %v5441_v37 }
 0x11e   : > { %v4618_v47 = vpop.eup %4617  ;;  %v1060_v48 = vmul.f32 %v4616_v42, %v5382_v25  ;;  %4637 = vrcp.f32 %v999_v38  ;;  %v960_v50 = vmul.f32 1.442695, %v913_v40 }
 0x11f   : > { %v4620_v51 = vpop.eup %4619  ;;  %v1058_v52 = vmul.f32 %v4618_v47, %v5385_v27  ;;  %4639 = vpow2.f32 %v958_v39  ;;  %v956_v53 = vmul.f32 1.442695, %v911_v45  ;;  %v4343_v54 = vpop.f32.mrb[16].mxu0 }
 0x120   : > { %v4622_v55 = vpop.eup %4621  ;;  %1093 = vst.msk [vmem:[#allocation2 + $0x10] sm:$0xff] %vm1090_vm3, %v1060_v48  ;;  %v1061_v56 = vmul.f32 %v4620_v51, %v5389_v30  ;;  %4641 = vpow2.f32 %v954_v44  ;;  %v5450_v57 = vadd.f32 %v4343_v54, %v5379_v23  ;;  %v835_v59 = vpop.f32.mrb[17].mxu0 }
 0x121   : > { %v4624_v60 = vpop.eup %4623  ;;  %1091 = vst.msk [vmem:[#allocation2] sm:$0xff] %vm1090_vm3, %v1058_v52  ;;  %v1059_v25 = vmul.f32 %v4622_v55, %v5393_v33  ;;  %4643 = vpow2.f32 %v960_v50  ;;  %v5455_v27 = vadd.f32 %v5379_v23, %v835_v59  ;;  %v4344_v61 = vpop.f32.mrb[18].mxu0 }
 0x122   : > { %v4626_v63 = vpop.eup %4625  ;;  %1094 = vst.msk [vmem:[#allocation2 + $0x18] sm:$0xff] %vm1090_vm3, %v1061_v56  ;;  %v1124_v0 = vpack.c.bf16 %v1061_v56, %v1060_v48  ;;  %v1004_v30 = vadd.f32 1.0, %v4624_v60  ;;  %4645 = vpow2.f32 %v956_v53  ;;  %v916_v1 = vsub.f32 0.0, %v5450_v57  ;;  %v838_v2 = vpop.f32.mrb[19].mxu0 }
 0x123   : > { %v4628_v4 = vpop.eup %4627  ;;  %1092 = vst.msk [vmem:[#allocation2 + $0x8] sm:$0xff] %vm1090_vm3, %v1059_v25  ;;  %v1002_v5 = vadd.f32 1.0, %v4626_v63  ;;  %v914_v33 = vsub.f32 0.0, %v5455_v27  ;;  %v5462_v6 = vadd.f32 %v4344_v61, %v5379_v23  ;;  %v5465_v7 = vadd.f32 %v5379_v23, %v838_v2 }
 0x124   : > { %v4630_v9 = vpop.eup %4629  ;;  %4647 = vrcp.f32 %v1004_v30  ;;  %v1005_v10 = vadd.f32 1.0, %v4628_v4  ;;  %v966_v11 = vmul.f32 1.442695, %v916_v1  ;;  %v1123_v12 = vpack.c.bf16 %v1059_v25, %v1058_v52 }
 0x125   : > { %v4632_v13 = vpop.eup %4631  ;;  %4649 = vrcp.f32 %v1002_v5  ;;  %v1003_v14 = vadd.f32 1.0, %v4630_v9  ;;  %v962_v15 = vmul.f32 1.442695, %v914_v33  ;;  %v917_v16 = vsub.f32 0.0, %v5462_v6 }
 0x126   : > { %v4634_v17 = vpop.eup %4633  ;;  %v1064_v19 = vmul.f32 %v4632_v13, %v5398_v41  ;;  %4651 = vrcp.f32 %v1005_v10  ;;  %v915_v20 = vsub.f32 0.0, %v5465_v7  ;;  %4359 = vmatprep.mubr.msk.bf16.mxu1 %vm1090_vm3, %v1123_v12 }
 0x127   : > { %v4636_v21 = vpop.eup %4635  ;;  %v1062_v24 = vmul.f32 %v4634_v17, %v5401_v43  ;;  %4653 = vrcp.f32 %v1003_v14  ;;  %v968_v26 = vmul.f32 1.442695, %v917_v16  ;;  %4360 = vmatmul.mubr.msk.bf16.vlgmr.msra.gmra.mrb[0].mxu1 %vm1090_vm3, %v1124_v0  ;;  %v4347_v28 = vpop.f32.mrb[20].mxu0 }
 0x128   : > { %v4638_v29 = vpop.eup %4637  ;;  %1097 = vst.msk [vmem:[#allocation2 + $0x30] sm:$0xff] %vm1090_vm3, %v1064_v19  ;;  %v1065_v32 = vmul.f32 %v4636_v21, %v5405_v46  ;;  %4655 = vpow2.f32 %v966_v11  ;;  %v964_v41 = vmul.f32 1.442695, %v915_v20  ;;  %v5476_v34 = vadd.f32 %v4347_v28, %v5379_v23  ;;  %v851_v35 = vpop.f32.mrb[21].mxu0 }
 0x129   : > { %v4640_v36 = vpop.eup %4639  ;;  %1095 = vst.msk [vmem:[#allocation2 + $0x20] sm:$0xff] %vm1090_vm3, %v1062_v24  ;;  %v1063_v43 = vmul.f32 %v4638_v29, %v5409_v49  ;;  %4657 = vpow2.f32 %v962_v15  ;;  %v5481_v38 = vadd.f32 %v5379_v23, %v851_v35  ;;  %v4348_v39 = vpop.f32.mrb[22].mxu0 }
 0x12a   : > { %v4642_v40 = vpop.eup %4641  ;;  %1098 = vst.msk [vmem:[#allocation2 + $0x38] sm:$0xff] %vm1090_vm3, %v1065_v32  ;;  %v1126_v46 = vpack.c.bf16 %v1065_v32, %v1064_v19  ;;  %v1008_v42 = vadd.f32 1.0, %v4640_v36  ;;  %4659 = vpow2.f32 %v968_v26  ;;  %v920_v44 = vsub.f32 0.0, %v5476_v34  ;;  %v854_v45 = vpop.f32.mrb[23].mxu0 }
 0x12b   : > { %v4644_v47 = vpop.eup %4643  ;;  %1096 = vst.msk [vmem:[#allocation2 + $0x28] sm:$0xff] %vm1090_vm3, %v1063_v43  ;;  %v1125_v48 = vpack.c.bf16 %v1063_v43, %v1062_v24  ;;  %v1006_v50 = vadd.f32 1.0, %v4642_v40  ;;  %4661 = vpow2.f32 %v964_v41  ;;  %v918_v49 = vsub.f32 0.0, %v5481_v38 }
 0x12c   : > { %v4646_v51 = vpop.eup %4645  ;;  %4663 = vrcp.f32 %v1008_v42  ;;  %v1009_v52 = vadd.f32 1.0, %v4644_v47  ;;  %v974_v53 = vmul.f32 1.442695, %v920_v44  ;;  %v5488_v54 = vadd.f32 %v4348_v39, %v5379_v23 }
 0x12d   : > { %4665 = vrcp.f32 %v1006_v50  ;;  %v1007_v55 = vadd.f32 1.0, %v4646_v51  ;;  %v970_v56 = vmul.f32 1.442695, %v918_v49  ;;  %v5491_v59 = vadd.f32 %v5379_v23, %v854_v45  ;;  %4363 = vmatprep.mubr.msk.bf16.mxu1 %vm1090_vm3, %v1125_v48 }
 0x12e   : > { %v4648_v60 = vpop.eup %4647  ;;  %4667 = vrcp.f32 %v1009_v52  ;;  %v921_v25 = vsub.f32 0.0, %v5488_v54 }
 0x12f   : > { %v4650_v61 = vpop.eup %4649  ;;  %v1068_v63 = vmul.f32 %v4648_v60, %v5414_v58  ;;  %4669 = vrcp.f32 %v1007_v55  ;;  %v919_v0 = vsub.f32 0.0, %v5491_v59  ;;  %4364 = vmatmul.mubr.msk.bf16.gmra.mrb[4].mxu1 %vm1090_vm3, %v1126_v46  ;;  %v4351_v30 = vpop.f32.mrb[24].mxu0 }
 0x130   : > { %v4652_v1 = vpop.eup %4651  ;;  %v1066_v2 = vmul.f32 %v4650_v61, %v5417_v62  ;;  %4671 = vpow2.f32 %v974_v53  ;;  %v976_v4 = vmul.f32 1.442695, %v921_v25  ;;  %v5500_v5 = vadd.f32 %v4351_v30, %v5379_v23  ;;  %v867_v33 = vpop.f32.mrb[25].mxu0 }
 0x131   : > { %v4654_v9 = vpop.eup %4653  ;;  %1101 = vst.msk [vmem:[#allocation2 + $0x50] sm:$0xff] %vm1090_vm3, %v1068_v63  ;;  %v1069_v58 = vmul.f32 %v4652_v1, %v5421_v3  ;;  %4673 = vpow2.f32 %v970_v56  ;;  %v972_v10 = vmul.f32 1.442695, %v919_v0  ;;  %v5505_v11 = vadd.f32 %v5379_v23, %v867_v33  ;;  %v4352_v12 = vpop.f32.mrb[26].mxu0 }
 0x132   : > { %v4656_v13 = vpop.eup %4655  ;;  %1099 = vst.msk [vmem:[#allocation2 + $0x40] sm:$0xff] %vm1090_vm3, %v1066_v2  ;;  %v1067_v62 = vmul.f32 %v4654_v9, %v5425_v8  ;;  %4675 = vpow2.f32 %v976_v4  ;;  %v924_v14 = vsub.f32 0.0, %v5500_v5  ;;  %v5511_v15 = vadd.f32 %v4352_v12, %v5379_v23  ;;  %v870_v16 = vpop.f32.mrb[27].mxu0 }
 0x133   : > { %v4658_v17 = vpop.eup %4657  ;;  %1102 = vst.msk [vmem:[#allocation2 + $0x58] sm:$0xff] %vm1090_vm3, %v1069_v58  ;;  %v1128_v3 = vpack.c.bf16 %v1069_v58, %v1068_v63  ;;  %v1012_v19 = vadd.f32 1.0, %v4656_v13  ;;  %4677 = vpow2.f32 %v972_v10  ;;  %v922_v20 = vsub.f32 0.0, %v5505_v11 }
 0x134   : > { %v4660_v21 = vpop.eup %4659  ;;  %1100 = vst.msk [vmem:[#allocation2 + $0x48] sm:$0xff] %vm1090_vm3, %v1067_v62  ;;  %v1127_v24 = vpack.c.bf16 %v1067_v62, %v1066_v2  ;;  %v1010_v8 = vadd.f32 1.0, %v4658_v17  ;;  %v925_v26 = vsub.f32 0.0, %v5511_v15  ;;  %v982_v32 = vmul.f32 1.442695, %v924_v14 }
 0x135   : > { %v4662_v28 = vpop.eup %4661  ;;  %4679 = vrcp.f32 %v1012_v19  ;;  %v1013_v29 = vadd.f32 1.0, %v4660_v21  ;;  %v5518_v41 = vadd.f32 %v5379_v23, %v870_v16  ;;  %v978_v43 = vmul.f32 1.442695, %v922_v20 }
 0x136   : > { %v4664_v35 = vpop.eup %4663  ;;  %4681 = vrcp.f32 %v1010_v8  ;;  %v1011_v36 = vadd.f32 1.0, %v4662_v28  ;;  %4367 = vmatprep.mubr.msk.bf16.mxu1 %vm1090_vm3, %v1127_v24  ;;  %v984_v46 = vmul.f32 1.442695, %v925_v26 }
 0x137   : > { %v4666_v39 = vpop.eup %4665  ;;  %v1072_v40 = vmul.f32 %v4664_v35, %v5430_v18  ;;  %4683 = vrcp.f32 %v1013_v29  ;;  %v923_v42 = vsub.f32 0.0, %v5518_v41  ;;  %4368 = vmatmul.mubr.msk.bf16.gmra.mrb[8].mxu1 %vm1090_vm3, %v1128_v3  ;;  %v4355_v44 = vpop.f32.mrb[28].mxu0 }
 0x138   : > { %v4668_v45 = vpop.eup %4667  ;;  %v1070_v47 = vmul.f32 %v4666_v39, %v5433_v22  ;;  %4685 = vrcp.f32 %v1011_v36  ;;  %v5526_v48 = vadd.f32 %v4355_v44, %v5379_v23  ;;  %v883_v50 = vpop.f32.mrb[29].mxu0 }
 0x139   : > { %v4670_v49 = vpop.eup %4669  ;;  %1105 = vst.msk [vmem:[#allocation2 + $0x70] sm:$0xff] %vm1090_vm3, %v1072_v40  ;;  %v1073_v18 = vmul.f32 %v4668_v45, %v5437_v31  ;;  %4687 = vpow2.f32 %v982_v32  ;;  %v980_v51 = vmul.f32 1.442695, %v923_v42  ;;  %v5531_v52 = vadd.f32 %v5379_v23, %v883_v50  ;;  %v4356_v53 = vpop.f32.mrb[30].mxu0 }
 0x13a   : > { %v4672_v55 = vpop.eup %4671  ;;  %1103 = vst.msk [vmem:[#allocation2 + $0x60] sm:$0xff] %vm1090_vm3, %v1070_v47  ;;  %v1071_v22 = vmul.f32 %v4670_v49, %v5441_v37  ;;  %4689 = vpow2.f32 %v978_v43  ;;  %v928_v56 = vsub.f32 0.0, %v5526_v48  ;;  %v5537_v60 = vadd.f32 %v4356_v53, %v5379_v23  ;;  %v886_v25 = vpop.f32.mrb[31].mxu0 }
 0x13b   : > { %v4674_v61 = vpop.eup %4673  ;;  %1106 = vst.msk [vmem:[#allocation2 + $0x78] sm:$0xff] %vm1090_vm3, %v1073_v18  ;;  %v1130_v31 = vpack.c.bf16 %v1073_v18, %v1072_v40  ;;  %v1016_v63 = vadd.f32 1.0, %v4672_v55  ;;  %4691 = vpow2.f32 %v984_v46  ;;  %v926_v0 = vsub.f32 0.0, %v5531_v52 }
 0x13c   : > { %v4676_v30 = vpop.eup %4675  ;;  %1104 = vst.msk [vmem:[#allocation2 + $0x68] sm:$0xff] %vm1090_vm3, %v1071_v22  ;;  %v1129_v1 = vpack.c.bf16 %v1071_v22, %v1070_v47  ;;  %v1014_v37 = vadd.f32 1.0, %v4674_v61  ;;  %4693 = vpow2.f32 %v980_v51  ;;  %v990_v33 = vmul.f32 1.442695, %v928_v56 }
 0x13d   : > { %v4678_v2 = vpop.eup %4677  ;;  %4695 = vrcp.f32 %v1016_v63  ;;  %v1017_v4 = vadd.f32 1.0, %v4676_v30  ;;  %v929_v9 = vsub.f32 0.0, %v5537_v60  ;;  %v986_v10 = vmul.f32 1.442695, %v926_v0 }
 0x13e   : > { %4697 = vrcp.f32 %v1014_v37  ;;  %v1015_v58 = vadd.f32 1.0, %v4678_v2  ;;  %v5544_v12 = vadd.f32 %v5379_v23, %v886_v25  ;;  %4371 = vmatprep.mubr.msk.bf16.mxu1 %vm1090_vm3, %v1129_v1 }
 0x13f   : > { %v4680_v13 = vpop.eup %4679  ;;  %4699 = vrcp.f32 %v1017_v4  ;;  %v992_v62 = vmul.f32 1.442695, %v929_v9  ;;  %4372 = vmatmul.mubr.msk.bf16.gmra.mrb[12].mxu1 %vm1090_vm3, %v1130_v31 }
 0x140   : > { %v4682_v14 = vpop.eup %4681  ;;  %v1076_v16 = vmul.f32 %v4680_v13, %v5450_v57  ;;  %4701 = vrcp.f32 %v1015_v58  ;;  %v927_v17 = vsub.f32 0.0, %v5544_v12 }
 0x141   : > { %v4684_v3 = vpop.eup %4683  ;;  %v1074_v19 = vmul.f32 %v4682_v14, %v5455_v27  ;;  %4703 = vpow2.f32 %v990_v33 }
 0x142   : > { %v4686_v20 = vpop.eup %4685  ;;  %1109 = vst.msk [vmem:[#allocation2 + $0x90] sm:$0xff] %vm1090_vm3, %v1076_v16  ;;  %v1077_v23 = vmul.f32 %v4684_v3, %v5462_v6  ;;  %4705 = vpow2.f32 %v986_v10  ;;  %v988_v21 = vmul.f32 1.442695, %v927_v17 }
 0x143   : > { %v4688_v24 = vpop.eup %4687  ;;  %1107 = vst.msk [vmem:[#allocation2 + $0x80] sm:$0xff] %vm1090_vm3, %v1074_v19  ;;  %v1075_v8 = vmul.f32 %v4686_v20, %v5465_v7  ;;  %4707 = vpow2.f32 %v992_v62 }
 0x144   : > { %v4690_v57 = vpop.eup %4689  ;;  %1110 = vst.msk [vmem:[#allocation2 + $0x98] sm:$0xff] %vm1090_vm3, %v1077_v23  ;;  %v1132_v26 = vpack.c.bf16 %v1077_v23, %v1076_v16  ;;  %v1020_v28 = vadd.f32 1.0, %v4688_v24  ;;  %4709 = vpow2.f32 %v988_v21 }
 0x145   : > { %v4692_v27 = vpop.eup %4691  ;;  %1108 = vst.msk [vmem:[#allocation2 + $0x88] sm:$0xff] %vm1090_vm3, %v1075_v8  ;;  %v1131_v29 = vpack.c.bf16 %v1075_v8, %v1074_v19  ;;  %v1018_v32 = vadd.f32 1.0, %v4690_v57 }
 0x146   : > { %v4694_v6 = vpop.eup %4693  ;;  %4711 = vrcp.f32 %v1020_v28  ;;  %v1021_v35 = vadd.f32 1.0, %v4692_v27  ;;  %v1694_v28 = vlaneseq }
 0x147   : > { %v4696_v36 = vpop.eup %4695  ;;  %4713 = vrcp.f32 %v1018_v32  ;;  %v1019_v43 = vadd.f32 1.0, %v4694_v6  ;;  %4375 = vmatprep.mubr.msk.bf16.mxu1 %vm1090_vm3, %v1131_v29 }
 0x148   : > { %v4698_v7 = vpop.eup %4697  ;;  %v1080_v39 = vmul.f32 %v4696_v36, %v5476_v34  ;;  %4715 = vrcp.f32 %v1021_v35  ;;  %4376 = vmatmul.mubr.msk.bf16.gmra.mrb[16].mxu1 %vm1090_vm3, %v1132_v26 }
 0x149   : > { %v4700_v40 = vpop.eup %4699  ;;  %v1078_v46 = vmul.f32 %v4698_v7, %v5481_v38  ;;  %4717 = vrcp.f32 %v1019_v43 }
 0x14a   : > { %v4702_v42 = vpop.eup %4701  ;;  %1113 = vst.msk [vmem:[#allocation2 + $0xb0] sm:$0xff] %vm1090_vm3, %v1080_v39  ;;  %v1081_v44 = vmul.f32 %v4700_v40, %v5488_v54  ;;  %v1695_v40 = vshrl.u32 %v1694_v28, 7 }
 0x14b   : > { %v4704_v45 = vpop.eup %4703  ;;  %1111 = vst.msk [vmem:[#allocation2 + $0xa0] sm:$0xff] %vm1090_vm3, %v1078_v46  ;;  %v1079_v47 = vmul.f32 %v4702_v42, %v5491_v59 }
 0x14c   : > { %v4706_v50 = vpop.eup %4705  ;;  %1114 = vst.msk [vmem:[#allocation2 + $0xb8] sm:$0xff] %vm1090_vm3, %v1081_v44  ;;  %v1134_v34 = vpack.c.bf16 %v1081_v44, %v1080_v39  ;;  %v1024_v49 = vadd.f32 1.0, %v4704_v45 }
 0x14d   : > { %v4708_v18 = vpop.eup %4707  ;;  %1112 = vst.msk [vmem:[#allocation2 + $0xa8] sm:$0xff] %vm1090_vm3, %v1079_v47  ;;  %v1133_v38 = vpack.c.bf16 %v1079_v47, %v1078_v46  ;;  %v1022_v51 = vadd.f32 1.0, %v4706_v50 }
 0x14e   : > { %v4710_v53 = vpop.eup %4709  ;;  %4719 = vrcp.f32 %v1024_v49  ;;  %v1025_v55 = vadd.f32 1.0, %v4708_v18  ;;  %v5735_v18 = vsub.s32 0, %v1695_v40 }
 0x14f   : > { %4721 = vrcp.f32 %v1022_v51  ;;  %v1023_v54 = vadd.f32 1.0, %v4710_v53  ;;  %4379 = vmatprep.mubr.msk.bf16.mxu1 %vm1090_vm3, %v1133_v38 }
 0x150   : > { %v4712_v22 = vpop.eup %4711  ;;  %4723 = vrcp.f32 %v1025_v55  ;;  %4380 = vmatmul.mubr.msk.bf16.gmra.mrb[20].mxu1 %vm1090_vm3, %v1134_v34  ;;  %7336 = vst [vmem:[#allocation11_spill] sm:$0xff] %v5735_v18 }
 0x151   : > { %v4714_v59 = vpop.eup %4713  ;;  %v1084_v56 = vmul.f32 %v4712_v22, %v5500_v5  ;;  %4725 = vrcp.f32 %v1023_v54  ;;  %v5740_v54 = vsub.s32 1, %v1695_v40 }
 0x152   : > { %v4716_v25 = vpop.eup %4715  ;;  %v1082_v61 = vmul.f32 %v4714_v59, %v5505_v11 }
 0x153   : > { %v4718_v31 = vpop.eup %4717  ;;  %1117 = vst.msk [vmem:[#allocation2 + $0xd0] sm:$0xff] %vm1090_vm3, %v1084_v56  ;;  %v1085_v63 = vmul.f32 %v4716_v25, %v5511_v15 }
 0x154   : > { %1115 = vst.msk [vmem:[#allocation2 + $0xc0] sm:$0xff] %vm1090_vm3, %v1082_v61  ;;  %v1083_v0 = vmul.f32 %v4718_v31, %v5518_v41 }
 0x155   : > { %1118 = vst.msk [vmem:[#allocation2 + $0xd8] sm:$0xff] %vm1090_vm3, %v1085_v63  ;;  %v1136_v30 = vpack.c.bf16 %v1085_v63, %v1084_v56 }
 0x156   : > { %1116 = vst.msk [vmem:[#allocation2 + $0xc8] sm:$0xff] %vm1090_vm3, %v1083_v0  ;;  %v1135_v1 = vpack.c.bf16 %v1083_v0, %v1082_v61 }
 0x158   : > { %v4720_v5 = vpop.eup %4719  ;;  %4383 = vmatprep.mubr.msk.bf16.mxu1 %vm1090_vm3, %v1135_v1 }
 0x159   : > { %v4722_v37 = vpop.eup %4721  ;;  %v1088_v11 = vmul.f32 %v4720_v5, %v5526_v48  ;;  %4384 = vmatmul.mubr.msk.bf16.gmra.mrb[24].mxu1 %vm1090_vm3, %v1136_v30 }
 0x15a   : > { %v4724_v2 = vpop.eup %4723  ;;  %v1086_v15 = vmul.f32 %v4722_v37, %v5531_v52  ;;  %v7309_v52 = vmov 0.0  }
 0x15b   : > { %v4726_v4 = vpop.eup %4725  ;;  %1121 = vst.msk [vmem:[#allocation2 + $0xf0] sm:$0xff] %vm1090_vm3, %v1088_v11  ;;  %v1089_v41 = vmul.f32 %v4724_v2, %v5537_v60  ;;  %4410 = vmatprep.subr.mxu0 %v7309_v52  ;;  %v5701_v60 = vld [vmem:[%s7335_s4] ss:$0 sm:$0xff] }
 0x15c   : > { %1119 = vst.msk [vmem:[#allocation2 + $0xe0] sm:$0xff] %vm1090_vm3, %v1086_v15  ;;  %v1087_v33 = vmul.f32 %v4726_v4, %v5544_v12 }
 0x15d   : > { %1122 = vst.msk [vmem:[#allocation2 + $0xf8] sm:$0xff] %vm1090_vm3, %v1089_v41  ;;  %v1138_v9 = vpack.c.bf16 %v1089_v41, %v1088_v11 }
 0x15e   : > { %1120 = vst.msk [vmem:[#allocation2 + $0xe8] sm:$0xff] %vm1090_vm3, %v1087_v33  ;;  %v1137_v48 = vpack.c.bf16 %v1087_v33, %v1086_v15  ;;  %v1659_v15 = vld [vmem:[%s7292_s5] sm:$0x7] }
 0x15f   : > { %1563 = vst.msk [vmem:[#allocation3 + $0x30] sm:$0xff] %vm1555_vm4, %v7309_v52  ;;  %1564 = vst.msk [vmem:[#allocation3 + $0x38] sm:$0xff] %vm1555_vm4, %v7309_v52 }
 0x160   : > { %4387 = vmatprep.mubr.msk.bf16.mxu1 %vm1090_vm3, %v1137_v48  ;;  %1556 = vst.msk [vmem:[#allocation3] sm:$0xff] %vm1555_vm4, %v7309_v52  ;;  %1557 = vst.msk [vmem:[#allocation3 + $0x8] sm:$0xff] %vm1555_vm4, %v7309_v52 }
 0x161   : > { %4388 = vmatmul.mubr.msk.bf16.gmra.mrb[28].mxu1 %vm1090_vm3, %v1138_v9  ;;  %1560 = vst.msk [vmem:[#allocation3 + $0x18] sm:$0xff] %vm1555_vm4, %v7309_v52  ;;  %1561 = vst.msk [vmem:[#allocation3 + $0x20] sm:$0xff] %vm1555_vm4, %v7309_v52 }
 0x162   : > { %1566 = vst.msk [vmem:[#allocation3 + $0x48] sm:$0xff] %vm1555_vm4, %v7309_v52  ;;  %1567 = vst.msk [vmem:[#allocation3 + $0x50] sm:$0xff] %vm1555_vm4, %v7309_v52 }
 0x163   : > { %1569 = vst.msk [vmem:[#allocation3 + $0x60] sm:$0xff] %vm1555_vm4, %v7309_v52  ;;  %1570 = vst.msk [vmem:[#allocation3 + $0x68] sm:$0xff] %vm1555_vm4, %v7309_v52 }
 0x164   : > { %1572 = vst.msk [vmem:[#allocation3 + $0x78] sm:$0xff] %vm1555_vm4, %v7309_v52  ;;  %1573 = vst.msk [vmem:[#allocation3 + $0x80] sm:$0xff] %vm1555_vm4, %v7309_v52 }
 0x165   : > { %1575 = vst.msk [vmem:[#allocation3 + $0x90] sm:$0xff] %vm1555_vm4, %v7309_v52  ;;  %1576 = vst.msk [vmem:[#allocation3 + $0x98] sm:$0xff] %vm1555_vm4, %v7309_v52 }
 0x166   : > { %1578 = vst.msk [vmem:[#allocation3 + $0xa8] sm:$0xff] %vm1555_vm4, %v7309_v52  ;;  %1579 = vst.msk [vmem:[#allocation3 + $0xb0] sm:$0xff] %vm1555_vm4, %v7309_v52 }
 0x167   : > { %1581 = vst.msk [vmem:[#allocation3 + $0xc0] sm:$0xff] %vm1555_vm4, %v7309_v52  ;;  %1582 = vst.msk [vmem:[#allocation3 + $0xc8] sm:$0xff] %vm1555_vm4, %v7309_v52 }
 0x168   : > { %1584 = vst.msk [vmem:[#allocation3 + $0xd8] sm:$0xff] %vm1555_vm4, %v7309_v52  ;;  %1585 = vst.msk [vmem:[#allocation3 + $0xe0] sm:$0xff] %vm1555_vm4, %v7309_v52 }
 0x169   : > { %1587 = vst.msk [vmem:[#allocation3 + $0xf0] sm:$0xff] %vm1555_vm4, %v7309_v52  ;;  %1588 = vst.msk [vmem:[#allocation3 + $0xf8] sm:$0xff] %vm1555_vm4, %v7309_v52 }
 0x16a   : > { %1590 = vst.msk [vmem:[#allocation3 + $0x108] sm:$0xff] %vm1555_vm4, %v7309_v52  ;;  %1591 = vst.msk [vmem:[#allocation3 + $0x110] sm:$0xff] %vm1555_vm4, %v7309_v52 }
 0x16b   : > { %1593 = vst.msk [vmem:[#allocation3 + $0x120] sm:$0xff] %vm1555_vm4, %v7309_v52  ;;  %1594 = vst.msk [vmem:[#allocation3 + $0x128] sm:$0xff] %vm1555_vm4, %v7309_v52 }
 0x16c   : > { %1596 = vst.msk [vmem:[#allocation3 + $0x138] sm:$0xff] %vm1555_vm4, %v7309_v52  ;;  %1597 = vst.msk [vmem:[#allocation3 + $0x140] sm:$0xff] %vm1555_vm4, %v7309_v52 }
 0x16d   : > { %1599 = vst.msk [vmem:[#allocation3 + $0x150] sm:$0xff] %vm1555_vm4, %v7309_v52  ;;  %1600 = vst.msk [vmem:[#allocation3 + $0x158] sm:$0xff] %vm1555_vm4, %v7309_v52 }
 0x16e   : > { %1602 = vst.msk [vmem:[#allocation3 + $0x168] sm:$0xff] %vm1555_vm4, %v7309_v52  ;;  %1603 = vst.msk [vmem:[#allocation3 + $0x170] sm:$0xff] %vm1555_vm4, %v7309_v52 }
 0x16f   : > { %1605 = vst.msk [vmem:[#allocation3 + $0x180] sm:$0xff] %vm1555_vm4, %v7309_v52  ;;  %1606 = vst.msk [vmem:[#allocation3 + $0x188] sm:$0xff] %vm1555_vm4, %v7309_v52 }
 0x170   : > { %1608 = vst.msk [vmem:[#allocation3 + $0x198] sm:$0xff] %vm1555_vm4, %v7309_v52  ;;  %1609 = vst.msk [vmem:[#allocation3 + $0x1a0] sm:$0xff] %vm1555_vm4, %v7309_v52 }
 0x171   : > { %1565 = vst.msk [vmem:[#allocation3 + $0x40] sm:$0x3] %vm1558_vm5, %v7309_v52  ;;  %1559 = vst.msk [vmem:[#allocation3 + $0x10] sm:$0x3] %vm1558_vm5, %v7309_v52 }
 0x172   : > { %1562 = vst.msk [vmem:[#allocation3 + $0x28] sm:$0x3] %vm1558_vm5, %v7309_v52  ;;  %1568 = vst.msk [vmem:[#allocation3 + $0x58] sm:$0x3] %vm1558_vm5, %v7309_v52 }
 0x173   : > { %1571 = vst.msk [vmem:[#allocation3 + $0x70] sm:$0x3] %vm1558_vm5, %v7309_v52  ;;  %1574 = vst.msk [vmem:[#allocation3 + $0x88] sm:$0x3] %vm1558_vm5, %v7309_v52 }
 0x174   : > { %1577 = vst.msk [vmem:[#allocation3 + $0xa0] sm:$0x3] %vm1558_vm5, %v7309_v52  ;;  %1580 = vst.msk [vmem:[#allocation3 + $0xb8] sm:$0x3] %vm1558_vm5, %v7309_v52 }
 0x175   : > { %1583 = vst.msk [vmem:[#allocation3 + $0xd0] sm:$0x3] %vm1558_vm5, %v7309_v52  ;;  %1586 = vst.msk [vmem:[#allocation3 + $0xe8] sm:$0x3] %vm1558_vm5, %v7309_v52 }
 0x176   : > { %1589 = vst.msk [vmem:[#allocation3 + $0x100] sm:$0x3] %vm1558_vm5, %v7309_v52  ;;  %1592 = vst.msk [vmem:[#allocation3 + $0x118] sm:$0x3] %vm1558_vm5, %v7309_v52 }
 0x177   : > { %1595 = vst.msk [vmem:[#allocation3 + $0x130] sm:$0x3] %vm1558_vm5, %v7309_v52  ;;  %1598 = vst.msk [vmem:[#allocation3 + $0x148] sm:$0x3] %vm1558_vm5, %v7309_v52 }
 0x178   : > { %1601 = vst.msk [vmem:[#allocation3 + $0x160] sm:$0x3] %vm1558_vm5, %v7309_v52  ;;  %1604 = vst.msk [vmem:[#allocation3 + $0x178] sm:$0x3] %vm1558_vm5, %v7309_v52 }
 0x179   : > { %1607 = vst.msk [vmem:[#allocation3 + $0x190] sm:$0x3] %vm1558_vm5, %v7309_v52  ;;  %1610 = vst.msk [vmem:[#allocation3 + $0x1a8] sm:$0x3] %vm1558_vm5, %v7309_v52 }
 0x1fa   : > { %v4361_v58 = vpop.f32.mrb[0].mxu1 }
 0x1fb   : > { %v5704_v10 = vadd.f32 %v4361_v58, %v5701_v60  ;;  %v1236_v12 = vpop.f32.mrb[1].mxu1  ;;  %v5759_v58 = vrot.slane %v1659_v15, %v5735_v18 }
 0x1fc   : > { %v5707_v13 = vadd.f32 %v5701_v60, %v1236_v12  ;;  %v4362_v62 = vpop.f32.mrb[2].mxu1  ;;  %v5762_v12 = vrot.slane %v1659_v15, %v5740_v54 }
 0x1fd   : > { %v1365_v14 = vsub.f32 0.0, %v5704_v10  ;;  %v5711_v16 = vadd.f32 %v4362_v62, %v5701_v60  ;;  %v1239_v17 = vpop.f32.mrb[3].mxu1  ;;  %v5764_v62 = vsub.s32 2, %v1695_v40 }
 0x1fe   : > { %v1363_v3 = vsub.f32 0.0, %v5707_v13  ;;  %v5715_v19 = vadd.f32 %v5701_v60, %v1239_v17 }
 0x1ff   : > { %v1399_v20 = vmul.f32 1.442695, %v1365_v14  ;;  %v1366_v23 = vsub.f32 0.0, %v5711_v16 }
 0x200   : > { %v1395_v21 = vmul.f32 1.442695, %v1363_v3  ;;  %v1364_v24 = vsub.f32 0.0, %v5715_v19  ;;  %v1662_v3 = vld [vmem:[#allocation3] sm:$0xff] }
 0x201   : > { %4727 = vpow2.f32 %v1399_v20  ;;  %v1401_v8 = vmul.f32 1.442695, %v1366_v23  ;;  %v1762_v20 = vld [vmem:[#allocation3 + $0x1] sm:$0xff] }
 0x202   : > { %4729 = vpow2.f32 %v1395_v21  ;;  %v1397_v57 = vmul.f32 1.442695, %v1364_v24  ;;  %v4365_v26 = vpop.f32.mrb[4].mxu1 }
 0x203   : > { %4731 = vpow2.f32 %v1401_v8  ;;  %v5720_v27 = vadd.f32 %v4365_v26, %v5701_v60  ;;  %v1252_v29 = vpop.f32.mrb[5].mxu1 }
 0x204   : > { %4733 = vpow2.f32 %v1397_v57  ;;  %v5723_v32 = vadd.f32 %v5701_v60, %v1252_v29  ;;  %v4366_v6 = vpop.f32.mrb[6].mxu1  ;;  %v1698_v29 = vmul.f32 %v5759_v58, %v1662_v3 }
 0x205   : > { %v1369_v35 = vsub.f32 0.0, %v5720_v27  ;;  %v5727_v36 = vadd.f32 %v4366_v6, %v5701_v60  ;;  %v1255_v43 = vpop.f32.mrb[7].mxu1  ;;  %v1798_v6 = vmul.f32 %v5762_v12, %v1762_v20  ;;  %v1863_v20 = vld [vmem:[#allocation3 + $0xa] sm:$0xff] }
 0x206   : > { %v1367_v7 = vsub.f32 0.0, %v5723_v32  ;;  %v5731_v39 = vadd.f32 %v5701_v60, %v1255_v43 }
 0x207   : > { %v1407_v46 = vmul.f32 1.442695, %v1369_v35  ;;  %v1370_v42 = vsub.f32 0.0, %v5727_v36 }
 0x208   : > { %v1403_v44 = vmul.f32 1.442695, %v1367_v7  ;;  %v1368_v45 = vsub.f32 0.0, %v5731_v39  ;;  %v5772_v7 = vrot.slane %v1659_v15, %v5764_v62 }
 0x209   : > { %4735 = vpow2.f32 %v1407_v46  ;;  %v1409_v47 = vmul.f32 1.442695, %v1370_v42 }
 0x20a   : > { %4737 = vpow2.f32 %v1403_v44  ;;  %v1405_v50 = vmul.f32 1.442695, %v1368_v45  ;;  %v4369_v34 = vpop.f32.mrb[8].mxu1  ;;  %v1862_v44 = vld [vmem:[#allocation3 + $0x2] sm:$0xff] }
 0x20b   : > { %v4728_v49 = vpop.eup %4727  ;;  %v5738_v38 = vadd.f32 %v4369_v34, %v5701_v60  ;;  %v1268_v51 = vpop.f32.mrb[9].mxu1  ;;  %4739 = vpow2.f32 %v1409_v47 }
 0x20c   : > { %v4730_v53 = vpop.eup %4729  ;;  %v1461_v55 = vadd.f32 1.0, %v4728_v49  ;;  %v5743_v22 = vadd.f32 %v5701_v60, %v1268_v51  ;;  %v4370_v59 = vpop.f32.mrb[10].mxu1  ;;  %4741 = vpow2.f32 %v1405_v50  ;;  %v1660_v49 = vld [vmem:[%s7292_s5 + $0x4] sm:$0x7]  ;;  %v1830_v51 = vadd.f32 %v1798_v6, %v1698_v29 }
 0x20d   : > { %v4732_v56 = vpop.eup %4731  ;;  %v1459_v25 = vadd.f32 1.0, %v4730_v53  ;;  %v1373_v61 = vsub.f32 0.0, %v5738_v38  ;;  %v5747_v31 = vadd.f32 %v4370_v59, %v5701_v60  ;;  %v1271_v63 = vpop.f32.mrb[11].mxu1  ;;  %v1898_v59 = vmul.f32 %v5772_v7, %v1862_v44 }
 0x20e   : > { %v4734_v0 = vpop.eup %4733  ;;  %4743 = vrcp.f32 %v1461_v55  ;;  %v1462_v30 = vadd.f32 1.0, %v4732_v56  ;;  %v1371_v1 = vsub.f32 0.0, %v5743_v22  ;;  %v5751_v5 = vadd.f32 %v5701_v60, %v1271_v63 }
 0x20f   : > { %4745 = vrcp.f32 %v1459_v25  ;;  %v1460_v37 = vadd.f32 1.0, %v4734_v0  ;;  %v1415_v11 = vmul.f32 1.442695, %v1373_v61  ;;  %v1374_v2 = vsub.f32 0.0, %v5747_v31  ;;  %v1763_v25 = vld [vmem:[#allocation3 + $0x9] sm:$0xff] }
 0x210   : > { %4747 = vrcp.f32 %v1462_v30  ;;  %v1411_v4 = vmul.f32 1.442695, %v1371_v1  ;;  %v1372_v41 = vsub.f32 0.0, %v5751_v5  ;;  %v5798_v15 = vrot.slane %v1660_v49, %v5735_v18 }
 0x211   : > { %4749 = vrcp.f32 %v1460_v37  ;;  %v1417_v33 = vmul.f32 1.442695, %v1374_v2  ;;  %v5807_v3 = vrot.slane %v1660_v49, %v5764_v62 }
 0x212   : > { %v4373_v9 = vpop.f32.mrb[12].mxu1  ;;  %4751 = vpow2.f32 %v1415_v11  ;;  %v1413_v21 = vmul.f32 1.442695, %v1372_v41  ;;  %v5802_v41 = vrot.slane %v1660_v49, %v5740_v54 }
 0x213   : > { %v4736_v48 = vpop.eup %4735  ;;  %v1284_v14 = vpop.f32.mrb[13].mxu1  ;;  %4753 = vpow2.f32 %v1411_v4  ;;  %v5769_v35 = vadd.f32 %v4373_v9, %v5701_v60  ;;  %v1799_v9 = vmul.f32 %v5762_v12, %v1763_v25 }
 0x214   : > { %v4738_v17 = vpop.eup %4737  ;;  %v1465_v23 = vadd.f32 1.0, %v4736_v48  ;;  %v4374_v24 = vpop.f32.mrb[14].mxu1  ;;  %4755 = vpow2.f32 %v1417_v33  ;;  %v5775_v40 = vadd.f32 %v5701_v60, %v1284_v14 }
 0x215   : > { %v1463_v8 = vadd.f32 1.0, %v4738_v17  ;;  %v1287_v57 = vpop.f32.mrb[15].mxu1  ;;  %v4740_v26 = vpop.eup %4739  ;;  %v5779_v45 = vadd.f32 %v4374_v24, %v5701_v60  ;;  %v1377_v55 = vsub.f32 0.0, %v5769_v35  ;;  %v1930_v17 = vadd.f32 %v1898_v59, %v1830_v51 }
 0x216   : > { %4757 = vrcp.f32 %v1465_v23  ;;  %v4742_v28 = vpop.eup %4741  ;;  %v1466_v61 = vadd.f32 1.0, %v4740_v26  ;;  %v1375_v63 = vsub.f32 0.0, %v5775_v40  ;;  %v5795_v37 = vadd.f32 %v5701_v60, %v1287_v57 }
 0x217   : > { %4759 = vrcp.f32 %v1463_v8  ;;  %v1464_v1 = vadd.f32 1.0, %v4742_v28  ;;  %v1423_v48 = vmul.f32 1.442695, %v1377_v55 }
 0x218   : > { %v4744_v43 = vpop.eup %4743  ;;  %4761 = vpow2.f32 %v1413_v21  ;;  %v1419_v23 = vmul.f32 1.442695, %v1375_v63  ;;  %v1376_v57 = vsub.f32 0.0, %v5795_v37 }
 0x219   : > { %v4746_v46 = vpop.eup %4745  ;;  %v1525_v42 = vmul.f32 %v4744_v43, %v5704_v10  ;;  %4763 = vrcp.f32 %v1466_v61 }
 0x21a   : > { %v4748_v47 = vpop.eup %4747  ;;  %v1523_v50 = vmul.f32 %v4746_v46, %v5707_v13  ;;  %v1663_v13 = vld [vmem:[#allocation3 + $0x8] sm:$0xff]  ;;  %4765 = vrcp.f32 %v1464_v1  ;;  %v1421_v59 = vmul.f32 1.442695, %v1376_v57 }
 0x21b   : > { %v4750_v34 = vpop.eup %4749  ;;  %1615 = vst.msk [vmem:[#allocation3 + $0x31] sm:$0xff] %vm1555_vm4, %v1525_v42  ;;  %v1526_v53 = vmul.f32 %v4748_v47, %v5711_v16  ;;  %v4377_v10 = vpop.f32.mrb[16].mxu1  ;;  %v1378_v16 = vsub.f32 0.0, %v5779_v45  ;;  %v1699_v33 = vmul.f32 %v5759_v58, %v1663_v13  ;;  %v1899_v47 = vmul.f32 %v5772_v7, %v1863_v20 }
 0x21c   : > { %1612 = vst.msk [vmem:[#allocation3 + $0x19] sm:$0xff] %vm1555_vm4, %v1523_v50  ;;  %v1524_v56 = vmul.f32 %v4750_v34, %v5715_v19  ;;  %v1300_v0 = vpop.f32.mrb[17].mxu1  ;;  %v4752_v30 = vpop.eup %4751  ;;  %v5813_v6 = vadd.f32 %v4377_v10, %v5701_v60  ;;  %4767 = vpow2.f32 %v1423_v48 }
 0x21d   : > { %1616 = vst.msk [vmem:[#allocation3 + $0x39] sm:$0xff] %vm1555_vm4, %v1526_v53  ;;  %v4378_v11 = vpop.f32.mrb[18].mxu1  ;;  %v4754_v2 = vpop.eup %4753  ;;  %v1425_v8 = vmul.f32 1.442695, %v1378_v16  ;;  %v1469_v29 = vadd.f32 1.0, %v4752_v30  ;;  %v5816_v43 = vadd.f32 %v5701_v60, %v1300_v0  ;;  %v1831_v44 = vadd.f32 %v1799_v9, %v1699_v33 }
 0x21e   : > { %1613 = vst.msk [vmem:[#allocation3 + $0x21] sm:$0xff] %vm1555_vm4, %v1524_v56  ;;  %v1303_v19 = vpop.f32.mrb[19].mxu1  ;;  %v4756_v4 = vpop.eup %4755  ;;  %7337 = vst [vmem:[#allocation12_spill] sm:$0xff] %v5813_v6  ;;  %4769 = vpow2.f32 %v1419_v23  ;;  %v1661_v53 = vld [vmem:[%s7292_s5 + $0x8] sm:$0x7]  ;;  %v1381_v13 = vsub.f32 0.0, %v5813_v6  ;;  %v5836_v61 = vadd.f32 %v4378_v11, %v5701_v60 }
 0x21f   : > { %7338 = vst [vmem:[#allocation13_spill] sm:$0xff] %v5816_v43  ;;  %v1470_v49 = vadd.f32 1.0, %v4756_v4  ;;  %4771 = vpow2.f32 %v1425_v8  ;;  %v1379_v25 = vsub.f32 0.0, %v5816_v43  ;;  %v5842_v16 = vadd.f32 %v5701_v60, %v1303_v19 }
 0x220   : > { %v4758_v14 = vpop.eup %4757  ;;  %4773 = vrcp.f32 %v1469_v29  ;;  %7339 = vst [vmem:[#allocation14_spill] sm:$0xff] %v5836_v61  ;;  %v5848_v4 = vrot.slane %v1661_v53, %v5740_v54  ;;  %v1931_v20 = vadd.f32 %v1899_v47, %v1831_v44  ;;  %v1382_v54 = vsub.f32 0.0, %v5836_v61 }
 0x221   : > { %v4760_v21 = vpop.eup %4759  ;;  %v1529_v24 = vmul.f32 %v4758_v14, %v5720_v27  ;;  %v1467_v27 = vadd.f32 1.0, %v4754_v2  ;;  %7340 = vst [vmem:[#allocation15_spill] sm:$0xff] %v5842_v16  ;;  %v5845_v2 = vrot.slane %v1661_v53, %v5735_v18  ;;  %v5851_v14 = vrot.slane %v1661_v53, %v5764_v62 }
 0x222   : > { %v4762_v26 = vpop.eup %4761  ;;  %v1527_v28 = vmul.f32 %v4760_v21, %v5723_v32  ;;  %v1666_v11 = vld [vmem:[#allocation3 + $0x30] sm:$0xff]  ;;  %v5854_v21 = vmul.f32 1.442695, %v1381_v13  ;;  %v5863_v29 = vmul.f32 1.442695, %v1379_v25 }
 0x223   : > { %v1664_v46 = vld [vmem:[#allocation3 + $0x18] sm:$0xff]  ;;  %1621 = vst.msk [vmem:[#allocation3 + $0x61] sm:$0xff] %vm1555_vm4, %v1529_v24  ;;  %v5820_v50 = vpop.f32.mrb[20].mxu1  ;;  %v1468_v10 = vadd.f32 1.0, %v4762_v26  ;;  %4775 = vrcp.f32 %v1467_v27  ;;  %v4764_v23 = vpop.eup %4763  ;;  %v2298_v53 = vmul.f32 %v5845_v2, %v1666_v11  ;;  %v5894_v43 = vmul.f32 1.442695, %v1382_v54 }
 0x224   : > { %v1764_v42 = vld [vmem:[#allocation3 + $0x19] sm:$0xff]  ;;  %v1700_v32 = vmul.f32 %v5759_v58, %v1664_v46  ;;  %1618 = vst.msk [vmem:[#allocation3 + $0x49] sm:$0xff] %vm1555_vm4, %v1527_v28  ;;  %v5825_v51 = vpop.f32.mrb[21].mxu1  ;;  %v1998_v55 = vmul.f32 %v5798_v15, %v1664_v46  ;;  %4777 = vrcp.f32 %v1470_v49  ;;  %7341 = vst [vmem:[#allocation16_spill] sm:$0xff] %v5854_v21  ;;  %v4766_v24 = vpop.eup %4765  ;;  %v1766_v8 = vld [vmem:[#allocation3 + $0x31] sm:$0xff] }
 0x225   : > { %v1800_v34 = vmul.f32 %v5762_v12, %v1764_v42  ;;  %v5831_v56 = vpop.f32.mrb[22].mxu1  ;;  %v2098_v30 = vmul.f32 %v5802_v41, %v1764_v42  ;;  %v1864_v1 = vld [vmem:[#allocation3 + $0x1a] sm:$0xff]  ;;  %4779 = vrcp.f32 %v1468_v10  ;;  %7342 = vst [vmem:[#allocation17_spill] sm:$0xff] %v5863_v29  ;;  %v1702_v42 = vmul.f32 %v5759_v58, %v1666_v11  ;;  %v1865_v27 = vld [vmem:[#allocation3 + $0x22] sm:$0xff]  ;;  %7347 = vst [vmem:[#allocation22_spill] sm:$0xff] %v5894_v43 }
 0x226   : > { %v5838_v63 = vpop.f32.mrb[23].mxu1  ;;  %v2030_v0 = vadd.f32 %v1998_v55, %v1930_v17  ;;  %v1665_v9 = vld [vmem:[#allocation3 + $0x20] sm:$0xff]  ;;  %v1900_v19 = vmul.f32 %v5772_v7, %v1864_v1  ;;  %4781 = vpow2.f32 %v1421_v59  ;;  %v5857_v57 = vld [vmem:[#allocation3 + $0x38] sm:$0xff]  ;;  %v2198_v28 = vmul.f32 %v5807_v3, %v1864_v1  ;;  %v5871_v49 = vpop.eup %4767 }
 0x227   : > { %v1832_v33 = vadd.f32 %v1800_v34, %v1700_v32  ;;  %v1765_v17 = vld [vmem:[#allocation3 + $0x21] sm:$0xff]  ;;  %v5859_v26 = vld [vmem:[#allocation3 + $0x39] sm:$0xff]  ;;  %v1999_v62 = vmul.f32 %v5798_v15, %v1665_v9  ;;  %v1701_v44 = vmul.f32 %v5759_v58, %v1665_v9  ;;  %v1703_v1 = vmul.f32 %v5759_v58, %v5857_v57 }
 0x228   : > { %v2130_v48 = vadd.f32 %v2098_v30, %v2030_v0  ;;  %v1801_v47 = vmul.f32 %v5762_v12, %v1765_v17  ;;  %v2099_v10 = vmul.f32 %v5802_v41, %v1765_v17  ;;  %v5877_v25 = vpop.eup %4769  ;;  %v1802_v0 = vmul.f32 %v5762_v12, %v1766_v8  ;;  %v1866_v9 = vld [vmem:[#allocation3 + $0x32] sm:$0xff]  ;;  %v5904_v54 = vld [vmem:[%s7293_s6] ss:$0 sm:$0xff] }
 0x229   : > { %v1932_v32 = vadd.f32 %v1900_v19, %v1832_v33  ;;  %v2031_v55 = vadd.f32 %v1999_v62, %v1931_v20  ;;  %v2000_v30 = vmul.f32 %v5798_v15, %v1666_v11  ;;  %v1803_v33 = vmul.f32 %v5762_v12, %v5859_v26  ;;  %v5887_v20 = vpop.eup %4771 }
 0x22a   : > { %v2230_v59 = vadd.f32 %v2198_v28, %v2130_v48  ;;  %v2398_v48 = vmul.f32 %v5848_v4, %v1766_v8  ;;  %v2199_v62 = vmul.f32 %v5807_v3, %v1865_v27  ;;  %v4774_v11 = vpop.eup %4773  ;;  %v2100_v46 = vmul.f32 %v5802_v41, %v1766_v8 }
 0x22b   : > { %v2131_v17 = vadd.f32 %v2099_v10, %v2031_v55  ;;  %v1833_v18 = vadd.f32 %v1801_v47, %v1701_v44  ;;  %v2032_v61 = vadd.f32 %v2000_v30, %v1932_v32  ;;  %v1834_v29 = vadd.f32 %v1802_v0, %v1702_v42  ;;  %v1668_v43 = vld [vmem:[#allocation3 + $0x48] sm:$0xff] }
 0x22c   : > { %v5869_v34 = vpop.f32.mrb[24].mxu1  ;;  %v2330_v28 = vadd.f32 %v2298_v53, %v2230_v59  ;;  %v1835_v53 = vadd.f32 %v1803_v33, %v1703_v1  ;;  %v1867_v59 = vld [vmem:[#allocation3 + $0x3a] sm:$0xff]  ;;  %v1901_v8 = vmul.f32 %v5772_v7, %v1865_v27  ;;  %v2399_v47 = vmul.f32 %v5848_v4, %v5859_v26 }
 0x22d   : > { %7343 = vst [vmem:[#allocation18_spill] sm:$0xff] %v5869_v34  ;;  %v5875_v13 = vpop.f32.mrb[25].mxu1  ;;  %v4776_v6 = vpop.eup %4775  ;;  %v2231_v34 = vadd.f32 %v2199_v62, %v2131_v17  ;;  %v2132_v1 = vadd.f32 %v2100_v46, %v2032_v61  ;;  %v1528_v33 = vmul.f32 %v4766_v24, %v5731_v39  ;;  %v1533_v27 = vmul.f32 %v4774_v11, %v5738_v38  ;;  %v1770_v46 = vld [vmem:[#allocation3 + $0x61] sm:$0xff] }
 0x22e   : > { %7344 = vst [vmem:[#allocation19_spill] sm:$0xff] %v5875_v13  ;;  %v5885_v19 = vpop.f32.mrb[26].mxu1  ;;  %v2498_v13 = vmul.f32 %v5851_v14, %v1866_v9  ;;  %v2430_v55 = vadd.f32 %v2398_v48, %v2330_v28  ;;  %v4778_v10 = vpop.eup %4777  ;;  %v1530_v48 = vmul.f32 %v4764_v23, %v5727_v36  ;;  %v1933_v0 = vadd.f32 %v1901_v8, %v1833_v18 }
 0x22f   : > { %7345 = vst [vmem:[#allocation20_spill] sm:$0xff] %v5885_v19  ;;  %v5891_v52 = vpop.f32.mrb[27].mxu1  ;;  %v2299_v19 = vmul.f32 %v5845_v2, %v5857_v57  ;;  %v4780_v44 = vpop.eup %4779  ;;  %v2499_v17 = vmul.f32 %v5851_v14, %v1867_v59  ;;  %v2001_v36 = vmul.f32 %v5798_v15, %v5857_v57  ;;  %v2200_v18 = vmul.f32 %v5807_v3, %v1866_v9  ;;  %v1670_v57 = vld [vmem:[#allocation3 + $0x60] sm:$0xff] }
 0x230   : > { %7346 = vst [vmem:[#allocation21_spill] sm:$0xff] %v5891_v52  ;;  %v1902_v52 = vmul.f32 %v5772_v7, %v1866_v9  ;;  %v2530_v30 = vadd.f32 %v2498_v13, %v2430_v55  ;;  %v4782_v42 = vpop.eup %4781  ;;  %1622 = vst.msk [vmem:[#allocation3 + $0x69] sm:$0xff] %vm1555_vm4, %v1530_v48  ;;  %v1534_v39 = vmul.f32 %v4778_v10, %v5747_v31 }
 0x231   : > { %v2331_v32 = vadd.f32 %v2299_v19, %v2231_v34  ;;  %v1531_v34 = vmul.f32 %v4776_v6, %v5743_v22  ;;  %1619 = vst.msk [vmem:[#allocation3 + $0x51] sm:$0xff] %vm1555_vm4, %v1528_v33  ;;  %1627 = vst.msk [vmem:[#allocation3 + $0x91] sm:$0xff] %vm1555_vm4, %v1533_v27  ;;  %v1532_v38 = vmul.f32 %v4780_v44, %v5751_v5  ;;  %v1768_v19 = vld [vmem:[#allocation3 + $0x49] sm:$0xff] }
 0x232   : > { %v5913_v28 = vadd.f32 %v5904_v54, %v2530_v30  ;;  %v1903_v23 = vmul.f32 %v5772_v7, %v1867_v59  ;;  %v2101_v22 = vmul.f32 %v5802_v41, %v5859_v26  ;;  %v1934_v13 = vadd.f32 %v1902_v52, %v1834_v29  ;;  %1628 = vst.msk [vmem:[#allocation3 + $0x99] sm:$0xff] %vm1555_vm4, %v1534_v39 }
 0x233   : > { %v2431_v62 = vadd.f32 %v2399_v47, %v2331_v32  ;;  %1624 = vst.msk [vmem:[#allocation3 + $0x79] sm:$0xff] %vm1555_vm4, %v1531_v34  ;;  %v2033_v9 = vadd.f32 %v2001_v36, %v1933_v0  ;;  %v2002_v31 = vmul.f32 %v5798_v15, %v1668_v43  ;;  %v2232_v5 = vadd.f32 %v2200_v18, %v2132_v1 }
 0x234   : > { %v5924_v61 = vpop.f32.mrb[28].mxu1  ;;  %v2601_v24 = vsub.f32 0.0, %v5913_v28  ;;  %1625 = vst.msk [vmem:[#allocation3 + $0x81] sm:$0xff] %vm1555_vm4, %v1532_v38  ;;  %v1935_v11 = vadd.f32 %v1903_v23, %v1835_v53  ;;  %v2201_v26 = vmul.f32 %v5807_v3, %v1867_v59  ;;  %v1706_v8 = vmul.f32 %v5759_v58, %v1670_v57 }
 0x235   : > { %7348 = vst [vmem:[#allocation23_spill] sm:$0xff] %v5924_v61  ;;  %v2531_v6 = vadd.f32 %v2499_v17, %v2431_v62  ;;  %v1806_v52 = vmul.f32 %v5762_v12, %v1770_v46  ;;  %v5941_v29 = vmul.f32 %v5798_v15, %v1670_v57  ;;  %v2300_v44 = vmul.f32 %v5845_v2, %v1668_v43 }
 0x236   : > { %v2633_v10 = vmul.f32 1.442695, %v2601_v24  ;;  %v1704_v53 = vmul.f32 %v5759_v58, %v1668_v43  ;;  %v1804_v59 = vmul.f32 %v5762_v12, %v1768_v19  ;;  %v2034_v32 = vadd.f32 %v2002_v31, %v1934_v13 }
 0x237   : > { %v5936_v55 = vadd.f32 %v5904_v54, %v2531_v6  ;;  %v2332_v30 = vadd.f32 %v2300_v44, %v2232_v5  ;;  %v2133_v48 = vadd.f32 %v2101_v22, %v2033_v9  ;;  %v1473_v0 = vadd.f32 1.0, %v5871_v49  ;;  %v5959_v24 = vld [vmem:[#allocation3 + $0x68] sm:$0xff] }
 0x238   : > { %4783 = vpow2.f32 %v2633_v10  ;;  %v5949_v33 = vmul.f32 %v5802_v41, %v1770_v46  ;;  %v2302_v27 = vmul.f32 %v5845_v2, %v1670_v57  ;;  %v1471_v17 = vadd.f32 1.0, %v5877_v25  ;;  %v1868_v36 = vld [vmem:[#allocation3 + $0x4a] sm:$0xff] }
 0x239   : > { %v2602_v47 = vsub.f32 0.0, %v5936_v55  ;;  %v5953_v62 = vadd.f32 %v1806_v52, %v1706_v8  ;;  %v2102_v34 = vmul.f32 %v5802_v41, %v1768_v19  ;;  %v2400_v43 = vmul.f32 %v5848_v4, %v1768_v19  ;;  %v1669_v38 = vld [vmem:[#allocation3 + $0x50] sm:$0xff]  ;;  %v1870_v52 = vld [vmem:[#allocation3 + $0x62] sm:$0xff] }
 0x23a   : > { %v1474_v18 = vadd.f32 1.0, %v5887_v20  ;;  %v2402_v49 = vmul.f32 %v5848_v4, %v1770_v46  ;;  %v1836_v39 = vadd.f32 %v1804_v59, %v1704_v53  ;;  %v1472_v23 = vadd.f32 1.0, %v4782_v42  ;;  %v1769_v57 = vld [vmem:[#allocation3 + $0x51] sm:$0xff]  ;;  %v5985_v8 = vld [vmem:[#allocation3 + $0x69] sm:$0xff] }
 0x23b   : > { %v2635_v1 = vmul.f32 1.442695, %v2602_v47  ;;  %v2134_v22 = vadd.f32 %v2102_v34, %v2034_v32  ;;  %v2432_v6 = vadd.f32 %v2400_v43, %v2332_v30  ;;  %v2233_v25 = vadd.f32 %v2201_v26, %v2133_v48  ;;  %v5970_v46 = vld [vmem:[#allocation3 + $0x52] sm:$0xff] }
 0x23c   : > { %v1904_v13 = vmul.f32 %v5772_v7, %v1868_v36  ;;  %v7349_v9 = vsub.f32 0.0, %v5842_v16  ;;  %v5968_v20 = vadd.f32 %v5820_v50, %v5701_v60  ;;  %v2003_v42 = vmul.f32 %v5798_v15, %v1669_v38 }
 0x23d   : > { %4785 = vpow2.f32 %v2635_v1  ;;  %v2202_v31 = vmul.f32 %v5807_v3, %v1868_v36  ;;  %v5976_v5 = vadd.f32 %v5701_v60, %v5825_v51  ;;  %v2303_v26 = vmul.f32 %v5845_v2, %v5959_v24 }
 0x23e   : > { %4787 = vrcp.f32 %v1473_v0  ;;  %v5964_v19 = vmul.f32 1.442695, %v7349_v9  ;;  %v2301_v10 = vmul.f32 %v5845_v2, %v1669_v38  ;;  %v5983_v50 = vadd.f32 %v5831_v56, %v5701_v60 }
 0x23f   : > { %4789 = vrcp.f32 %v1471_v17  ;;  %7351 = vst [vmem:[#allocation25_spill] sm:$0xff] %v5976_v5  ;;  %v2035_v44 = vadd.f32 %v2003_v42, %v1935_v11  ;;  %v2103_v47 = vmul.f32 %v5802_v41, %v1769_v57  ;;  %v2234_v53 = vadd.f32 %v2202_v31, %v2134_v22 }
 0x240   : > { %7350 = vst [vmem:[#allocation24_spill] sm:$0xff] %v5964_v19  ;;  %4791 = vrcp.f32 %v1474_v18  ;;  %7352 = vst [vmem:[#allocation26_spill] sm:$0xff] %v5983_v50  ;;  %v2500_v51 = vmul.f32 %v5851_v14, %v1868_v36  ;;  %v1936_v32 = vadd.f32 %v1904_v13, %v1836_v39  ;;  %v2203_v30 = vmul.f32 %v5807_v3, %v5970_v46  ;;  %v1871_v18 = vld [vmem:[#allocation3 + $0x6a] sm:$0xff] }
 0x241   : > { %4793 = vrcp.f32 %v1472_v23  ;;  %v2333_v48 = vadd.f32 %v2301_v10, %v2233_v25  ;;  %v2401_v0 = vmul.f32 %v5848_v4, %v1769_v57  ;;  %v2135_v60 = vadd.f32 %v2103_v47, %v2035_v44 }
 0x242   : > { %v4784_v59 = vpop.eup %4783  ;;  %v2334_v56 = vadd.f32 %v2302_v27, %v2234_v53  ;;  %v2532_v17 = vadd.f32 %v2500_v51, %v2432_v6  ;;  %v2403_v11 = vmul.f32 %v5848_v4, %v5985_v8  ;;  %v2502_v34 = vmul.f32 %v5851_v14, %v1870_v52 }
 0x243   : > { %v2697_v1 = vadd.f32 1.0, %v4784_v59  ;;  %v2433_v43 = vadd.f32 %v2401_v0, %v2333_v48  ;;  %v2501_v36 = vmul.f32 %v5851_v14, %v5970_v46  ;;  %v2235_v39 = vadd.f32 %v2203_v30, %v2135_v60  ;;  %v1672_v30 = vld [vmem:[#allocation3 + $0x78] sm:$0xff]  ;;  %v6021_v48 = vpop.f32.mrb[29].mxu1 }
 0x244   : > { %v2434_v23 = vadd.f32 %v2402_v49, %v2334_v56  ;;  %v5998_v22 = vadd.f32 %v5904_v54, %v2532_v17  ;;  %v1705_v27 = vmul.f32 %v5759_v58, %v1669_v38  ;;  %v1805_v6 = vmul.f32 %v5762_v12, %v1769_v57  ;;  %7353 = vst [vmem:[#allocation27_spill] sm:$0xff] %v6021_v48 }
 0x245   : > { %4795 = vrcp.f32 %v2697_v1  ;;  %v2036_v13 = vadd.f32 %v5941_v29, %v1936_v32  ;;  %v2533_v9 = vadd.f32 %v2501_v36, %v2433_v43  ;;  %v2335_v10 = vadd.f32 %v2303_v26, %v2235_v39  ;;  %v6030_v36 = vpop.f32.mrb[30].mxu1 }
 0x246   : > { %v2534_v44 = vadd.f32 %v2502_v34, %v2434_v23  ;;  %v2603_v47 = vsub.f32 0.0, %v5998_v22  ;;  %v1707_v49 = vmul.f32 %v5759_v58, %v5959_v24  ;;  %v1807_v38 = vmul.f32 %v5762_v12, %v5985_v8  ;;  %7354 = vst [vmem:[#allocation28_spill] sm:$0xff] %v6030_v36  ;;  %v6095_v50 = vpop.f32.mrb[31].mxu1 }
 0x247   : > { %v4786_v25 = vpop.eup %4785  ;;  %v2503_v57 = vmul.f32 %v5851_v14, %v1871_v18  ;;  %v6014_v29 = vadd.f32 %v5904_v54, %v2533_v9  ;;  %v2435_v26 = vadd.f32 %v2403_v11, %v2335_v10  ;;  %v1906_v1 = vmul.f32 %v5772_v7, %v1870_v52  ;;  %7357 = vst [vmem:[#allocation31_spill] sm:$0xff] %v6095_v50 }
 0x248   : > { %v6003_v42 = vpop.eup %4787  ;;  %v2698_v31 = vadd.f32 1.0, %v4786_v25  ;;  %v6019_v59 = vadd.f32 %v5904_v54, %v2534_v44  ;;  %v2637_v32 = vmul.f32 1.442695, %v2603_v47  ;;  %v2204_v60 = vmul.f32 %v5807_v3, %v1870_v52 }
 0x249   : > { %v6006_v53 = vpop.eup %4789  ;;  %v1837_v56 = vadd.f32 %v1805_v6, %v1705_v27  ;;  %v2604_v17 = vsub.f32 0.0, %v6014_v29  ;;  %v2535_v34 = vadd.f32 %v2503_v57, %v2435_v26  ;;  %v2136_v11 = vadd.f32 %v5949_v33, %v2036_v13 }
 0x24a   : > { %v6016_v51 = vpop.eup %4791  ;;  %4797 = vrcp.f32 %v2698_v31  ;;  %v2605_v43 = vsub.f32 0.0, %v6019_v59  ;;  %v1907_v39 = vmul.f32 %v5772_v7, %v1871_v18  ;;  %v1905_v23 = vmul.f32 %v5772_v7, %v5970_v46  ;;  %v1772_v31 = vld [vmem:[#allocation3 + $0x79] sm:$0xff] }
 0x24b   : > { %v6023_v0 = vpop.eup %4793  ;;  %4799 = vpow2.f32 %v2637_v32  ;;  %v2639_v25 = vmul.f32 1.442695, %v2604_v17  ;;  %v2006_v9 = vmul.f32 %v5798_v15, %v1672_v30  ;;  %v1839_v52 = vadd.f32 %v1807_v38, %v1707_v49  ;;  %v6044_v49 = vld [vmem:[#allocation3 + $0x90] sm:$0xff] }
 0x24c   : > { %v6037_v27 = vadd.f32 %v5904_v54, %v2535_v34  ;;  %v2641_v6 = vmul.f32 1.442695, %v2605_v43  ;;  %v2236_v10 = vadd.f32 %v2204_v60, %v2136_v11  ;;  %v1938_v44 = vadd.f32 %v1906_v1, %v5953_v62  ;;  %v6048_v32 = vld [vmem:[#allocation3 + $0x91] sm:$0xff] }
 0x24d   : > { %v1937_v33 = vadd.f32 %v1905_v23, %v1837_v56  ;;  %4801 = vpow2.f32 %v2639_v25  ;;  %v2304_v13 = vmul.f32 %v5845_v2, %v1672_v30  ;;  %v2005_v46 = vmul.f32 %v5798_v15, %v5959_v24  ;;  %v6061_v23 = vld [vmem:[#allocation3 + $0x98] sm:$0xff]  ;;  %v1673_v25 = vld [vmem:[#allocation3 + $0x80] sm:$0xff] }
 0x24e   : > { %7355 = vst [vmem:[#allocation29_spill] sm:$0xff] %v6037_v27  ;;  %v2606_v57 = vsub.f32 0.0, %v6037_v27  ;;  %4803 = vpow2.f32 %v2641_v6  ;;  %v1708_v38 = vmul.f32 %v5759_v58, %v1672_v30  ;;  %v1808_v62 = vmul.f32 %v5762_v12, %v1772_v31  ;;  %v6073_v6 = vld [vmem:[#allocation3 + $0x92] sm:$0xff] }
 0x24f   : > { %v4796_v47 = vpop.eup %4795  ;;  %v2038_v1 = vadd.f32 %v2006_v9, %v1938_v44  ;;  %v2336_v60 = vadd.f32 %v2304_v13, %v2236_v10  ;;  %v1939_v56 = vadd.f32 %v1907_v39, %v1839_v52  ;;  %v2105_v17 = vmul.f32 %v5802_v41, %v5985_v8  ;;  %v6063_v39 = vld [vmem:[#allocation3 + $0x99] sm:$0xff]  ;;  %v1773_v13 = vld [vmem:[#allocation3 + $0x81] sm:$0xff] }
 0x250   : > { %v2761_v26 = vmul.f32 %v4796_v47, %v5913_v28  ;;  %v2205_v24 = vmul.f32 %v5807_v3, %v1871_v18  ;;  %v2643_v34 = vmul.f32 1.442695, %v2606_v57  ;;  %v2037_v43 = vadd.f32 %v2005_v46, %v1937_v33  ;;  %v1872_v47 = vld [vmem:[#allocation3 + $0x7a] sm:$0xff] }
 0x251   : > { %v6057_v30 = vmul.f32 %v5759_v58, %v6044_v49  ;;  %v2106_v28 = vmul.f32 %v5802_v41, %v1772_v31  ;;  %v2404_v11 = vmul.f32 %v5848_v4, %v1772_v31  ;;  %v6067_v18 = vmul.f32 %v5762_v12, %v6048_v32 }
 0x252   : > { %2863 = vst.msk [vmem:[#allocation4] sm:$0xff] %vm1555_vm4, %v2761_v26  ;;  %4805 = vpow2.f32 %v2643_v34  ;;  %v2306_v9 = vmul.f32 %v5845_v2, %v6044_v49  ;;  %v2406_v52 = vmul.f32 %v5848_v4, %v6048_v32  ;;  %v1840_v10 = vadd.f32 %v1808_v62, %v1708_v38  ;;  %v6077_v34 = vld [vmem:[#allocation3 + $0x9a] sm:$0xff] }
 0x253   : > { %v2138_v44 = vadd.f32 %v2106_v28, %v2038_v1  ;;  %v2436_v33 = vadd.f32 %v2404_v11, %v2336_v60  ;;  %v2793_v57 = vsel %vm1555_vm4, %v2761_v26, 0.0  ;;  %7356 = vst [vmem:[#allocation30_spill] sm:$0xff] %v6077_v34  ;;  %v2307_v36 = vmul.f32 %v5845_v2, %v6061_v23  ;;  %v1873_v1 = vld [vmem:[#allocation3 + $0x82] sm:$0xff] }
 0x254   : > { %v4798_v8 = vpop.eup %4797  ;;  %v2407_v48 = vmul.f32 %v5848_v4, %v6063_v39  ;;  %v2007_v61 = vmul.f32 %v5798_v15, %v1673_v25  ;;  %v2506_v62 = vmul.f32 %v5851_v14, %v6073_v6  ;;  %v2137_v26 = vadd.f32 %v2105_v17, %v2037_v43 }
 0x255   : > { %v2762_v31 = vmul.f32 %v4798_v8, %v5936_v55  ;;  %v4800_v46 = vpop.eup %4799  ;;  %v2107_v11 = vmul.f32 %v5802_v41, %v1773_v13  ;;  %v2206_v8 = vmul.f32 %v5807_v3, %v1872_v47  ;;  %v2507_v19 = vmul.f32 %v5851_v14, %v6077_v34 }
 0x256   : > { %v2699_v55 = vadd.f32 1.0, %v4800_v46  ;;  %v2039_v28 = vadd.f32 %v2007_v61, %v1939_v56  ;;  %v1709_v46 = vmul.f32 %v5759_v58, %v1673_v25  ;;  %v2207_v43 = vmul.f32 %v5807_v3, %v1873_v1 }
 0x257   : > { %2864 = vst.msk [vmem:[#allocation4 + $0x8] sm:$0xff] %vm1555_vm4, %v2762_v31  ;;  %v2794_v38 = vsel %vm1555_vm4, %v2762_v31, 0.0  ;;  %v4802_v16 = vpop.eup %4801  ;;  %v2237_v31 = vadd.f32 %v2205_v24, %v2137_v26  ;;  %v2238_v61 = vadd.f32 %v2206_v8, %v2138_v44  ;;  %v2504_v24 = vmul.f32 %v5851_v14, %v1872_v47 }
 0x258   : > { %v6088_v60 = vadd.f32 %v2794_v38, %v2793_v57  ;;  %4807 = vrcp.f32 %v2699_v55  ;;  %v4804_v5 = vpop.eup %4803  ;;  %v2700_v21 = vadd.f32 1.0, %v4802_v16  ;;  %v2139_v17 = vadd.f32 %v2107_v11, %v2039_v28 }
 0x259   : > { %v2701_v56 = vadd.f32 1.0, %v4804_v5  ;;  %v1809_v57 = vmul.f32 %v5762_v12, %v1773_v13  ;;  %v1908_v38 = vmul.f32 %v5772_v7, %v1872_v47  ;;  %v2305_v55 = vmul.f32 %v5845_v2, %v1673_v25 }
 0x25a   : > { %4809 = vrcp.f32 %v2700_v21  ;;  %v2239_v34 = vadd.f32 %v2207_v43, %v2139_v17  ;;  %v2338_v27 = vadd.f32 %v2306_v9, %v2238_v61  ;;  %v2405_v16 = vmul.f32 %v5848_v4, %v1773_v13 }
 0x25b   : > { %4811 = vrcp.f32 %v2701_v56  ;;  %v2337_v26 = vadd.f32 %v2305_v55, %v2237_v31  ;;  %v1537_v28 = vmul.f32 %v6003_v42, %v5769_v35  ;;  %v2536_v8 = vadd.f32 %v2504_v24, %v2436_v33 }
 0x25c   : > { %v4806_v44 = vpop.eup %4805  ;;  %v2339_v5 = vadd.f32 %v2307_v36, %v2239_v34  ;;  %v2438_v11 = vadd.f32 %v2406_v52, %v2338_v27  ;;  %v1535_v50 = vmul.f32 %v6006_v53, %v5775_v40  ;;  %v2505_v9 = vmul.f32 %v5851_v14, %v1873_v1 }
 0x25d   : > { %v2702_v25 = vadd.f32 1.0, %v4806_v44  ;;  %v2437_v21 = vadd.f32 %v2405_v16, %v2337_v26  ;;  %1633 = vst.msk [vmem:[#allocation3 + $0xc1] sm:$0xff] %vm1555_vm4, %v1537_v28  ;;  %v1538_v47 = vmul.f32 %v6016_v51, %v5779_v45  ;;  %v6112_v35 = vadd.f32 %v5904_v54, %v2536_v8 }
 0x25e   : > { %v2439_v13 = vadd.f32 %v2407_v48, %v2339_v5  ;;  %v2538_v31 = vadd.f32 %v2506_v62, %v2438_v11  ;;  %1630 = vst.msk [vmem:[#allocation3 + $0xa9] sm:$0xff] %vm1555_vm4, %v1535_v50  ;;  %v1536_v42 = vmul.f32 %v6023_v0, %v5795_v37  ;;  %v1841_v40 = vadd.f32 %v1809_v57, %v1709_v46 }
 0x25f   : > { %4813 = vrcp.f32 %v2702_v25  ;;  %v1940_v53 = vadd.f32 %v1908_v38, %v1840_v10  ;;  %v2537_v36 = vadd.f32 %v2505_v9, %v2437_v21  ;;  %1634 = vst.msk [vmem:[#allocation3 + $0xc9] sm:$0xff] %vm1555_vm4, %v1538_v47  ;;  %v1842_v27 = vadd.f32 %v6067_v18, %v6057_v30  ;;  %v6165_v21 = vld [vmem:[%s7335_s4] ss:$0 sm:$0xff]  ;;  %v7358_v47 = vld [vmem:[#allocation29_spill] sm:$0xff]  ;;  %s5127_s4 = scalar_lea.vmem %s5126_s3, 32 }
 0x260   : > { %v2539_v45 = vadd.f32 %v2507_v19, %v2439_v13  ;;  %v6121_v51 = vadd.f32 %v5904_v54, %v2538_v31  ;;  %v2607_v48 = vsub.f32 0.0, %v6112_v35  ;;  %1631 = vst.msk [vmem:[#allocation3 + $0xb1] sm:$0xff] %vm1555_vm4, %v1536_v42  ;;  %v2008_v37 = vmul.f32 %v5798_v15, %v6044_v49  ;;  %p5129_p1 = scmp.lt.s32.totalorder %s5127_s4, %s5121_s26 }
 0x261   : > { %v2108_v0 = vmul.f32 %v5802_v41, %v6048_v32  ;;  %v1909_v52 = vmul.f32 %v5772_v7, %v1873_v1  ;;  %v6131_v10 = vadd.f32 %v5904_v54, %v2537_v36  ;;  %v1711_v34 = vmul.f32 %v5759_v58, %v6061_v23  ;;  %v7361_v36 = vld [vmem:[#allocation25_spill] sm:$0xff] }
 0x262   : > { %v4808_v50 = vpop.eup %4807  ;;  %v6135_v30 = vadd.f32 %v5904_v54, %v2539_v45  ;;  %v2609_v18 = vsub.f32 0.0, %v6121_v51  ;;  %v2645_v33 = vmul.f32 1.442695, %v2607_v48  ;;  %v2040_v62 = vadd.f32 %v2008_v37, %v1940_v53  ;;  %v7360_v53 = vld [vmem:[#allocation17_spill] sm:$0xff]  ;;  %v7362_v37 = vld [vmem:[#allocation26_spill] sm:$0xff]  ;;  %p5130_p2 = por %p5129_p1, %p5128_p0 }
 0x263   : > { %v2763_v19 = vmul.f32 %v4808_v50, %v5998_v22  ;;  %v1941_v49 = vadd.f32 %v1909_v52, %v1841_v40  ;;  %v2608_v32 = vsub.f32 0.0, %v6131_v10  ;;  %v2009_v57 = vmul.f32 %v5798_v15, %v6061_v23  ;;  %v7363_v52 = vld [vmem:[#allocation30_spill] sm:$0xff] }
 0x264   : > { %v4810_v46 = vpop.eup %4809  ;;  %v2610_v22 = vsub.f32 0.0, %v6135_v30  ;;  %4815 = vpow2.f32 %v2645_v33  ;;  %v2649_v17 = vmul.f32 1.442695, %v2609_v18  ;;  %v1811_v24 = vmul.f32 %v5762_v12, %v6063_v39  ;;  %p5131_p3 = pnand %p5130_p2, %p5124_p13 }
 0x265   : > { %v2796_v1 = vsel %vm1555_vm4, %v2763_v19, 0.0  ;;  %2865 = vst.msk [vmem:[#allocation4 + $0x10] sm:$0xff] %vm1555_vm4, %v2763_v19  ;;  %v4812_v43 = vpop.eup %4811  ;;  %v2764_v61 = vmul.f32 %v4810_v46, %v6014_v29  ;;  %v2647_v38 = vmul.f32 1.442695, %v2608_v32  ;;  %v1910_v29 = vmul.f32 %v5772_v7, %v6073_v6 }
 0x266   : > { %v2797_v56 = vadd.f32 %v2796_v1, %v6088_v60  ;;  %v2765_v55 = vmul.f32 %v4812_v43, %v6019_v59  ;;  %4817 = vpow2.f32 %v2649_v17  ;;  %v2651_v26 = vmul.f32 1.442695, %v2610_v22  ;;  %v1676_v60 = vld [vmem:[#allocation3 + $0xa8] sm:$0xff] }
 0x267   : > { %v2798_v16 = vsel %vm1555_vm4, %v2764_v61, 0.0  ;;  %2866 = vst.msk [vmem:[#allocation4 + $0x18] sm:$0xff] %vm1555_vm4, %v2764_v61  ;;  %v2041_v28 = vadd.f32 %v2009_v57, %v1941_v49  ;;  %4819 = vpow2.f32 %v2647_v38  ;;  %v2140_v59 = vadd.f32 %v2108_v0, %v2040_v62  ;;  %v7364_v49 = vld [vmem:[#allocation22_spill] sm:$0xff]  ;;  %v6192_v61 = vld [vmem:[#allocation3 + $0xc0] sm:$0xff] }
 0x268   : > { %v2799_v44 = vadd.f32 %v2798_v16, %v2797_v56  ;;  %v2800_v23 = vsel %vm1555_vm4, %v2765_v55, 0.0  ;;  %2867 = vst.msk [vmem:[#allocation4 + $0x20] sm:$0xff] %vm1555_vm4, %v2765_v55  ;;  %4821 = vpow2.f32 %v2651_v26  ;;  %v2109_v11 = vmul.f32 %v5802_v41, %v6063_v39  ;;  %v7359_v39 = vld [vmem:[#allocation16_spill] sm:$0xff]  ;;  %v7365_v1 = vld [vmem:[#allocation18_spill] sm:$0xff] }
 0x269   : > { %v4814_v5 = vpop.eup %4813  ;;  %v2208_v8 = vmul.f32 %v5807_v3, %v6073_v6  ;;  %v1385_v25 = vsub.f32 0.0, %v5968_v20  ;;  %v6169_v9 = vadd.f32 %v6165_v21, %v5838_v63  ;;  %v2010_v42 = vmul.f32 %v5798_v15, %v1676_v60  ;;  %v6196_v55 = vld [vmem:[#allocation3 + $0xc1] sm:$0xff] }
 0x26a   : > { %v2766_v13 = vmul.f32 %v4814_v5, %v7358_v47  ;;  %v2801_v31 = vadd.f32 %v2800_v23, %v2799_v44  ;;  %4823 = vpow2.f32 %v7359_v39  ;;  %v1843_v40 = vadd.f32 %v1811_v24, %v1711_v34  ;;  %v1776_v34 = vld [vmem:[#allocation3 + $0xa9] sm:$0xff] }
 0x26b   : > { %v2141_v6 = vadd.f32 %v2109_v11, %v2041_v28  ;;  %4825 = vpow2.f32 %v7360_v53  ;;  %v1383_v45 = vsub.f32 0.0, %v7361_v36  ;;  %v1942_v48 = vadd.f32 %v1910_v29, %v1842_v27  ;;  %v1677_v28 = vld [vmem:[#allocation3 + $0xb0] sm:$0xff] }
 0x26c   : > { %2868 = vst.msk [vmem:[#allocation4 + $0x28] sm:$0xff] %vm1555_vm4, %v2766_v13  ;;  %v2802_v50 = vsel %vm1555_vm4, %v2766_v13, 0.0  ;;  %v2240_v63 = vadd.f32 %v2208_v8, %v2140_v59  ;;  %v1386_v0 = vsub.f32 0.0, %v7362_v37  ;;  %v1911_v19 = vmul.f32 %v5772_v7, %v7363_v52  ;;  %v6201_v59 = vld [vmem:[#allocation3 + $0xaa] sm:$0xff]  ;;  %v6216_v53 = vld [vmem:[#allocation3 + $0xb2] sm:$0xff] }
 0x26d   : > { %v2209_v18 = vmul.f32 %v5807_v3, %v7363_v52  ;;  %v6183_v33 = vadd.f32 %v2802_v50, %v2801_v31  ;;  %4827 = vpow2.f32 %v7364_v49  ;;  %v2042_v32 = vadd.f32 %v2010_v42, %v1942_v48  ;;  %v1777_v31 = vld [vmem:[#allocation3 + $0xb1] sm:$0xff] }
 0x26e   : > { %v4816_v62 = vpop.eup %4815  ;;  %v2308_v27 = vmul.f32 %v5845_v2, %v1676_v60  ;;  %v6190_v22 = vadd.f32 %v6165_v21, %v7365_v1  ;;  %v1943_v17 = vadd.f32 %v1911_v19, %v1843_v40  ;;  %v6194_v57 = vmul.f32 1.442695, %v1385_v25  ;;  %v6212_v40 = vld [vmem:[#allocation3 + $0xc8] sm:$0xff] }
 0x26f   : > { %v2703_v43 = vadd.f32 1.0, %v4816_v62  ;;  %v2241_v56 = vadd.f32 %v2209_v18, %v2141_v6  ;;  %v1712_v24 = vmul.f32 %v5759_v58, %v1676_v60  ;;  %v1812_v26 = vmul.f32 %v5762_v12, %v1776_v34  ;;  %v6214_v6 = vld [vmem:[#allocation3 + $0xc9] sm:$0xff] }
 0x270   : > { %v4818_v38 = vpop.eup %4817  ;;  %v2110_v16 = vmul.f32 %v5802_v41, %v1776_v34  ;;  %v2340_v29 = vadd.f32 %v2308_v27, %v2240_v63  ;;  %v6203_v5 = vmul.f32 1.442695, %v1383_v45  ;;  %v6205_v11 = vmul.f32 1.442695, %v1386_v0  ;;  %v6223_v19 = vld [vmem:[#allocation3 + $0xc2] sm:$0xff] }
 0x271   : > { %v4820_v44 = vpop.eup %4819  ;;  %v2705_v23 = vadd.f32 1.0, %v4818_v38  ;;  %4829 = vrcp.f32 %v2703_v43  ;;  %v2310_v60 = vmul.f32 %v5845_v2, %v6192_v61  ;;  %v2408_v13 = vmul.f32 %v5848_v4, %v1776_v34  ;;  %v6233_v38 = vld [vmem:[#allocation3 + $0xca] sm:$0xff] }
 0x272   : > { %v4822_v8 = vpop.eup %4821  ;;  %v2704_v25 = vadd.f32 1.0, %v4820_v44  ;;  %v2142_v47 = vadd.f32 %v2110_v16, %v2042_v32  ;;  %v2410_v39 = vmul.f32 %v5848_v4, %v6196_v55  ;;  %v2011_v45 = vmul.f32 %v5798_v15, %v1677_v28 }
 0x273   : > { %v2706_v42 = vadd.f32 1.0, %v4822_v8  ;;  %4831 = vrcp.f32 %v2705_v23  ;;  %v6219_v50 = vadd.f32 %v1812_v26, %v1712_v24  ;;  %v2440_v63 = vadd.f32 %v2408_v13, %v2340_v29 }
 0x274   : > { %v4824_v48 = vpop.eup %4823  ;;  %4833 = vrcp.f32 %v2704_v25  ;;  %v2210_v0 = vmul.f32 %v5807_v3, %v6201_v59  ;;  %v2043_v18 = vadd.f32 %v2011_v45, %v1943_v17  ;;  %v2111_v34 = vmul.f32 %v5802_v41, %v1777_v31 }
 0x275   : > { %v4826_v52 = vpop.eup %4825  ;;  %4835 = vrcp.f32 %v2706_v42  ;;  %v2309_v49 = vmul.f32 %v5845_v2, %v1677_v28  ;;  %v2311_v62 = vmul.f32 %v5845_v2, %v6212_v40  ;;  %v2411_v32 = vmul.f32 %v5848_v4, %v6214_v6 }
 0x276   : > { %v2211_v27 = vmul.f32 %v5807_v3, %v6216_v53  ;;  %v2242_v1 = vadd.f32 %v2210_v0, %v2142_v47  ;;  %v2143_v24 = vadd.f32 %v2111_v34, %v2043_v18  ;;  %v2409_v17 = vmul.f32 %v5848_v4, %v1777_v31 }
 0x277   : > { %v4828_v43 = vpop.eup %4827  ;;  %v2341_v26 = vadd.f32 %v2309_v49, %v2241_v56  ;;  %v2508_v16 = vmul.f32 %v5851_v14, %v6201_v59  ;;  %v2510_v29 = vmul.f32 %v5851_v14, %v6223_v19  ;;  %v1477_v23 = vadd.f32 1.0, %v4824_v48 }
 0x278   : > { %v2342_v44 = vadd.f32 %v2310_v60, %v2242_v1  ;;  %v1475_v8 = vadd.f32 1.0, %v4826_v52  ;;  %v2243_v25 = vadd.f32 %v2211_v27, %v2143_v24  ;;  %v2509_v47 = vmul.f32 %v5851_v14, %v6216_v53 }
 0x279   : > { %v2441_v13 = vadd.f32 %v2409_v17, %v2341_v26  ;;  %v2540_v42 = vadd.f32 %v2508_v16, %v2440_v63  ;;  %v2511_v56 = vmul.f32 %v5851_v14, %v6233_v38  ;;  %4837 = vrcp.f32 %v1477_v23 }
 0x27a   : > { %v2442_v45 = vadd.f32 %v2410_v39, %v2342_v44  ;;  %v1478_v0 = vadd.f32 1.0, %v4828_v43  ;;  %v2343_v34 = vadd.f32 %v2311_v62, %v2243_v25  ;;  %4839 = vrcp.f32 %v1475_v8  ;;  %v7366_v43 = vld [vmem:[#allocation24_spill] sm:$0xff] }
 0x27b   : > { %v4830_v18 = vpop.eup %4829  ;;  %v2541_v49 = vadd.f32 %v2509_v47, %v2441_v13  ;;  %v6245_v46 = vadd.f32 %v5904_v54, %v2540_v42  ;;  %v1713_v48 = vmul.f32 %v5759_v58, %v1677_v28 }
 0x27c   : > { %v2767_v60 = vmul.f32 %v4830_v18, %v6112_v35  ;;  %v2542_v52 = vadd.f32 %v2510_v29, %v2442_v45  ;;  %4841 = vrcp.f32 %v1478_v0  ;;  %v2443_v27 = vadd.f32 %v2411_v32, %v2343_v34  ;;  %v7367_v18 = vld [vmem:[#allocation19_spill] sm:$0xff]  ;;  %v7368_v34 = vld [vmem:[#allocation20_spill] sm:$0xff] }
 0x27d   : > { %v4832_v63 = vpop.eup %4831  ;;  %v6250_v1 = vadd.f32 %v5904_v54, %v2541_v49  ;;  %v2611_v39 = vsub.f32 0.0, %v6245_v46  ;;  %4843 = vpow2.f32 %v7366_v43  ;;  %v1813_v35 = vmul.f32 %v5762_v12, %v1777_v31 }
 0x27e   : > { %v4834_v62 = vpop.eup %4833  ;;  %v2769_v24 = vmul.f32 %v4832_v63, %v6121_v51  ;;  %v2804_v26 = vsel %vm1555_vm4, %v2767_v60, 0.0  ;;  %2869 = vst.msk [vmem:[#allocation4 + $0x30] sm:$0xff] %vm1555_vm4, %v2767_v60  ;;  %v6259_v28 = vadd.f32 %v5904_v54, %v2542_v52  ;;  %v2543_v29 = vadd.f32 %v2511_v56, %v2443_v27  ;;  %v7369_v52 = vld [vmem:[#allocation12_spill] sm:$0xff] }
 0x27f   : > { %v4836_v32 = vpop.eup %4835  ;;  %v2768_v17 = vmul.f32 %v4834_v62, %v6131_v10  ;;  %v2805_v16 = vadd.f32 %v2804_v26, %v6183_v33  ;;  %v2612_v44 = vsub.f32 0.0, %v6250_v1  ;;  %v2653_v31 = vmul.f32 1.442695, %v2611_v39 }
 0x280   : > { %v2770_v23 = vmul.f32 %v4836_v32, %v6135_v30  ;;  %v2808_v51 = vsel %vm1555_vm4, %v2769_v24, 0.0  ;;  %2871 = vst.msk [vmem:[#allocation4 + $0x40] sm:$0xff] %vm1555_vm4, %v2769_v24  ;;  %v2613_v8 = vsub.f32 0.0, %v6259_v28  ;;  %v6271_v10 = vadd.f32 %v5904_v54, %v2543_v29  ;;  %v7371_v24 = vld [vmem:[#allocation13_spill] sm:$0xff]  ;;  %v7372_v29 = vld [vmem:[#allocation14_spill] sm:$0xff] }
 0x281   : > { %v2806_v25 = vsel %vm1555_vm4, %v2768_v17, 0.0  ;;  %2870 = vst.msk [vmem:[#allocation4 + $0x38] sm:$0xff] %vm1555_vm4, %v2768_v17  ;;  %v2655_v33 = vmul.f32 1.442695, %v2612_v44  ;;  %4845 = vpow2.f32 %v6194_v57  ;;  %v1912_v30 = vmul.f32 %v5772_v7, %v6201_v59 }
 0x282   : > { %v2807_v13 = vadd.f32 %v2806_v25, %v2805_v16  ;;  %2872 = vst.msk [vmem:[#allocation4 + $0x48] sm:$0xff] %vm1555_vm4, %v2770_v23  ;;  %4847 = vpow2.f32 %v2653_v31  ;;  %v2657_v47 = vmul.f32 1.442695, %v2613_v8  ;;  %v2614_v42 = vsub.f32 0.0, %v6271_v10 }
 0x283   : > { %4849 = vpow2.f32 %v2655_v33  ;;  %v2810_v56 = vsel %vm1555_vm4, %v2770_v23, 0.0  ;;  %v1389_v45 = vsub.f32 0.0, %v6190_v22  ;;  %v4838_v54 = vpop.eup %4837  ;;  %v6282_v57 = vadd.f32 %v6165_v21, %v7367_v18 }
 0x284   : > { %v2809_v0 = vadd.f32 %v2808_v51, %v2807_v13  ;;  %4851 = vpow2.f32 %v2657_v47  ;;  %v6286_v49 = vadd.f32 %v6165_v21, %v7368_v34  ;;  %v4840_v59 = vpop.eup %4839  ;;  %v2659_v60 = vmul.f32 1.442695, %v2614_v42 }
 0x285   : > { %v1541_v63 = vmul.f32 %v4838_v54, %v7369_v52  ;;  %4853 = vpow2.f32 %v6203_v5  ;;  %v7370_v27 = vsub.f32 0.0, %v6169_v9  ;;  %v1539_v26 = vmul.f32 %v4840_v59, %v7371_v24  ;;  %v7373_v5 = vld [vmem:[#allocation21_spill] sm:$0xff] }
 0x286   : > { %v4842_v43 = vpop.eup %4841  ;;  %v6292_v62 = vadd.f32 %v2810_v56, %v2809_v0  ;;  %v1447_v32 = vmul.f32 1.442695, %v1389_v45  ;;  %v1387_v17 = vsub.f32 0.0, %v6282_v57  ;;  %4855 = vpow2.f32 %v2659_v60  ;;  %v2895_v56 = vld [vmem:[%s7294_s7] sm:$0xff]  ;;  %v2896_v45 = vld [vmem:[%s7294_s7 + $0x8] sm:$0xff] }
 0x287   : > { %v1437_v39 = vmul.f32 1.442695, %v7370_v27  ;;  %v4844_v16 = vpop.eup %4843  ;;  %1639 = vst.msk [vmem:[#allocation3 + $0xf1] sm:$0xff] %vm1555_vm4, %v1541_v63  ;;  %v1542_v44 = vmul.f32 %v4842_v43, %v7372_v29  ;;  %v1390_v23 = vsub.f32 0.0, %v6286_v49  ;;  %v6301_v51 = vadd.f32 %v6165_v21, %v7373_v5  ;;  %1636 = vst.msk [vmem:[#allocation3 + $0xd9] sm:$0xff] %vm1555_vm4, %v1539_v26 }
 0x288   : > { %v1845_v8 = vadd.f32 %v1813_v35, %v1713_v48  ;;  %v1476_v31 = vadd.f32 1.0, %v4844_v16  ;;  %4857 = vpow2.f32 %v6205_v11  ;;  %v1443_v25 = vmul.f32 1.442695, %v1387_v17 }
 0x289   : > { %1640 = vst.msk [vmem:[#allocation3 + $0xf9] sm:$0xff] %vm1555_vm4, %v1542_v44  ;;  %4859 = vpow2.f32 %v1437_v39  ;;  %v1449_v33 = vmul.f32 1.442695, %v1390_v23  ;;  %v1714_v13 = vmul.f32 %v5759_v58, %v6192_v61  ;;  %v1913_v47 = vmul.f32 %v5772_v7, %v6216_v53 }
 0x28a   : > { %4861 = vpow2.f32 %v1447_v32  ;;  %v1388_v42 = vsub.f32 0.0, %v6301_v51  ;;  %v1814_v35 = vmul.f32 %v5762_v12, %v6196_v55  ;;  %v1944_v11 = vadd.f32 %v1912_v30, %v6219_v50 }
 0x28b   : > { %v4846_v48 = vpop.eup %4845  ;;  %4863 = vrcp.f32 %v1476_v31  ;;  %v2012_v53 = vmul.f32 %v5798_v15, %v6192_v61  ;;  %v1945_v0 = vadd.f32 %v1913_v47, %v1845_v8  ;;  %v5187_v34 = vmov 0.0|0.0  }
 0x28c   : > { %v4848_v54 = vpop.eup %4847  ;;  %v1481_v18 = vadd.f32 1.0, %v4846_v48  ;;  %4865 = vpow2.f32 %v1443_v25  ;;  %4508 = vmatprep.subr.bf16.mxu1 %v5187_v34  ;;  %v1715_v30 = vmul.f32 %v5759_v58, %v6212_v40  ;;  %v2013_v59 = vmul.f32 %v5798_v15, %v6212_v40 }
 0x28d   : > { %v4850_v50 = vpop.eup %4849  ;;  %v2707_v60 = vadd.f32 1.0, %v4848_v54  ;;  %4867 = vpow2.f32 %v1449_v33  ;;  %v1445_v27 = vmul.f32 1.442695, %v1388_v42  ;;  %v4509_v61 = vpack.c.bf16 %v2896_v45, %v2895_v56 }
 0x28e   : > { %v4852_v52 = vpop.eup %4851  ;;  %v2708_v63 = vadd.f32 1.0, %v4850_v50  ;;  %4869 = vrcp.f32 %v1481_v18  ;;  %v1815_v43 = vmul.f32 %v5762_v12, %v6214_v6  ;;  %v2044_v24 = vadd.f32 %v2012_v53, %v1944_v11  ;;  %v6336_v25 = vld [vmem:[#allocation3 + $0xd8] sm:$0xff] }
 0x28f   : > { %v4854_v39 = vpop.eup %4853  ;;  %v2709_v26 = vadd.f32 1.0, %v4852_v52  ;;  %4871 = vrcp.f32 %v2707_v60  ;;  %v2045_v32 = vadd.f32 %v2013_v59, %v1945_v0  ;;  %4510 = vmatpush3.bf16.msra.mxu1 %v4509_v61  ;;  %v2112_v40 = vmul.f32 %v5802_v41, %v6196_v55  ;;  %v6348_v53 = vld [vmem:[#allocation3 + $0xd9] sm:$0xff] }
 0x290   : > { %4873 = vrcp.f32 %v2708_v63  ;;  %v4856_v17 = vpop.eup %4855  ;;  %4511 = vmatprep.subr.bf16.mxu1 %v5187_v34  ;;  %v2113_v29 = vmul.f32 %v5802_v41, %v6214_v6  ;;  %v1846_v5 = vadd.f32 %v1814_v35, %v1714_v13  ;;  %v1847_v8 = vadd.f32 %v1815_v43, %v1715_v30  ;;  %v7374_v50 = vld [vmem:[#allocation15_spill] sm:$0xff] }
 0x291   : > { %4875 = vrcp.f32 %v2709_v26  ;;  %v2710_v44 = vadd.f32 1.0, %v4856_v17  ;;  %v1914_v31 = vmul.f32 %v5772_v7, %v6223_v19  ;;  %v2144_v33 = vadd.f32 %v2112_v40, %v2044_v24  ;;  %v7377_v24 = vld [vmem:[#allocation28_spill] sm:$0xff] }
 0x292   : > { %v4858_v16 = vpop.eup %4857  ;;  %4877 = vpow2.f32 %v1445_v27  ;;  %v2145_v55 = vadd.f32 %v2113_v29, %v2045_v32  ;;  %v1915_v48 = vmul.f32 %v5772_v7, %v6233_v38  ;;  %v2212_v6 = vmul.f32 %v5807_v3, %v6223_v19  ;;  %v7375_v19 = vld [vmem:[#allocation23_spill] sm:$0xff] }
 0x293   : > { %v4860_v23 = vpop.eup %4859  ;;  %4879 = vrcp.f32 %v2710_v44  ;;  %v2213_v13 = vmul.f32 %v5807_v3, %v6233_v38  ;;  %v2014_v35 = vmul.f32 %v5798_v15, %v6336_v25  ;;  %v1946_v45 = vadd.f32 %v1914_v31, %v1846_v5  ;;  %v7376_v38 = vld [vmem:[#allocation27_spill] sm:$0xff] }
 0x294   : > { %v4862_v47 = vpop.eup %4861  ;;  %v6346_v54 = vadd.f32 %v1915_v48, %v1847_v8  ;;  %v2244_v0 = vadd.f32 %v2212_v6, %v2144_v33  ;;  %v6355_v60 = vadd.f32 %v6165_v21, %v7375_v19  ;;  %v6359_v52 = vadd.f32 %v6165_v21, %v7376_v38  ;;  %v2897_v32 = vld [vmem:[%s7294_s7 + $0x10] sm:$0xff]  ;;  %v2898_v17 = vld [vmem:[%s7294_s7 + $0x18] sm:$0xff] }
 0x295   : > { %v4864_v42 = vpop.eup %4863  ;;  %v6351_v59 = vadd.f32 %v2213_v13, %v2145_v55  ;;  %v2312_v27 = vmul.f32 %v5845_v2, %v6336_v25  ;;  %v1479_v43 = vadd.f32 1.0, %v4854_v39  ;;  %v6366_v26 = vadd.f32 %v6165_v21, %v7377_v24  ;;  %v6410_v38 = vld [vmem:[#allocation3 + $0xf1] sm:$0xff] }
 0x296   : > { %v4866_v11 = vpop.eup %4865  ;;  %v1540_v30 = vmul.f32 %v4864_v42, %v7374_v50  ;;  %v2046_v44 = vadd.f32 %v2014_v35, %v1946_v45  ;;  %v1482_v39 = vadd.f32 1.0, %v4858_v16  ;;  %v1480_v33 = vadd.f32 1.0, %v4860_v23  ;;  %v2899_v42 = vld [vmem:[%s7294_s7 + $0x20] sm:$0xff]  ;;  %v6392_v35 = vld [vmem:[#allocation3 + $0xf0] sm:$0xff] }
 0x297   : > { %v4868_v56 = vpop.eup %4867  ;;  %v2344_v31 = vadd.f32 %v2312_v27, %v2244_v0  ;;  %v1485_v55 = vadd.f32 1.0, %v4862_v47  ;;  %v4512_v13 = vpack.c.bf16 %v2898_v17, %v2897_v32  ;;  %4881 = vrcp.f32 %v1479_v43 }
 0x298   : > { %v4870_v18 = vpop.eup %4869  ;;  %1637 = vst.msk [vmem:[#allocation3 + $0xe1] sm:$0xff] %vm1555_vm4, %v1540_v30  ;;  %v1486_v45 = vadd.f32 1.0, %v4868_v56  ;;  %4883 = vrcp.f32 %v1482_v39  ;;  %v2901_v30 = vld [vmem:[%s7294_s7 + $0x30] sm:$0xff]  ;;  %v2902_v56 = vld [vmem:[%s7294_s7 + $0x38] sm:$0xff]  ;;  %v7378_v19 = vmov 0.0   ;;  %v1816_v27 = vmul.f32 %v5762_v12, %v6348_v53 }
 0x299   : > { %v4872_v63 = vpop.eup %4871  ;;  %v1545_v61 = vmul.f32 %v4870_v18, %v5968_v20  ;;  %v2114_v20 = vmul.f32 %v5802_v41, %v6348_v53  ;;  %4513 = vmatpush3.bf16.msra.mxu1 %v4512_v13  ;;  %4885 = vrcp.f32 %v1480_v33  ;;  %4407 = vmatprep.mubr.msk.f32.mxu1 %vm5188_vm6, %v7378_v19  ;;  %v2412_v24 = vmul.f32 %v5848_v4, %v6348_v53  ;;  %v6430_v33 = vld [vmem:[#allocation3 + $0xf2] sm:$0xff] }
 0x29a   : > { %v4874_v40 = vpop.eup %4873  ;;  %v2771_v29 = vmul.f32 %v4872_v63, %v6245_v46  ;;  %v2900_v46 = vld [vmem:[%s7294_s7 + $0x28] sm:$0xff]  ;;  %4514 = vmatprep.subr.bf16.mxu1 %v5187_v34  ;;  %v1716_v63 = vmul.f32 %v5759_v58, %v6336_v25  ;;  %4887 = vrcp.f32 %v1485_v55  ;;  %4412 = vmatprep.mubr.msk.f32.mxu0 %vm5188_vm6, %v7378_v19  ;;  %v2314_v25 = vmul.f32 %v5845_v2, %v6392_v35 }
 0x29b   : > { %v4876_v5 = vpop.eup %4875  ;;  %v2772_v8 = vmul.f32 %v4874_v40, %v6250_v1  ;;  %1645 = vst.msk [vmem:[#allocation3 + $0x121] sm:$0xff] %vm1555_vm4, %v1545_v61  ;;  %v1483_v1 = vadd.f32 1.0, %v4866_v11  ;;  %v2146_v43 = vadd.f32 %v2114_v20, %v2046_v44  ;;  %v2414_v44 = vmul.f32 %v5848_v4, %v6410_v38 }
 0x29c   : > { %v4878_v48 = vpop.eup %4877  ;;  %v2773_v6 = vmul.f32 %v4876_v5, %v6259_v28  ;;  %v2812_v16 = vsel %vm1555_vm4, %v2771_v29, 0.0  ;;  %2873 = vst.msk [vmem:[#allocation4 + $0x50] sm:$0xff] %vm1555_vm4, %v2771_v29  ;;  %v4515_v28 = vpack.c.bf16 %v2900_v46, %v2899_v42  ;;  %v6423_v29 = vld [vmem:[#allocation3 + $0xf8] sm:$0xff]  ;;  %v4518_v5 = vpack.c.bf16 %v2902_v56, %v2901_v30 }
 0x29d   : > { %v2813_v23 = vadd.f32 %v2812_v16, %v6292_v62  ;;  %v2814_v47 = vsel %vm1555_vm4, %v2772_v8, 0.0  ;;  %2874 = vst.msk [vmem:[#allocation4 + $0x58] sm:$0xff] %vm1555_vm4, %v2772_v8  ;;  %v4880_v0 = vpop.eup %4879  ;;  %v1484_v62 = vadd.f32 1.0, %v4878_v48  ;;  %4889 = vrcp.f32 %v1483_v1  ;;  %v6448_v30 = vld [vmem:[#allocation3 + $0xfa] sm:$0xff] }
 0x29e   : > { %v2816_v18 = vsel %vm1555_vm4, %v2773_v6, 0.0  ;;  %2875 = vst.msk [vmem:[#allocation4 + $0x60] sm:$0xff] %vm1555_vm4, %v2773_v6  ;;  %v2774_v11 = vmul.f32 %v4880_v0, %v6271_v10  ;;  %v6408_v10 = vmul.f32 %v5759_v58, %v6392_v35  ;;  %4891 = vrcp.f32 %v1486_v45  ;;  %4516 = vmatpush3.bf16.msra.mxu1 %v4515_v28  ;;  %v6442_v0 = vld [vmem:[#allocation3 + $0xf9] sm:$0xff] }
 0x29f   : > { %v2815_v50 = vadd.f32 %v2814_v47, %v2813_v23  ;;  %v1681_v32 = vld [vmem:[#allocation3 + $0xe0] sm:$0xff]  ;;  %v2444_v20 = vadd.f32 %v2412_v24, %v2344_v31  ;;  %4893 = vrcp.f32 %v1484_v62  ;;  %4517 = vmatprep.subr.bf16.mxu1 %v5187_v34  ;;  %v1848_v6 = vadd.f32 %v1816_v27, %v1716_v63 }
 0x2a0   : > { %2876 = vst.msk [vmem:[#allocation4 + $0x68] sm:$0xff] %vm1555_vm4, %v2774_v11  ;;  %v1781_v17 = vld [vmem:[#allocation3 + $0xe1] sm:$0xff]  ;;  %v2015_v39 = vmul.f32 %v5798_v15, %v1681_v32  ;;  %v2313_v46 = vmul.f32 %v5845_v2, %v1681_v32  ;;  %v2818_v48 = vsel %vm1555_vm4, %v2774_v11, 0.0  ;;  %v2315_v31 = vmul.f32 %v5845_v2, %v6423_v29 }
 0x2a1   : > { %v2817_v61 = vadd.f32 %v2816_v18, %v2815_v50  ;;  %v1880_v40 = vld [vmem:[#allocation3 + $0xda] sm:$0xff]  ;;  %v1881_v8 = vld [vmem:[#allocation3 + $0xe2] sm:$0xff]  ;;  %v2115_v42 = vmul.f32 %v5802_v41, %v1781_v17  ;;  %v4882_v45 = vpop.eup %4881  ;;  %v2514_v18 = vmul.f32 %v5851_v14, %v6430_v33  ;;  %v1717_v24 = vmul.f32 %v5759_v58, %v1681_v32 }
 0x2a2   : > { %v2214_v53 = vmul.f32 %v5807_v3, %v1880_v40  ;;  %v2047_v55 = vadd.f32 %v2015_v39, %v6346_v54  ;;  %v2512_v1 = vmul.f32 %v5851_v14, %v1880_v40  ;;  %v2215_v23 = vmul.f32 %v5807_v3, %v1881_v8  ;;  %4519 = vmatpush3.bf16.msra.mxu1 %v4518_v5  ;;  %v4884_v62 = vpop.eup %4883 }
 0x2a3   : > { %v2345_v47 = vadd.f32 %v2313_v46, %v6351_v59  ;;  %v2413_v54 = vmul.f32 %v5848_v4, %v1781_v17  ;;  %v6446_v50 = vadd.f32 %v2818_v48, %v2817_v61  ;;  %v1916_v56 = vmul.f32 %v5772_v7, %v1880_v40  ;;  %v6457_v61 = vld [vmem:[%s7293_s6] ss:$0 sm:$0xff] }
 0x2a4   : > { %v2246_v16 = vadd.f32 %v2214_v53, %v2146_v43  ;;  %v2147_v13 = vadd.f32 %v2115_v42, %v2047_v55  ;;  %v2544_v11 = vadd.f32 %v2512_v1, %v2444_v20  ;;  %v2513_v27 = vmul.f32 %v5851_v14, %v1881_v8  ;;  %v4886_v43 = vpop.eup %4885 }
 0x2a5   : > { %v2445_v59 = vadd.f32 %v2413_v54, %v2345_v47  ;;  %v1817_v39 = vmul.f32 %v5762_v12, %v1781_v17  ;;  %v4888_v20 = vpop.eup %4887  ;;  %v1818_v40 = vmul.f32 %v5762_v12, %v6410_v38  ;;  %v2415_v53 = vmul.f32 %v5848_v4, %v6442_v0 }
 0x2a6   : > { %v2346_v28 = vadd.f32 %v2314_v25, %v2246_v16  ;;  %v2247_v63 = vadd.f32 %v2215_v23, %v2147_v13  ;;  %v6460_v25 = vadd.f32 %v6457_v61, %v2544_v11  ;;  %v2515_v17 = vmul.f32 %v5851_v14, %v6448_v30 }
 0x2a7   : > { %v2545_v32 = vadd.f32 %v2513_v27, %v2445_v59  ;;  %v4890_v42 = vpop.eup %4889  ;;  %v1543_v48 = vmul.f32 %v4882_v45, %v7361_v36  ;;  %v1948_v1 = vadd.f32 %v1916_v56, %v1848_v6  ;;  %v1546_v47 = vmul.f32 %v4884_v62, %v7362_v37 }
 0x2a8   : > { %v2446_v5 = vadd.f32 %v2414_v44, %v2346_v28  ;;  %v2347_v55 = vadd.f32 %v2315_v31, %v2247_v63  ;;  %v2615_v46 = vsub.f32 0.0, %v6460_v25  ;;  %v4892_v16 = vpop.eup %4891  ;;  %v1849_v31 = vadd.f32 %v1817_v39, %v1717_v24 }
 0x2a9   : > { %v6471_v23 = vadd.f32 %v6457_v61, %v2545_v32  ;;  %v4894_v54 = vpop.eup %4893  ;;  %1642 = vst.msk [vmem:[#allocation3 + $0x109] sm:$0xff] %vm1555_vm4, %v1543_v48  ;;  %v2016_v36 = vmul.f32 %v5798_v15, %v6392_v35  ;;  %1646 = vst.msk [vmem:[#allocation3 + $0x129] sm:$0xff] %vm1555_vm4, %v1546_v47  ;;  %v1549_v37 = vmul.f32 %v4888_v20, %v6190_v22  ;;  %v7379_v20 = vld [vmem:[#allocation31_spill] sm:$0xff]  ;;  %v1686_v47 = vld [vmem:[#allocation3 + $0x120] sm:$0xff] }
 0x2aa   : > { %v2546_v44 = vadd.f32 %v2514_v18, %v2446_v5  ;;  %v2447_v13 = vadd.f32 %v2415_v53, %v2347_v55  ;;  %v2661_v11 = vmul.f32 1.442695, %v2615_v46  ;;  %v1544_v18 = vmul.f32 %v4886_v43, %v6169_v9 }
 0x2ab   : > { %v2616_v45 = vsub.f32 0.0, %v6471_v23  ;;  %v1917_v62 = vmul.f32 %v5772_v7, %v1881_v8  ;;  %v1547_v63 = vmul.f32 %v4890_v42, %v6282_v57  ;;  %v2048_v9 = vadd.f32 %v2016_v36, %v1948_v1  ;;  %1651 = vst.msk [vmem:[#allocation3 + $0x151] sm:$0xff] %vm1555_vm4, %v1549_v37 }
 0x2ac   : > { %v6475_v28 = vadd.f32 %v6457_v61, %v2546_v44  ;;  %v2547_v6 = vadd.f32 %v2515_v17, %v2447_v13  ;;  %4895 = vpow2.f32 %v2661_v11  ;;  %1643 = vst.msk [vmem:[#allocation3 + $0x111] sm:$0xff] %vm1555_vm4, %v1544_v18  ;;  %v1550_v35 = vmul.f32 %v4892_v16, %v6286_v49 }
 0x2ad   : > { %v2663_v59 = vmul.f32 1.442695, %v2616_v45  ;;  %v1548_v27 = vmul.f32 %v4894_v54, %v6301_v51  ;;  %v1719_v22 = vmul.f32 %v5759_v58, %v6423_v29  ;;  %v1819_v8 = vmul.f32 %v5762_v12, %v6442_v0  ;;  %1648 = vst.msk [vmem:[#allocation3 + $0x139] sm:$0xff] %vm1555_vm4, %v1547_v63  ;;  %v1786_v54 = vld [vmem:[#allocation3 + $0x121] sm:$0xff] }
 0x2ae   : > { %v2617_v56 = vsub.f32 0.0, %v6475_v28  ;;  %v1949_v43 = vadd.f32 %v1917_v62, %v1849_v31  ;;  %v2116_v57 = vmul.f32 %v5802_v41, %v6410_v38  ;;  %v6499_v39 = vadd.f32 %v6457_v61, %v2547_v6  ;;  %1652 = vst.msk [vmem:[#allocation3 + $0x159] sm:$0xff] %vm1555_vm4, %v1550_v35 }
 0x2af   : > { %4897 = vpow2.f32 %v2663_v59  ;;  %1649 = vst.msk [vmem:[#allocation3 + $0x141] sm:$0xff] %vm1555_vm4, %v1548_v27  ;;  %v1393_v49 = vsub.f32 0.0, %v6355_v60  ;;  %v2017_v51 = vmul.f32 %v5798_v15, %v6423_v29  ;;  %v1391_v5 = vsub.f32 0.0, %v6359_v52 }
 0x2b0   : > { %v2665_v24 = vmul.f32 1.442695, %v2617_v56  ;;  %v6509_v53 = vadd.f32 %v6165_v21, %v7379_v20  ;;  %v1850_v38 = vadd.f32 %v1818_v40, %v6408_v10  ;;  %v1918_v55 = vmul.f32 %v5772_v7, %v6430_v33  ;;  %v1684_v48 = vld [vmem:[#allocation3 + $0x108] sm:$0xff] }
 0x2b1   : > { %v2148_v32 = vadd.f32 %v2116_v57, %v2048_v9  ;;  %v1394_v42 = vsub.f32 0.0, %v6366_v26  ;;  %v1851_v17 = vadd.f32 %v1819_v8, %v1719_v22  ;;  %v2049_v44 = vadd.f32 %v2017_v51, %v1949_v43  ;;  %v1784_v16 = vld [vmem:[#allocation3 + $0x109] sm:$0xff] }
 0x2b2   : > { %4899 = vpow2.f32 %v2665_v24  ;;  %v2216_v29 = vmul.f32 %v5807_v3, %v6430_v33  ;;  %v2618_v46 = vsub.f32 0.0, %v6499_v39  ;;  %v1919_v21 = vmul.f32 %v5772_v7, %v6448_v30 }
 0x2b3   : > { %v2117_v10 = vmul.f32 %v5802_v41, %v6442_v0  ;;  %v6522_v40 = vmul.f32 1.442695, %v1393_v49  ;;  %v1392_v1 = vsub.f32 0.0, %v6509_v53  ;;  %v1950_v13 = vadd.f32 %v1918_v55, %v1850_v38  ;;  %v1884_v9 = vld [vmem:[#allocation3 + $0x10a] sm:$0xff] }
 0x2b4   : > { %v2248_v31 = vadd.f32 %v2216_v29, %v2148_v32  ;;  %v6525_v11 = vmul.f32 1.442695, %v1391_v5  ;;  %v6527_v33 = vmul.f32 1.442695, %v1394_v42  ;;  %v1951_v36 = vadd.f32 %v1919_v21, %v1851_v17  ;;  %v1685_v49 = vld [vmem:[#allocation3 + $0x110] sm:$0xff]  ;;  %v6545_v17 = vld [vmem:[#allocation3 + $0x128] sm:$0xff] }
 0x2b5   : > { %v1720_v6 = vmul.f32 %v5759_v58, %v1684_v48  ;;  %v1820_v45 = vmul.f32 %v5762_v12, %v1784_v16  ;;  %v2149_v37 = vadd.f32 %v2117_v10, %v2049_v44  ;;  %v2667_v0 = vmul.f32 1.442695, %v2618_v46  ;;  %v1785_v44 = vld [vmem:[#allocation3 + $0x111] sm:$0xff]  ;;  %v6550_v21 = vld [vmem:[#allocation3 + $0x122] sm:$0xff] }
 0x2b6   : > { %v4896_v18 = vpop.eup %4895  ;;  %v2018_v56 = vmul.f32 %v5798_v15, %v1684_v48  ;;  %v2316_v63 = vmul.f32 %v5845_v2, %v1684_v48  ;;  %v2217_v59 = vmul.f32 %v5807_v3, %v6448_v30  ;;  %v1722_v35 = vmul.f32 %v5759_v58, %v1686_v47  ;;  %v6548_v48 = vld [vmem:[#allocation3 + $0x129] sm:$0xff] }
 0x2b7   : > { %v2711_v62 = vadd.f32 1.0, %v4896_v18  ;;  %v1822_v27 = vmul.f32 %v5762_v12, %v1786_v54  ;;  %v6537_v22 = vmul.f32 1.442695, %v1392_v1  ;;  %v2020_v43 = vmul.f32 %v5798_v15, %v1686_v47 }
 0x2b8   : > { %v6541_v24 = vmul.f32 %v5802_v41, %v1786_v54  ;;  %v2348_v57 = vadd.f32 %v2316_v63, %v2248_v31  ;;  %v1852_v20 = vadd.f32 %v1820_v45, %v1720_v6  ;;  %v1920_v30 = vmul.f32 %v5772_v7, %v1884_v9 }
 0x2b9   : > { %v4898_v8 = vpop.eup %4897  ;;  %4901 = vrcp.f32 %v2711_v62  ;;  %v2249_v38 = vadd.f32 %v2217_v59, %v2149_v37  ;;  %v2050_v32 = vadd.f32 %v2018_v56, %v1950_v13  ;;  %v2416_v42 = vmul.f32 %v5848_v4, %v1784_v16  ;;  %v1885_v13 = vld [vmem:[#allocation3 + $0x112] sm:$0xff] }
 0x2ba   : > { %v2712_v5 = vadd.f32 1.0, %v4898_v8  ;;  %4903 = vpow2.f32 %v2667_v0  ;;  %v1854_v29 = vadd.f32 %v1822_v27, %v1722_v35  ;;  %v2318_v46 = vmul.f32 %v5845_v2, %v1686_v47 }
 0x2bb   : > { %v2317_v10 = vmul.f32 %v5845_v2, %v1685_v49  ;;  %v2118_v1 = vmul.f32 %v5802_v41, %v1784_v16  ;;  %v2448_v31 = vadd.f32 %v2416_v42, %v2348_v57  ;;  %v2019_v18 = vmul.f32 %v5798_v15, %v1685_v49 }
 0x2bc   : > { %v4900_v51 = vpop.eup %4899  ;;  %4905 = vrcp.f32 %v2712_v5  ;;  %v1723_v6 = vmul.f32 %v5759_v58, %v6545_v17  ;;  %v1952_v45 = vadd.f32 %v1920_v30, %v1852_v20  ;;  %v2417_v47 = vmul.f32 %v5848_v4, %v1785_v44 }
 0x2bd   : > { %v2713_v55 = vadd.f32 1.0, %v4900_v51  ;;  %v2349_v37 = vadd.f32 %v2317_v10, %v2249_v38  ;;  %v2150_v0 = vadd.f32 %v2118_v1, %v2050_v32  ;;  %v1823_v62 = vmul.f32 %v5762_v12, %v6548_v48  ;;  %v6574_v10 = vld [vmem:[#allocation3 + $0x138] sm:$0xff] }
 0x2be   : > { %v1922_v56 = vmul.f32 %v5772_v7, %v6550_v21  ;;  %v2516_v16 = vmul.f32 %v5851_v14, %v1884_v9  ;;  %v1721_v63 = vmul.f32 %v5759_v58, %v1685_v49  ;;  %v1821_v59 = vmul.f32 %v5762_v12, %v1785_v44 }
 0x2bf   : > { %4907 = vrcp.f32 %v2713_v55  ;;  %v2449_v35 = vadd.f32 %v2417_v47, %v2349_v37  ;;  %v2517_v27 = vmul.f32 %v5851_v14, %v1885_v13  ;;  %v2418_v8 = vmul.f32 %v5848_v4, %v1786_v54 }
 0x2c0   : > { %v2051_v57 = vadd.f32 %v2019_v18, %v1951_v36  ;;  %v2548_v51 = vadd.f32 %v2516_v16, %v2448_v31  ;;  %4909 = vpow2.f32 %v6522_v40  ;;  %v2052_v5 = vadd.f32 %v2020_v43, %v1952_v45 }
 0x2c1   : > { %v2218_v20 = vmul.f32 %v5807_v3, %v1884_v9  ;;  %v2549_v30 = vadd.f32 %v2517_v27, %v2449_v35  ;;  %4911 = vpow2.f32 %v6525_v11  ;;  %v1855_v55 = vadd.f32 %v1823_v62, %v1723_v6 }
 0x2c2   : > { %v1954_v49 = vadd.f32 %v1922_v56, %v1854_v29  ;;  %v2119_v32 = vmul.f32 %v5802_v41, %v1785_v44  ;;  %v6572_v42 = vadd.f32 %v6457_v61, %v2548_v51  ;;  %v1853_v36 = vadd.f32 %v1821_v59, %v1721_v63  ;;  %v1887_v63 = vld [vmem:[#allocation3 + $0x12a] sm:$0xff]  ;;  %v6598_v51 = vld [vmem:[#allocation3 + $0x139] sm:$0xff] }
 0x2c3   : > { %v4902_v38 = vpop.eup %4901  ;;  %v2250_v40 = vadd.f32 %v2218_v20, %v2150_v0  ;;  %v6578_v43 = vadd.f32 %v6457_v61, %v2549_v30  ;;  %v2220_v11 = vmul.f32 %v5807_v3, %v6550_v21  ;;  %v1921_v29 = vmul.f32 %v5772_v7, %v1885_v13 }
 0x2c4   : > { %v2775_v54 = vmul.f32 %v4902_v38, %v6460_v25  ;;  %v4904_v9 = vpop.eup %4903  ;;  %v2151_v1 = vadd.f32 %v2119_v32, %v2051_v57  ;;  %v2619_v44 = vsub.f32 0.0, %v6572_v42  ;;  %v2022_v6 = vmul.f32 %v5798_v15, %v6574_v10 }
 0x2c5   : > { %v2620_v25 = vsub.f32 0.0, %v6578_v43  ;;  %v2152_v45 = vadd.f32 %v6541_v24, %v2052_v5  ;;  %v2219_v62 = vmul.f32 %v5807_v3, %v1885_v13  ;;  %v1953_v59 = vadd.f32 %v1921_v29, %v1853_v36 }
 0x2c6   : > { %v4906_v31 = vpop.eup %4905  ;;  %v2820_v18 = vsel %vm1555_vm4, %v2775_v54, 0.0  ;;  %2877 = vst.msk [vmem:[#allocation4 + $0x70] sm:$0xff] %vm1555_vm4, %v2775_v54  ;;  %v2669_v56 = vmul.f32 1.442695, %v2619_v44  ;;  %v2350_v35 = vadd.f32 %v2318_v46, %v2250_v40  ;;  %v2054_v46 = vadd.f32 %v2022_v6, %v1954_v49  ;;  %v6620_v44 = vld [vmem:[#allocation3 + $0x151] sm:$0xff] }
 0x2c7   : > { %v2776_v47 = vmul.f32 %v4906_v31, %v6471_v23  ;;  %v2821_v0 = vadd.f32 %v2820_v18, %v6446_v50  ;;  %v2671_v27 = vmul.f32 1.442695, %v2620_v25  ;;  %v2251_v24 = vadd.f32 %v2219_v62, %v2151_v1  ;;  %v6622_v18 = vld [vmem:[#allocation3 + $0x13a] sm:$0xff] }
 0x2c8   : > { %4913 = vpow2.f32 %v2669_v56  ;;  %v2252_v23 = vadd.f32 %v2220_v11, %v2152_v45  ;;  %v2714_v5 = vadd.f32 1.0, %v4904_v9  ;;  %v1923_v20 = vmul.f32 %v5772_v7, %v1887_v63  ;;  %v6613_v11 = vld [vmem:[#allocation3 + $0x150] sm:$0xff]  ;;  %v6617_v9 = vld [vmem:[#allocation3 + $0x140] sm:$0xff] }
 0x2c9   : > { %v4908_v37 = vpop.eup %4907  ;;  %v2822_v57 = vsel %vm1555_vm4, %v2776_v47, 0.0  ;;  %2878 = vst.msk [vmem:[#allocation4 + $0x78] sm:$0xff] %vm1555_vm4, %v2776_v47  ;;  %4915 = vpow2.f32 %v2671_v27  ;;  %v2319_v30 = vmul.f32 %v5845_v2, %v6545_v17  ;;  %v2320_v38 = vmul.f32 %v5845_v2, %v6574_v10  ;;  %v6641_v56 = vld [vmem:[#allocation3 + $0x159] sm:$0xff] }
 0x2ca   : > { %v6594_v16 = vmul.f32 %v4908_v37, %v6475_v28  ;;  %v6600_v50 = vadd.f32 %v2822_v57, %v2821_v0  ;;  %v2021_v28 = vmul.f32 %v5798_v15, %v6545_v17  ;;  %v4910_v13 = vpop.eup %4909  ;;  %v2121_v54 = vmul.f32 %v5802_v41, %v6548_v48  ;;  %v6629_v37 = vld [vmem:[#allocation3 + $0x141] sm:$0xff]  ;;  %v6635_v0 = vld [vmem:[#allocation3 + $0x158] sm:$0xff] }
 0x2cb   : > { %v4912_v32 = vpop.eup %4911  ;;  %v2450_v40 = vadd.f32 %v2418_v8, %v2350_v35  ;;  %v2122_v49 = vmul.f32 %v5802_v41, %v6598_v51  ;;  %v1955_v29 = vadd.f32 %v1923_v20, %v1855_v55  ;;  %v2221_v1 = vmul.f32 %v5807_v3, %v1887_v63 }
 0x2cc   : > { %2879 = vst.msk [vmem:[#allocation4 + $0x80] sm:$0xff] %vm1555_vm4, %v6594_v16  ;;  %v2053_v36 = vadd.f32 %v2021_v28, %v1953_v59  ;;  %v2351_v17 = vadd.f32 %v2319_v30, %v2251_v24  ;;  %v2352_v31 = vadd.f32 %v2320_v38, %v2252_v23  ;;  %v2419_v25 = vmul.f32 %v5848_v4, %v6548_v48 }
 0x2cd   : > { %v2518_v8 = vmul.f32 %v5851_v14, %v6550_v21  ;;  %v2519_v6 = vmul.f32 %v5851_v14, %v1887_v63  ;;  %v2154_v45 = vadd.f32 %v2122_v49, %v2054_v46  ;;  %4917 = vrcp.f32 %v2714_v5  ;;  %v6643_v63 = vld [vmem:[#allocation3 + $0x142] sm:$0xff] }
 0x2ce   : > { %v2322_v55 = vmul.f32 %v5845_v2, %v6613_v11  ;;  %v2420_v47 = vmul.f32 %v5848_v4, %v6598_v51  ;;  %v2023_v48 = vmul.f32 %v5798_v15, %v6617_v9  ;;  %v2422_v21 = vmul.f32 %v5848_v4, %v6620_v44 }
 0x2cf   : > { %v2550_v62 = vadd.f32 %v2518_v8, %v2450_v40  ;;  %v2153_v59 = vadd.f32 %v2121_v54, %v2053_v36  ;;  %v2222_v35 = vmul.f32 %v5807_v3, %v6622_v18  ;;  %v2451_v27 = vadd.f32 %v2419_v25, %v2351_v17  ;;  %v6659_v17 = vld [vmem:[#allocation3 + $0x152] sm:$0xff] }
 0x2d0   : > { %v2452_v57 = vadd.f32 %v2420_v47, %v2352_v31  ;;  %v2055_v24 = vadd.f32 %v2023_v48, %v1955_v29  ;;  %v2123_v23 = vmul.f32 %v5802_v41, %v6629_v37  ;;  %v2323_v28 = vmul.f32 %v5845_v2, %v6635_v0 }
 0x2d1   : > { %v2253_v46 = vadd.f32 %v2221_v1, %v2153_v59  ;;  %v2254_v5 = vadd.f32 %v2222_v35, %v2154_v45  ;;  %v2321_v20 = vmul.f32 %v5845_v2, %v6617_v9  ;;  %v2423_v38 = vmul.f32 %v5848_v4, %v6641_v56  ;;  %v6665_v59 = vld [vmem:[#allocation3 + $0x15a] sm:$0xff] }
 0x2d2   : > { %v4914_v30 = vpop.eup %4913  ;;  %v2155_v54 = vadd.f32 %v2123_v23, %v2055_v24  ;;  %v2223_v36 = vmul.f32 %v5807_v3, %v6643_v63  ;;  %v2421_v40 = vmul.f32 %v5848_v4, %v6629_v37  ;;  %v2520_v25 = vmul.f32 %v5851_v14, %v6622_v18 }
 0x2d3   : > { %v4916_v49 = vpop.eup %4915  ;;  %v2715_v29 = vadd.f32 1.0, %v4914_v30  ;;  %v2353_v1 = vadd.f32 %v2321_v20, %v2253_v46  ;;  %v2354_v31 = vadd.f32 %v2322_v55, %v2254_v5  ;;  %v2521_v47 = vmul.f32 %v5851_v14, %v6643_v63 }
 0x2d4   : > { %v2716_v8 = vadd.f32 1.0, %v4916_v49  ;;  %v2255_v45 = vadd.f32 %v2223_v36, %v2155_v54  ;;  %v1489_v48 = vadd.f32 1.0, %v4910_v13  ;;  %v2552_v24 = vadd.f32 %v2520_v25, %v2452_v57 }
 0x2d5   : > { %4919 = vrcp.f32 %v2715_v29  ;;  %v2453_v35 = vadd.f32 %v2421_v40, %v2353_v1  ;;  %v1487_v23 = vadd.f32 1.0, %v4912_v32  ;;  %v2522_v46 = vmul.f32 %v5851_v14, %v6659_v17 }
 0x2d6   : > { %4921 = vrcp.f32 %v2716_v8  ;;  %v2355_v55 = vadd.f32 %v2323_v28, %v2255_v45  ;;  %v2454_v5 = vadd.f32 %v2422_v21, %v2354_v31  ;;  %v2551_v30 = vadd.f32 %v2519_v6, %v2451_v27 }
 0x2d7   : > { %v2553_v20 = vadd.f32 %v2521_v47, %v2453_v35  ;;  %4923 = vrcp.f32 %v1489_v48  ;;  %v4918_v54 = vpop.eup %4917  ;;  %v2523_v36 = vmul.f32 %v5851_v14, %v6665_v59  ;;  %v6673_v32 = vadd.f32 %v6457_v61, %v2550_v62 }
 0x2d8   : > { %4925 = vrcp.f32 %v1487_v23  ;;  %v2455_v13 = vadd.f32 %v2423_v38, %v2355_v55  ;;  %v2554_v49 = vadd.f32 %v2522_v46, %v2454_v5  ;;  %v6676_v57 = vadd.f32 %v6457_v61, %v2551_v30 }
 0x2d9   : > { %4927 = vpow2.f32 %v6527_v33  ;;  %v6679_v21 = vadd.f32 %v6457_v61, %v2552_v24  ;;  %v6683_v27 = vadd.f32 %v6457_v61, %v2553_v20  ;;  %v2621_v28 = vsub.f32 0.0, %v6673_v32 }
 0x2da   : > { %4929 = vpow2.f32 %v6537_v22  ;;  %v2555_v6 = vadd.f32 %v2523_v36, %v2455_v13  ;;  %v2622_v38 = vsub.f32 0.0, %v6676_v57  ;;  %v6688_v33 = vmul.f32 %v4918_v54, %v6499_v39  ;;  %v2984_v39 = vld [vmem:[%s7296_s9] sm:$0xf] }
 0x2db   : > { %v6691_v62 = vadd.f32 %v6457_v61, %v2554_v49  ;;  %v2623_v40 = vsub.f32 0.0, %v6679_v21  ;;  %v2824_v29 = vsel %vm1555_vm4, %v6594_v16, 0.0  ;;  %v2624_v1 = vsub.f32 0.0, %v6683_v27  ;;  %4411 = vmatpush3.msk.msra.mxu0 %vm2990_vm7, %v2984_v39 }
 0x2dc   : > { %v6697_v22 = vadd.f32 %v6457_v61, %v2555_v6  ;;  %v6701_v31 = vadd.f32 %v2824_v29, %v6600_v50  ;;  %2880 = vst.msk [vmem:[#allocation4 + $0x88] sm:$0xff] %vm1555_vm4, %v6688_v33  ;;  %v1724_v25 = vmul.f32 %v5759_v58, %v6574_v10  ;;  %v1824_v16 = vmul.f32 %v5762_v12, %v6598_v51  ;;  %v2293_v29 = vld [vmem:[#allocation3 + $0x1a0] sm:$0xff] }
 0x2dd   : > { %v2673_v8 = vmul.f32 1.442695, %v2621_v28  ;;  %v2675_v47 = vmul.f32 1.442695, %v2622_v38  ;;  %v2625_v35 = vsub.f32 0.0, %v6691_v62  ;;  %v1825_v54 = vmul.f32 %v5762_v12, %v6629_v37 }
 0x2de   : > { %v2677_v24 = vmul.f32 1.442695, %v2623_v40  ;;  %v2626_v10 = vsub.f32 0.0, %v6697_v22  ;;  %v2679_v55 = vmul.f32 1.442695, %v2624_v1  ;;  %v1856_v5 = vadd.f32 %v1824_v16, %v1724_v25  ;;  %v2292_v40 = vld [vmem:[#allocation3 + $0x198] sm:$0xff] }
 0x2df   : > { %v4920_v45 = vpop.eup %4919  ;;  %4931 = vpow2.f32 %v2673_v8  ;;  %v2024_v37 = vmul.f32 %v5798_v15, %v6613_v11  ;;  %v1726_v1 = vmul.f32 %v5759_v58, %v6613_v11  ;;  %v1826_v39 = vmul.f32 %v5762_v12, %v6620_v44  ;;  %v2392_v16 = vld [vmem:[#allocation3 + $0x199] sm:$0xff]  ;;  %v2393_v8 = vld [vmem:[#allocation3 + $0x1a1] sm:$0xff] }
 0x2e0   : > { %v4922_v48 = vpop.eup %4921  ;;  %v6713_v50 = vmul.f32 %v4920_v45, %v6572_v42  ;;  %v1924_v42 = vmul.f32 %v5772_v7, %v6622_v18  ;;  %4933 = vpow2.f32 %v2675_v47  ;;  %v2683_v6 = vmul.f32 1.442695, %v2626_v10  ;;  %v2492_v45 = vld [vmem:[#allocation3 + $0x19a] sm:$0xff] }
 0x2e1   : > { %v4924_v23 = vpop.eup %4923  ;;  %v6717_v46 = vmul.f32 %v4922_v48, %v6578_v43  ;;  %v1725_v43 = vmul.f32 %v5759_v58, %v6617_v9  ;;  %4935 = vpow2.f32 %v2677_v24  ;;  %v2124_v48 = vmul.f32 %v5802_v41, %v6620_v44  ;;  %v2493_v24 = vld [vmem:[#allocation3 + $0x1a2] sm:$0xff] }
 0x2e2   : > { %v4926_v51 = vpop.eup %4925  ;;  %2881 = vst.msk [vmem:[#allocation4 + $0x90] sm:$0xff] %vm1555_vm4, %v6713_v50  ;;  %v1553_v20 = vmul.f32 %v4924_v23, %v6355_v60  ;;  %v2681_v60 = vmul.f32 1.442695, %v2625_v35  ;;  %4937 = vpow2.f32 %v2679_v55  ;;  %v1956_v28 = vadd.f32 %v1924_v42, %v1856_v5 }
 0x2e3   : > { %v4928_v30 = vpop.eup %4927  ;;  %2882 = vst.msk [vmem:[#allocation4 + $0x98] sm:$0xff] %vm1555_vm4, %v6717_v46  ;;  %v1551_v36 = vmul.f32 %v4926_v51, %v6359_v52  ;;  %v1857_v9 = vadd.f32 %v1825_v54, %v1725_v43  ;;  %v1925_v52 = vmul.f32 %v5772_v7, %v6643_v63  ;;  %v1727_v63 = vmul.f32 %v5759_v58, %v6635_v0 }
 0x2e4   : > { %v4930_v13 = vpop.eup %4929  ;;  %1657 = vst.msk [vmem:[#allocation3 + $0x181] sm:$0xff] %vm1555_vm4, %v1553_v20  ;;  %v1490_v18 = vadd.f32 1.0, %v4928_v30  ;;  %v2056_v38 = vadd.f32 %v2024_v37, %v1956_v28  ;;  %v1827_v35 = vmul.f32 %v5762_v12, %v6641_v56  ;;  %v2025_v11 = vmul.f32 %v5798_v15, %v6635_v0 }
 0x2e5   : > { %1654 = vst.msk [vmem:[#allocation3 + $0x169] sm:$0xff] %vm1555_vm4, %v1551_v36  ;;  %v1488_v49 = vadd.f32 1.0, %v4930_v13  ;;  %v1957_v25 = vadd.f32 %v1925_v52, %v1857_v9  ;;  %v6751_v10 = vmul.f32 %v5845_v2, %v2292_v40  ;;  %v6754_v55 = vmul.f32 %v5845_v2, %v2293_v29 }
 0x2e6   : > { %4939 = vrcp.f32 %v1490_v18  ;;  %v2156_v5 = vadd.f32 %v2124_v48, %v2056_v38  ;;  %v6757_v44 = vmul.f32 %v5848_v4, %v2392_v16  ;;  %v6760_v42 = vmul.f32 %v5848_v4, %v2393_v8 }
 0x2e7   : > { %4941 = vrcp.f32 %v1488_v49  ;;  %v6763_v20 = vmul.f32 %v5851_v14, %v2492_v45  ;;  %v1858_v43 = vadd.f32 %v1826_v39, %v1726_v1  ;;  %v1926_v0 = vmul.f32 %v5772_v7, %v6659_v17 }
 0x2e8   : > { %4943 = vpow2.f32 %v2681_v60  ;;  %v2057_v54 = vadd.f32 %v2025_v11, %v1957_v25  ;;  %v6768_v13 = vmul.f32 %v5851_v14, %v2493_v24  ;;  %v1859_v60 = vadd.f32 %v1827_v35, %v1727_v63 }
 0x2e9   : > { %4945 = vpow2.f32 %v2683_v6  ;;  %v4932_v47 = vpop.eup %4931  ;;  %v1927_v49 = vmul.f32 %v5772_v7, %v6665_v59  ;;  %v2224_v6 = vmul.f32 %v5807_v3, %v6659_v17  ;;  %v2826_v28 = vsel %vm1555_vm4, %v6688_v33, 0.0 }
 0x2ea   : > { %v4934_v23 = vpop.eup %4933  ;;  %v2125_v37 = vmul.f32 %v5802_v41, %v6641_v56  ;;  %v2225_v52 = vmul.f32 %v5807_v3, %v6665_v59  ;;  %v2717_v40 = vadd.f32 1.0, %v4932_v47  ;;  %v1958_v33 = vadd.f32 %v1926_v0, %v1858_v43 }
 0x2eb   : > { %v4936_v51 = vpop.eup %4935  ;;  %v2256_v17 = vadd.f32 %v2224_v6, %v2156_v5  ;;  %v2718_v16 = vadd.f32 1.0, %v4934_v23  ;;  %v2827_v48 = vadd.f32 %v2826_v28, %v6701_v31  ;;  %v1959_v59 = vadd.f32 %v1927_v49, %v1859_v60  ;;  %v2092_v11 = vld [vmem:[#allocation3 + $0x181] sm:$0xff] }
 0x2ec   : > { %v4938_v30 = vpop.eup %4937  ;;  %v1692_v36 = vld [vmem:[#allocation3 + $0x168] sm:$0xff]  ;;  %v2157_v45 = vadd.f32 %v2125_v37, %v2057_v54  ;;  %v2719_v56 = vadd.f32 1.0, %v4936_v51  ;;  %v2828_v63 = vsel %vm1555_vm4, %v6713_v50, 0.0  ;;  %4947 = vrcp.f32 %v2717_v40 }
 0x2ed   : > { %v1792_v1 = vld [vmem:[#allocation3 + $0x169] sm:$0xff]  ;;  %v2026_v39 = vmul.f32 %v5798_v15, %v1692_v36  ;;  %v2720_v47 = vadd.f32 1.0, %v4938_v30  ;;  %v1728_v35 = vmul.f32 %v5759_v58, %v1692_v36  ;;  %4949 = vrcp.f32 %v2718_v16 }
 0x2ee   : > { %v1828_v24 = vmul.f32 %v5762_v12, %v1792_v1  ;;  %v2257_v43 = vadd.f32 %v2225_v52, %v2157_v45  ;;  %4951 = vrcp.f32 %v2719_v56  ;;  %v6791_v0 = vadd.f32 %v2828_v63, %v2827_v48 }
 0x2ef   : > { %v2058_v51 = vadd.f32 %v2026_v39, %v1958_v33  ;;  %v6795_v30 = vsel %vm1555_vm4, %v6717_v46, 0.0  ;;  %v2126_v54 = vmul.f32 %v5802_v41, %v1792_v1  ;;  %4953 = vrcp.f32 %v2720_v47 }
 0x2f0   : > { %v4940_v18 = vpop.eup %4939  ;;  %v2426_v49 = vmul.f32 %v5848_v4, %v2092_v11  ;;  %v1860_v6 = vadd.f32 %v1828_v24, %v1728_v35 }
 0x2f1   : > { %v4942_v9 = vpop.eup %4941  ;;  %v1554_v38 = vmul.f32 %v4940_v18, %v6366_v26  ;;  %v2324_v26 = vmul.f32 %v5845_v2, %v1692_v36  ;;  %v2424_v36 = vmul.f32 %v5848_v4, %v1792_v1  ;;  %v2128_v18 = vmul.f32 %v5802_v41, %v2092_v11 }
 0x2f2   : > { %v4944_v29 = vpop.eup %4943  ;;  %v1552_v25 = vmul.f32 %v4942_v9, %v6509_v53  ;;  %v1992_v53 = vld [vmem:[#allocation3 + $0x180] sm:$0xff]  ;;  %v2158_v37 = vadd.f32 %v2126_v54, %v2058_v51 }
 0x2f3   : > { %v4946_v8 = vpop.eup %4945  ;;  %1658 = vst.msk [vmem:[#allocation3 + $0x189] sm:$0xff] %vm1555_vm4, %v1554_v38  ;;  %v2721_v23 = vadd.f32 1.0, %v4944_v29  ;;  %v2356_v5 = vadd.f32 %v2324_v26, %v2256_v17  ;;  %v2028_v50 = vmul.f32 %v5798_v15, %v1992_v53  ;;  %v2326_v60 = vmul.f32 %v5845_v2, %v1992_v53 }
 0x2f4   : > { %1655 = vst.msk [vmem:[#allocation3 + $0x171] sm:$0xff] %vm1555_vm4, %v1552_v25  ;;  %v2722_v31 = vadd.f32 1.0, %v4946_v8 }
 0x2f5   : > { %4955 = vrcp.f32 %v2721_v23  ;;  %v2456_v52 = vadd.f32 %v2424_v36, %v2356_v5 }
 0x2f6   : > { %4957 = vrcp.f32 %v2722_v31 }
 0x2fa   : > { %v1993_v28 = vld [vmem:[#allocation3 + $0x188] sm:$0xff] }
 0x2fb   : > { %v2093_v9 = vld [vmem:[#allocation3 + $0x189] sm:$0xff]  ;;  %v1793_v40 = vld [vmem:[#allocation3 + $0x171] sm:$0xff]  ;;  %v2029_v1 = vmul.f32 %v5798_v15, %v1993_v28  ;;  %v2327_v17 = vmul.f32 %v5845_v2, %v1993_v28 }
 0x2fc   : > { %v2192_v46 = vld [vmem:[#allocation3 + $0x182] sm:$0xff]  ;;  %v1693_v38 = vld [vmem:[#allocation3 + $0x170] sm:$0xff]  ;;  %v2129_v39 = vmul.f32 %v5802_v41, %v2093_v9  ;;  %v1829_v8 = vmul.f32 %v5762_v12, %v1793_v40  ;;  %v2127_v47 = vmul.f32 %v5802_v41, %v1793_v40  ;;  %v4948_v12 = vpop.eup %4947  ;;  %v2427_v36 = vmul.f32 %v5848_v4, %v2093_v9 }
 0x2fd   : > { %v1892_v29 = vld [vmem:[#allocation3 + $0x16a] sm:$0xff]  ;;  %v2228_v25 = vmul.f32 %v5807_v3, %v2192_v46  ;;  %v1729_v16 = vmul.f32 %v5759_v58, %v1693_v38  ;;  %v1893_v33 = vld [vmem:[#allocation3 + $0x172] sm:$0xff]  ;;  %v2027_v56 = vmul.f32 %v5798_v15, %v1693_v38  ;;  %v2325_v53 = vmul.f32 %v5845_v2, %v1693_v38  ;;  %v4950_v31 = vpop.eup %4949 }
 0x2fe   : > { %v1928_v45 = vmul.f32 %v5772_v7, %v1892_v29  ;;  %v2193_v48 = vld [vmem:[#allocation3 + $0x18a] sm:$0xff]  ;;  %v1929_v26 = vmul.f32 %v5772_v7, %v1893_v33  ;;  %v2226_v63 = vmul.f32 %v5807_v3, %v1892_v29  ;;  %v2227_v58 = vmul.f32 %v5807_v3, %v1893_v33  ;;  %v4952_v28 = vpop.eup %4951 }
 0x2ff   : > { %v1861_v35 = vadd.f32 %v1829_v8, %v1729_v16  ;;  %v2059_v23 = vadd.f32 %v2027_v56, %v1959_v59  ;;  %v2229_v11 = vmul.f32 %v5807_v3, %v2193_v48  ;;  %v2357_v5 = vadd.f32 %v2325_v53, %v2257_v43  ;;  %v4954_v16 = vpop.eup %4953 }
 0x300   : > { %v1960_v24 = vadd.f32 %v1928_v45, %v1860_v6  ;;  %v2258_v51 = vadd.f32 %v2226_v63, %v2158_v37  ;;  %v2425_v15 = vmul.f32 %v5848_v4, %v1793_v40  ;;  %v2524_v59 = vmul.f32 %v5851_v14, %v1892_v29  ;;  %v4956_v40 = vpop.eup %4955 }
 0x301   : > { %v1961_v7 = vadd.f32 %v1929_v26, %v1861_v35  ;;  %v2159_v41 = vadd.f32 %v2127_v47, %v2059_v23  ;;  %v2525_v6 = vmul.f32 %v5851_v14, %v1893_v33  ;;  %v2526_v43 = vmul.f32 %v5851_v14, %v2192_v46  ;;  %v4958_v4 = vpop.eup %4957 }
 0x302   : > { %v2060_v54 = vadd.f32 %v2028_v50, %v1960_v24  ;;  %v2358_v2 = vadd.f32 %v2326_v60, %v2258_v51  ;;  %v2457_v38 = vadd.f32 %v2425_v15, %v2357_v5  ;;  %v2527_v50 = vmul.f32 %v5851_v14, %v2193_v48 }
 0x303   : > { %v2061_v8 = vadd.f32 %v2029_v1, %v1961_v7  ;;  %v2259_v37 = vadd.f32 %v2227_v58, %v2159_v41  ;;  %v2556_v56 = vadd.f32 %v2524_v59, %v2456_v52  ;;  %v2781_v29 = vmul.f32 %v4948_v12, %v6673_v32 }
 0x304   : > { %v2160_v3 = vadd.f32 %v2128_v18, %v2060_v54  ;;  %v2458_v45 = vadd.f32 %v2426_v49, %v2358_v2  ;;  %v2557_v26 = vadd.f32 %v2525_v6, %v2457_v38  ;;  %v2782_v46 = vmul.f32 %v4950_v31, %v6676_v57 }
 0x305   : > { %v2161_v9 = vadd.f32 %v2129_v39, %v2061_v8  ;;  %v2359_v47 = vadd.f32 %v2327_v17, %v2259_v37  ;;  %v6825_v33 = vadd.f32 %v6457_v61, %v2556_v56  ;;  %v2783_v1 = vmul.f32 %v4952_v28, %v6679_v21  ;;  %2883 = vst.msk [vmem:[#allocation4 + $0xa0] sm:$0xff] %vm1555_vm4, %v2781_v29 }
 0x306   : > { %v2260_v60 = vadd.f32 %v2228_v25, %v2160_v3  ;;  %v2558_v63 = vadd.f32 %v2526_v43, %v2458_v45  ;;  %v6828_v18 = vadd.f32 %v6457_v61, %v2557_v26  ;;  %v2784_v17 = vmul.f32 %v4954_v16, %v6683_v27  ;;  %2884 = vst.msk [vmem:[#allocation4 + $0xa8] sm:$0xff] %vm1555_vm4, %v2782_v46 }
 0x307   : > { %v2261_v49 = vadd.f32 %v2229_v11, %v2161_v9  ;;  %v2459_v52 = vadd.f32 %v2427_v36, %v2359_v47  ;;  %v2627_v32 = vsub.f32 0.0, %v6825_v33  ;;  %v2785_v21 = vmul.f32 %v4956_v40, %v6691_v62  ;;  %2885 = vst.msk [vmem:[#allocation4 + $0xb0] sm:$0xff] %vm1555_vm4, %v2783_v1 }
 0x308   : > { %v2360_v14 = vadd.f32 %v6751_v10, %v2260_v60  ;;  %v6835_v39 = vadd.f32 %v6457_v61, %v2558_v63  ;;  %v2628_v25 = vsub.f32 0.0, %v6828_v18  ;;  %v2786_v23 = vmul.f32 %v4958_v4, %v6697_v22  ;;  %2886 = vst.msk [vmem:[#allocation4 + $0xb8] sm:$0xff] %vm1555_vm4, %v2784_v17 }
 0x309   : > { %v2361_v57 = vadd.f32 %v6754_v55, %v2261_v49  ;;  %v2559_v48 = vadd.f32 %v2527_v50, %v2459_v52  ;;  %v2685_v35 = vmul.f32 1.442695, %v2627_v32  ;;  %v2831_v62 = vadd.f32 %v6795_v30, %v6791_v0  ;;  %2887 = vst.msk [vmem:[#allocation4 + $0xc0] sm:$0xff] %vm1555_vm4, %v2785_v21 }
 0x30a   : > { %v2460_v10 = vadd.f32 %v6757_v44, %v2360_v14  ;;  %v2629_v53 = vsub.f32 0.0, %v6835_v39  ;;  %v2687_v24 = vmul.f32 1.442695, %v2628_v25  ;;  %v2832_v12 = vsel %vm1555_vm4, %v2781_v29, 0.0  ;;  %2888 = vst.msk [vmem:[#allocation4 + $0xc8] sm:$0xff] %vm1555_vm4, %v2786_v23 }
 0x30b   : > { %v2461_v27 = vadd.f32 %v6760_v42, %v2361_v57  ;;  %v6851_v55 = vadd.f32 %v6457_v61, %v2559_v48  ;;  %4959 = vpow2.f32 %v2685_v35  ;;  %v2833_v30 = vadd.f32 %v2832_v12, %v2831_v62 }
 0x30c   : > { %v2560_v58 = vadd.f32 %v6763_v20, %v2460_v10  ;;  %v2689_v44 = vmul.f32 1.442695, %v2629_v53  ;;  %4961 = vpow2.f32 %v2687_v24  ;;  %v2834_v5 = vsel %vm1555_vm4, %v2782_v46, 0.0 }
 0x30d   : > { %v2561_v22 = vadd.f32 %v6768_v13, %v2461_v27  ;;  %v2630_v20 = vsub.f32 0.0, %v6851_v55  ;;  %v2835_v54 = vadd.f32 %v2834_v5, %v2833_v30  ;;  %v2836_v13 = vsel %vm1555_vm4, %v2783_v1, 0.0 }
 0x30e   : > { %v2599_v42 = vadd.f32 %v6457_v61, %v2560_v58  ;;  %4963 = vpow2.f32 %v2689_v44  ;;  %v2838_v59 = vsel %vm1555_vm4, %v2784_v17, 0.0  ;;  %v2840_v37 = vsel %vm1555_vm4, %v2785_v21, 0.0 }
 0x30f   : > { %v2600_v11 = vadd.f32 %v6457_v61, %v2561_v22  ;;  %v2691_v0 = vmul.f32 1.442695, %v2630_v20  ;;  %v2837_v2 = vadd.f32 %v2836_v13, %v2835_v54  ;;  %v2842_v26 = vsel %vm1555_vm4, %v2786_v23, 0.0  ;;  %v4595_v54 = vld [vmem:[%s7298_s11 + $0x8] sm:$0xff]   ;;  %v4596_v13 = vld [vmem:[%s7298_s11 + $0x10] sm:$0xff]  }
 0x310   : > { %v2631_v51 = vsub.f32 0.0, %v2599_v42 }
 0x311   : > { %v2632_v15 = vsub.f32 0.0, %v2600_v11  ;;  %4965 = vpow2.f32 %v2691_v0  ;;  %v2839_v8 = vadd.f32 %v2838_v59, %v2837_v2 }
 0x312   : > { %v2693_v31 = vmul.f32 1.442695, %v2631_v51 }
 0x313   : > { %v2695_v7 = vmul.f32 1.442695, %v2632_v15  ;;  %v2841_v50 = vadd.f32 %v2840_v37, %v2839_v8  ;;  %v7380_v8 = vld [vmem:[#allocation11_spill] sm:$0xff] }
 0x314   : > { %4967 = vpow2.f32 %v2693_v31  ;;  %v3070_v37 = vld [vmem:[#allocation4] sm:$0xff] }
 0x315   : > { %4969 = vpow2.f32 %v2695_v7  ;;  %v4960_v41 = vpop.eup %4959  ;;  %v2843_v9 = vadd.f32 %v2842_v26, %v2841_v50  ;;  %v4594_v7 = vld [vmem:[%s7298_s11] sm:$0xff]  }
 0x316   : > { %v4962_v36 = vpop.eup %4961  ;;  %v2723_v28 = vadd.f32 1.0, %v4960_v41  ;;  %4415 = vmatprep.subr.bf16.mxu1 %v4594_v7  ;;  %v4597_v41 = vld [vmem:[%s7298_s11 + $0x18] sm:$0xff]  }
 0x317   : > { %v2724_v61 = vadd.f32 1.0, %v4962_v36  ;;  %v2985_v36 = vld [vmem:[%s7297_s10] sm:$0x1] }
 0x318   : > { %v4964_v38 = vpop.eup %4963  ;;  %4971 = vrcp.f32 %v2723_v28 }
 0x319   : > { %v2725_v6 = vadd.f32 1.0, %v4964_v38  ;;  %4973 = vrcp.f32 %v2724_v61 }
 0x31b   : > { %v4966_v16 = vpop.eup %4965  ;;  %4975 = vrcp.f32 %v2725_v6 }
 0x31c   : > { %v2726_v3 = vadd.f32 1.0, %v4966_v16 }
 0x31e   : > { %v4968_v43 = vpop.eup %4967  ;;  %4977 = vrcp.f32 %v2726_v3 }
 0x31f   : > { %v2727_v40 = vadd.f32 1.0, %v4968_v43  ;;  %v4970_v45 = vpop.eup %4969  ;;  %v3071_v43 = vld [vmem:[#allocation4 + $0x8] sm:$0xff] }
 0x320   : > { %v2728_v56 = vadd.f32 1.0, %v4970_v45  ;;  %v3073_v45 = vld [vmem:[#allocation4 + $0x18] sm:$0xff] }
 0x321   : > { %4979 = vrcp.f32 %v2727_v40  ;;  %v3072_v40 = vld [vmem:[#allocation4 + $0x10] sm:$0xff] }
 0x322   : > { %4981 = vrcp.f32 %v2728_v56  ;;  %v4972_v4 = vpop.eup %4971 }
 0x323   : > { %v4974_v60 = vpop.eup %4973  ;;  %v2787_v47 = vmul.f32 %v4972_v4, %v6825_v33 }
 0x324   : > { %v2788_v63 = vmul.f32 %v4974_v60, %v6828_v18  ;;  %v3075_v60 = vld [vmem:[#allocation4 + $0x28] sm:$0xff] }
 0x325   : > { %v4976_v29 = vpop.eup %4975  ;;  %v2844_v49 = vsel %vm1555_vm4, %v2787_v47, 0.0  ;;  %2889 = vst.msk [vmem:[#allocation4 + $0xd0] sm:$0xff] %vm1555_vm4, %v2787_v47 }
 0x326   : > { %v2789_v46 = vmul.f32 %v4976_v29, %v6835_v39  ;;  %v2845_v14 = vadd.f32 %v2844_v49, %v2843_v9  ;;  %v2846_v52 = vsel %vm1555_vm4, %v2788_v63, 0.0  ;;  %2890 = vst.msk [vmem:[#allocation4 + $0xd8] sm:$0xff] %vm1555_vm4, %v2788_v63  ;;  %v3074_v9 = vld [vmem:[#allocation4 + $0x20] sm:$0xff] }
 0x328   : > { %v4978_v1 = vpop.eup %4977  ;;  %v2848_v32 = vsel %vm1555_vm4, %v2789_v46, 0.0  ;;  %2891 = vst.msk [vmem:[#allocation4 + $0xe0] sm:$0xff] %vm1555_vm4, %v2789_v46  ;;  %v2847_v25 = vadd.f32 %v2846_v52, %v2845_v14  ;;  %v3076_v14 = vld [vmem:[#allocation4 + $0x30] sm:$0xff]  ;;  %v3077_v52 = vld [vmem:[#allocation4 + $0x38] sm:$0xff] }
 0x329   : > { %v2790_v33 = vmul.f32 %v4978_v1, %v6851_v55 }
 0x32a   : > { %v2849_v39 = vadd.f32 %v2848_v32, %v2847_v25  ;;  %v3079_v25 = vld [vmem:[#allocation4 + $0x48] sm:$0xff] }
 0x32b   : > { %v4980_v18 = vpop.eup %4979  ;;  %v2850_v57 = vsel %vm1555_vm4, %v2790_v33, 0.0  ;;  %2892 = vst.msk [vmem:[#allocation4 + $0xe8] sm:$0xff] %vm1555_vm4, %v2790_v33  ;;  %v3078_v33 = vld [vmem:[#allocation4 + $0x40] sm:$0xff] }
 0x32c   : > { %v2791_v17 = vmul.f32 %v4980_v18, %v2599_v42  ;;  %v4982_v10 = vpop.eup %4981  ;;  %v2851_v21 = vadd.f32 %v2850_v57, %v2849_v39  ;;  %v2903_v42 = vld [vmem:[%s7295_s8] sm:$0x1] }
 0x32d   : > { %v2792_v48 = vmul.f32 %v4982_v10, %v2600_v11  ;;  %v3080_v10 = vld [vmem:[#allocation4 + $0x50] sm:$0xff] }
 0x32e   : > { %v2852_v53 = vsel %vm1555_vm4, %v2791_v17, 0.0  ;;  %2893 = vst.msk [vmem:[#allocation4 + $0xf0] sm:$0xff] %vm1555_vm4, %v2791_v17 }
 0x32f   : > { %v2853_v35 = vadd.f32 %v2852_v53, %v2851_v21  ;;  %v2854_v24 = vsel %vm1555_vm4, %v2792_v48, 0.0  ;;  %2894 = vst.msk [vmem:[#allocation4 + $0xf8] sm:$0xff] %vm1555_vm4, %v2792_v48  ;;  %v3081_v48 = vld [vmem:[#allocation4 + $0x58] sm:$0xff] }
 0x331   : > { %v2855_v23 = vadd.f32 %v2854_v24, %v2853_v35  ;;  %v3082_v35 = vld [vmem:[#allocation4 + $0x60] sm:$0xff]  ;;  %v3083_v24 = vld [vmem:[#allocation4 + $0x68] sm:$0xff] }
 0x333   : > { %v2856_v27 = vrot.slane %v2855_v23, 4 }
 0x335   : > { %v2857_v58 = vadd.f32 %v2856_v27, %v2855_v23 }
 0x337   : > { %v2858_v55 = vrot.slane %v2857_v58, 2 }
 0x339   : > { %v2859_v62 = vadd.f32 %v2858_v55, %v2857_v58 }
 0x33b   : > { %v2860_v44 = vrot.slane %v2859_v62, 1 }
 0x33d   : > { %v2861_v12 = vadd.f32 %v2860_v44, %v2859_v62  ;;  %v3084_v62 = vld [vmem:[#allocation4 + $0x70] sm:$0xff]  ;;  %v3085_v44 = vld [vmem:[#allocation4 + $0x78] sm:$0xff] }
 0x33f   : > { %v2862_v22 = vmul.f32 0.00390625, %v2861_v12 }
 0x341   : > { %4408 = vmatmul.mubr.msk.f32.vlgmr.msra.gmra.mrb[32].mxu1 %vm1555_vm4, %v2862_v22 }
 0x342   : > { %4416 = vmatpush3.bf16.msra.mxu1 %v4594_v7 }
 0x343   : > { %4417 = vmatprep.subr.bf16.mxu1 %v4595_v54 }
 0x346   : > { %4418 = vmatpush3.bf16.msra.mxu1 %v4595_v54  ;;  %v3090_v54 = vld [vmem:[#allocation4 + $0xa0] sm:$0xff] }
 0x347   : > { %4419 = vmatprep.subr.bf16.mxu1 %v4596_v13 }
 0x34a   : > { %4420 = vmatpush3.bf16.msra.mxu1 %v4596_v13  ;;  %v3091_v13 = vld [vmem:[#allocation4 + $0xa8] sm:$0xff] }
 0x34b   : > { %4421 = vmatprep.subr.bf16.mxu1 %v4597_v41 }
 0x34e   : > { %4422 = vmatpush3.bf16.msra.mxu1 %v4597_v41 }
 0x414   : > { %v2973_v20 = vpop.f32.mrb[32].mxu1 }
 0x415   : > { %v2974_v11 = vadd.f32 %v2973_v20, %v2903_v42  ;;  %v4409_v51 = vpop.f32.mrb[33].mxu1  ;;  %v3086_v42 = vld [vmem:[#allocation4 + $0x80] sm:$0xff]  ;;  %v3087_v20 = vld [vmem:[#allocation4 + $0x88] sm:$0xff] }
 0x417   : > { %v4181_v0 = vmul.f32 -1.442695, %v2974_v11 }
 0x419   : > { %4983 = vpow2.f32 %v4181_v0 }
 0x423   : > { %v4984_v30 = vpop.eup %4983 }
 0x424   : > { %v2980_v5 = vadd.f32 1.0, %v4984_v30 }
 0x426   : > { %4985 = vrcp.f32 %v2980_v5  ;;  %v3088_v5 = vld [vmem:[#allocation4 + $0x90] sm:$0xff] }
 0x430   : > { %v4986_v15 = vpop.eup %4985 }
 0x431   : > { %v2983_v31 = vmul.f32 %v4986_v15, %v2974_v11  ;;  %v3089_v15 = vld [vmem:[#allocation4 + $0x98] sm:$0xff] }
 0x433   : > { %4413 = vmatmul.mubr.msk.f32.vlgmr.msra.gmra.mrb[32].mxu0 %vm2986_vm8, %v2983_v31 }
 0x506   : > { %v3060_v28 = vpop.f32.mrb[32].mxu0 }
 0x507   : > { %v3061_v2 = vadd.f32 %v3060_v28, %v2985_v36  ;;  %v4414_v38 = vpop.f32.mrb[33].mxu0 }
 0x508   : > { %v3092_v38 = vld [vmem:[#allocation4 + $0xb0] sm:$0xff] }
 0x509   : > { %v4184_v61 = vmul.f32 -1.442695, %v3061_v2 }
 0x50b   : > { %4987 = vpow2.f32 %v4184_v61  ;;  %v3093_v61 = vld [vmem:[#allocation4 + $0xb8] sm:$0xff] }
 0x515   : > { %v4988_v59 = vpop.eup %4987 }
 0x516   : > { %v3067_v6 = vadd.f32 1.0, %v4988_v59 }
 0x518   : > { %4989 = vrcp.f32 %v3067_v6 }
 0x522   : > { %v4990_v16 = vpop.eup %4989 }
 0x523   : > { %v6903_v3 = vrot.slane %v4990_v16, %v7380_v8  ;;  %v3094_v16 = vld [vmem:[#allocation4 + $0xc0] sm:$0xff]  ;;  %v3095_v8 = vld [vmem:[#allocation4 + $0xc8] sm:$0xff] }
 0x525   : > { %v3106_v50 = vmul.f32 %v6903_v3, %v3070_v37  ;;  %v3107_v56 = vmul.f32 %v6903_v3, %v3071_v43  ;;  %v3108_v26 = vmul.f32 %v6903_v3, %v3072_v40  ;;  %v3109_v4 = vmul.f32 %v6903_v3, %v3073_v45 }
 0x526   : > { %v3110_v47 = vmul.f32 %v6903_v3, %v3074_v9  ;;  %v3111_v29 = vmul.f32 %v6903_v3, %v3075_v60  ;;  %v3112_v1 = vmul.f32 %v6903_v3, %v3076_v14  ;;  %v3113_v32 = vmul.f32 %v6903_v3, %v3077_v52  ;;  %v3098_v9 = vld [vmem:[#allocation4 + $0xe0] sm:$0xff]  ;;  %v3099_v60 = vld [vmem:[#allocation4 + $0xe8] sm:$0xff]  ;;  %v3101_v14 = vld [vmem:[#allocation4 + $0xf8] sm:$0xff] }
 0x527   : > { %v3138_v63 = vpack.c.bf16 %v3107_v56, %v3106_v50  ;;  %v3139_v46 = vpack.c.bf16 %v3109_v4, %v3108_v26  ;;  %v3114_v18 = vmul.f32 %v6903_v3, %v3078_v33  ;;  %v3115_v17 = vmul.f32 %v6903_v3, %v3079_v25  ;;  %v3096_v50 = vld [vmem:[#allocation4 + $0xd0] sm:$0xff]  ;;  %v3097_v56 = vld [vmem:[#allocation4 + $0xd8] sm:$0xff] }
 0x528   : > { %v3140_v49 = vpack.c.bf16 %v3111_v29, %v3110_v47  ;;  %v3141_v39 = vpack.c.bf16 %v3113_v32, %v3112_v1  ;;  %v3116_v21 = vmul.f32 %v6903_v3, %v3080_v10  ;;  %v3117_v53 = vmul.f32 %v6903_v3, %v3081_v48  ;;  %v4598_v33 = vld [vmem:[%s7300_s13] sm:$0xff]  }
 0x529   : > { %4423 = vmatprep.mubr.msk.bf16.mxu1 %vm1555_vm4, %v3138_v63  ;;  %v3142_v57 = vpack.c.bf16 %v3115_v17, %v3114_v18  ;;  %v3118_v23 = vmul.f32 %v6903_v3, %v3082_v35  ;;  %v3119_v27 = vmul.f32 %v6903_v3, %v3083_v24  ;;  %v3120_v12 = vmul.f32 %v6903_v3, %v3084_v62  ;;  %v6960_v25 = vld [vmem:[%s7299_s12] ss:$0 sm:$0xff] }
 0x52a   : > { %4424 = vmatmul.mubr.msk.bf16.vlgmr.msra.gmra.mrb[36].mxu1 %vm1555_vm4, %v3139_v46  ;;  %v3143_v58 = vpack.c.bf16 %v3117_v53, %v3116_v21  ;;  %v3121_v22 = vmul.f32 %v6903_v3, %v3085_v44  ;;  %v3122_v11 = vmul.f32 %v6903_v3, %v3086_v42  ;;  %v3123_v51 = vmul.f32 %v6903_v3, %v3087_v20  ;;  %v3404_v21 = vld [vmem:[#allocation2 + $0x10] sm:$0xff]  ;;  %v3405_v53 = vld [vmem:[#allocation2 + $0x18] sm:$0xff] }
 0x52b   : > { %4427 = vmatprep.mubr.msk.bf16.mxu1 %vm1555_vm4, %v3140_v49  ;;  %v3144_v55 = vpack.c.bf16 %v3119_v27, %v3118_v23  ;;  %v3124_v31 = vmul.f32 %v6903_v3, %v3088_v5  ;;  %v3125_v7 = vmul.f32 %v6903_v3, %v3089_v15  ;;  %v3126_v41 = vmul.f32 %v6903_v3, %v3090_v54  ;;  %v3100_v49 = vld [vmem:[#allocation4 + $0xf0] sm:$0xff]  ;;  %v3408_v5 = vld [vmem:[#allocation2 + $0x30] sm:$0xff]  ;;  %v3409_v15 = vld [vmem:[#allocation2 + $0x38] sm:$0xff] }
 0x52c   : > { %v3145_v0 = vpack.c.bf16 %v3121_v22, %v3120_v12  ;;  %v3146_v30 = vpack.c.bf16 %v3123_v51, %v3122_v11  ;;  %v3127_v36 = vmul.f32 %v6903_v3, %v3091_v13  ;;  %v3128_v59 = vmul.f32 %v6903_v3, %v3092_v38  ;;  %4455 = vmatprep.subr.bf16.mxu0 %v4598_v33  ;;  %v3402_v23 = vld [vmem:[#allocation2] sm:$0xff] }
 0x52d   : > { %v3147_v28 = vpack.c.bf16 %v3125_v7, %v3124_v31  ;;  %v3129_v6 = vmul.f32 %v6903_v3, %v3093_v61  ;;  %v3130_v37 = vmul.f32 %v6903_v3, %v3094_v16  ;;  %v3131_v43 = vmul.f32 %v6903_v3, %v3095_v8  ;;  %4456 = vmatpush3.bf16.msra.mxu0 %v4598_v33  ;;  %v3406_v54 = vld [vmem:[#allocation2 + $0x20] sm:$0xff] }
 0x52e   : > { %v3148_v2 = vpack.c.bf16 %v3127_v36, %v3126_v41  ;;  %v3132_v26 = vmul.f32 %v6903_v3, %v3096_v50  ;;  %v3133_v4 = vmul.f32 %v6903_v3, %v3097_v56  ;;  %v3134_v47 = vmul.f32 %v6903_v3, %v3098_v9  ;;  %4520 = vmatprep.subr.bf16.mxu0 %v5187_v34  ;;  %v3407_v41 = vld [vmem:[#allocation2 + $0x28] sm:$0xff] }
 0x52f   : > { %v3149_v40 = vpack.c.bf16 %v3129_v6, %v3128_v59  ;;  %v3150_v45 = vpack.c.bf16 %v3131_v43, %v3130_v37  ;;  %v3135_v29 = vmul.f32 %v6903_v3, %v3099_v60  ;;  %v3136_v52 = vmul.f32 %v6903_v3, %v3100_v49  ;;  %v3411_v9 = vld [vmem:[#allocation2 + $0x48] sm:$0xff] }
 0x530   : > { %v3151_v63 = vpack.c.bf16 %v3133_v4, %v3132_v26  ;;  %v3137_v1 = vmul.f32 %v6903_v3, %v3101_v14  ;;  %v3410_v26 = vld [vmem:[#allocation2 + $0x40] sm:$0xff] }
 0x531   : > { %v3152_v46 = vpack.c.bf16 %v3135_v29, %v3134_v47 }
 0x532   : > { %4428 = vmatmul.mubr.msk.bf16.gmra.mrb[40].mxu1 %vm1555_vm4, %v3141_v39  ;;  %v3153_v32 = vpack.c.bf16 %v3137_v1, %v3136_v52 }
 0x533   : > { %4431 = vmatprep.mubr.msk.bf16.mxu1 %vm1555_vm4, %v3142_v57 }
 0x53a   : > { %4432 = vmatmul.mubr.msk.bf16.gmra.mrb[44].mxu1 %vm1555_vm4, %v3143_v58  ;;  %v3403_v58 = vld [vmem:[#allocation2 + $0x8] sm:$0xff] }
 0x53b   : > { %4435 = vmatprep.mubr.msk.bf16.mxu1 %vm1555_vm4, %v3144_v55 }
 0x542   : > { %4436 = vmatmul.mubr.msk.bf16.gmra.mrb[48].mxu1 %vm1555_vm4, %v3145_v0 }
 0x543   : > { %4439 = vmatprep.mubr.msk.bf16.mxu1 %vm1555_vm4, %v3146_v30 }
 0x54a   : > { %4440 = vmatmul.mubr.msk.bf16.gmra.mrb[52].mxu1 %vm1555_vm4, %v3147_v28 }
 0x54b   : > { %4443 = vmatprep.mubr.msk.bf16.mxu1 %vm1555_vm4, %v3148_v2 }
 0x552   : > { %4444 = vmatmul.mubr.msk.bf16.gmra.mrb[56].mxu1 %vm1555_vm4, %v3149_v40  ;;  %v3412_v40 = vld [vmem:[#allocation2 + $0x50] sm:$0xff] }
 0x553   : > { %4447 = vmatprep.mubr.msk.bf16.mxu1 %vm1555_vm4, %v3150_v45  ;;  %v3413_v45 = vld [vmem:[#allocation2 + $0x58] sm:$0xff] }
 0x55a   : > { %4448 = vmatmul.mubr.msk.bf16.gmra.mrb[60].mxu1 %vm1555_vm4, %v3151_v63 }
 0x55b   : > { %4451 = vmatprep.mubr.msk.bf16.mxu1 %vm1555_vm4, %v3152_v46 }
 0x562   : > { %4452 = vmatmul.mubr.msk.bf16.gmra.mrb[64].mxu1 %vm1555_vm4, %v3153_v32 }
 0x5fd   : > { %v4425_v18 = vpop.f32.mrb[36].mxu1 }
 0x5fe   : > { %v3284_v17 = vadd.f32 %v4425_v18, %v6960_v25  ;;  %v3275_v3 = vpop.f32.mrb[37].mxu1  ;;  %v3416_v18 = vld [vmem:[#allocation2 + $0x70] sm:$0xff] }
 0x5ff   : > { %v3276_v39 = vadd.f32 %v6960_v25, %v3275_v3  ;;  %v4426_v57 = vpop.f32.mrb[38].mxu1 }
 0x600   : > { %v3287_v10 = vadd.f32 %v4426_v57, %v6960_v25  ;;  %v3278_v48 = vpop.f32.mrb[39].mxu1  ;;  %v3436_v24 = vadd.f32 %v3404_v21, %v3284_v17  ;;  %v3417_v17 = vld [vmem:[#allocation2 + $0x78] sm:$0xff]  ;;  %v3414_v57 = vld [vmem:[#allocation2 + $0x60] sm:$0xff] }
 0x601   : > { %v3279_v35 = vadd.f32 %v6960_v25, %v3278_v48  ;;  %v3434_v55 = vadd.f32 %v3402_v23, %v3276_v39  ;;  %v3415_v48 = vld [vmem:[#allocation2 + $0x68] sm:$0xff] }
 0x602   : > { %v3437_v27 = vadd.f32 %v3405_v53, %v3287_v10 }
 0x603   : > { %v3435_v62 = vadd.f32 %v3403_v58, %v3279_v35 }
 0x604   : > { %v3467_v44 = vpack.c.bf16 %v3437_v27, %v3436_v24 }
 0x605   : > { %v3466_v12 = vpack.c.bf16 %v3435_v62, %v3434_v55  ;;  %v4429_v22 = vpop.f32.mrb[40].mxu1 }
 0x606   : > { %v3300_v42 = vadd.f32 %v4429_v22, %v6960_v25  ;;  %v3291_v20 = vpop.f32.mrb[41].mxu1  ;;  %v3420_v22 = vld [vmem:[#allocation2 + $0x90] sm:$0xff] }
 0x607   : > { %v3292_v11 = vadd.f32 %v6960_v25, %v3291_v20  ;;  %v4430_v51 = vpop.f32.mrb[42].mxu1  ;;  %4457 = vmatprep.mubr.msk.bf16.mxu0 %vm1090_vm3, %v3466_v12 }
 0x608   : > { %v3303_v0 = vadd.f32 %v4430_v51, %v6960_v25  ;;  %v3294_v30 = vpop.f32.mrb[43].mxu1  ;;  %4458 = vmatmul.mubr.msk.bf16.vlgmr.msra.gmra.mrb[36].mxu0 %vm1090_vm3, %v3467_v44  ;;  %v3440_v7 = vadd.f32 %v3408_v5, %v3300_v42  ;;  %v3421_v42 = vld [vmem:[#allocation2 + $0x98] sm:$0xff]  ;;  %v3418_v51 = vld [vmem:[#allocation2 + $0x80] sm:$0xff] }
 0x609   : > { %v3295_v31 = vadd.f32 %v6960_v25, %v3294_v30  ;;  %v3438_v36 = vadd.f32 %v3406_v54, %v3292_v11  ;;  %v3419_v30 = vld [vmem:[#allocation2 + $0x88] sm:$0xff] }
 0x60a   : > { %v3441_v13 = vadd.f32 %v3409_v15, %v3303_v0 }
 0x60b   : > { %v3439_v28 = vadd.f32 %v3407_v41, %v3295_v31 }
 0x60c   : > { %v3469_v2 = vpack.c.bf16 %v3441_v13, %v3440_v7 }
 0x60d   : > { %v3468_v38 = vpack.c.bf16 %v3439_v28, %v3438_v36  ;;  %v4433_v61 = vpop.f32.mrb[44].mxu1 }
 0x60e   : > { %v3316_v59 = vadd.f32 %v4433_v61, %v6960_v25  ;;  %v3307_v6 = vpop.f32.mrb[45].mxu1  ;;  %v3424_v61 = vld [vmem:[#allocation2 + $0xb0] sm:$0xff] }
 0x60f   : > { %v3308_v16 = vadd.f32 %v6960_v25, %v3307_v6  ;;  %v4434_v8 = vpop.f32.mrb[46].mxu1  ;;  %4461 = vmatprep.mubr.msk.bf16.mxu0 %vm1090_vm3, %v3468_v38 }
 0x610   : > { %v3319_v37 = vadd.f32 %v4434_v8, %v6960_v25  ;;  %v3310_v43 = vpop.f32.mrb[47].mxu1  ;;  %4462 = vmatmul.mubr.msk.bf16.gmra.mrb[40].mxu0 %vm1090_vm3, %v3469_v2  ;;  %v3444_v56 = vadd.f32 %v3412_v40, %v3316_v59  ;;  %v3425_v59 = vld [vmem:[#allocation2 + $0xb8] sm:$0xff]  ;;  %v3422_v8 = vld [vmem:[#allocation2 + $0xa0] sm:$0xff] }
 0x611   : > { %v3311_v50 = vadd.f32 %v6960_v25, %v3310_v43  ;;  %v3442_v60 = vadd.f32 %v3410_v26, %v3308_v16  ;;  %v3423_v43 = vld [vmem:[#allocation2 + $0xa8] sm:$0xff] }
 0x612   : > { %v3445_v4 = vadd.f32 %v3413_v45, %v3319_v37 }
 0x613   : > { %v3443_v47 = vadd.f32 %v3411_v9, %v3311_v50 }
 0x614   : > { %v3471_v29 = vpack.c.bf16 %v3445_v4, %v3444_v56 }
 0x615   : > { %v3470_v63 = vpack.c.bf16 %v3443_v47, %v3442_v60  ;;  %v4437_v46 = vpop.f32.mrb[48].mxu1 }
 0x616   : > { %v3332_v49 = vadd.f32 %v4437_v46, %v6960_v25  ;;  %v3323_v14 = vpop.f32.mrb[49].mxu1  ;;  %v3428_v46 = vld [vmem:[#allocation2 + $0xd0] sm:$0xff] }
 0x617   : > { %v3324_v52 = vadd.f32 %v6960_v25, %v3323_v14  ;;  %v4438_v1 = vpop.f32.mrb[50].mxu1  ;;  %4465 = vmatprep.mubr.msk.bf16.mxu0 %vm1090_vm3, %v3470_v63 }
 0x618   : > { %v3335_v32 = vadd.f32 %v4438_v1, %v6960_v25  ;;  %v3326_v33 = vpop.f32.mrb[51].mxu1  ;;  %4466 = vmatmul.mubr.msk.bf16.gmra.mrb[44].mxu0 %vm1090_vm3, %v3471_v29  ;;  %v3448_v39 = vadd.f32 %v3416_v18, %v3332_v49  ;;  %v3429_v49 = vld [vmem:[#allocation2 + $0xd8] sm:$0xff]  ;;  %v3426_v1 = vld [vmem:[#allocation2 + $0xc0] sm:$0xff] }
 0x619   : > { %v3327_v3 = vadd.f32 %v6960_v25, %v3326_v33  ;;  %v3446_v21 = vadd.f32 %v3414_v57, %v3324_v52  ;;  %v3427_v33 = vld [vmem:[#allocation2 + $0xc8] sm:$0xff] }
 0x61a   : > { %v3449_v10 = vadd.f32 %v3417_v17, %v3335_v32 }
 0x61b   : > { %v3447_v53 = vadd.f32 %v3415_v48, %v3327_v3 }
 0x61c   : > { %v3473_v35 = vpack.c.bf16 %v3449_v10, %v3448_v39 }
 0x61d   : > { %v3472_v24 = vpack.c.bf16 %v3447_v53, %v3446_v21  ;;  %v4441_v23 = vpop.f32.mrb[52].mxu1 }
 0x61e   : > { %v3348_v27 = vadd.f32 %v4441_v23, %v6960_v25  ;;  %v3339_v58 = vpop.f32.mrb[53].mxu1  ;;  %v3432_v23 = vld [vmem:[#allocation2 + $0xf0] sm:$0xff] }
 0x61f   : > { %v3340_v55 = vadd.f32 %v6960_v25, %v3339_v58  ;;  %v4442_v62 = vpop.f32.mrb[54].mxu1  ;;  %4469 = vmatprep.mubr.msk.bf16.mxu0 %vm1090_vm3, %v3472_v24 }
 0x620   : > { %v3351_v44 = vadd.f32 %v4442_v62, %v6960_v25  ;;  %v3342_v12 = vpop.f32.mrb[55].mxu1  ;;  %4470 = vmatmul.mubr.msk.bf16.gmra.mrb[48].mxu0 %vm1090_vm3, %v3473_v35  ;;  %v3452_v11 = vadd.f32 %v3420_v22, %v3348_v27  ;;  %v3433_v27 = vld [vmem:[#allocation2 + $0xf8] sm:$0xff]  ;;  %v3430_v62 = vld [vmem:[#allocation2 + $0xe0] sm:$0xff] }
 0x621   : > { %v3343_v20 = vadd.f32 %v6960_v25, %v3342_v12  ;;  %v3450_v5 = vadd.f32 %v3418_v51, %v3340_v55  ;;  %v3431_v12 = vld [vmem:[#allocation2 + $0xe8] sm:$0xff]  ;;  %v3968_v51 = vld [vmem:[%s7302_s15] sm:$0xff] }
 0x622   : > { %v3453_v0 = vadd.f32 %v3421_v42, %v3351_v44 }
 0x623   : > { %v3451_v15 = vadd.f32 %v3419_v30, %v3343_v20  ;;  %v3970_v30 = vld [vmem:[%s7302_s15 + $0x10] sm:$0xff] }
 0x624   : > { %v3475_v31 = vpack.c.bf16 %v3453_v0, %v3452_v11 }
 0x625   : > { %v3474_v7 = vpack.c.bf16 %v3451_v15, %v3450_v5  ;;  %v4445_v54 = vpop.f32.mrb[56].mxu1  ;;  %v3972_v15 = vld [vmem:[%s7302_s15 + $0x20] sm:$0xff] }
 0x626   : > { %v3364_v13 = vadd.f32 %v4445_v54, %v6960_v25  ;;  %v3355_v41 = vpop.f32.mrb[57].mxu1  ;;  %v3974_v54 = vld [vmem:[%s7302_s15 + $0x30] sm:$0xff] }
 0x627   : > { %v3356_v36 = vadd.f32 %v6960_v25, %v3355_v41  ;;  %v4446_v28 = vpop.f32.mrb[58].mxu1  ;;  %4473 = vmatprep.mubr.msk.bf16.mxu0 %vm1090_vm3, %v3474_v7 }
 0x628   : > { %v3367_v2 = vadd.f32 %v4446_v28, %v6960_v25  ;;  %v3358_v38 = vpop.f32.mrb[59].mxu1  ;;  %4474 = vmatmul.mubr.msk.bf16.gmra.mrb[52].mxu0 %vm1090_vm3, %v3475_v31  ;;  %v3456_v16 = vadd.f32 %v3424_v61, %v3364_v13  ;;  %v3973_v31 = vld [vmem:[%s7302_s15 + $0x28] sm:$0xff]  ;;  %v3975_v13 = vld [vmem:[%s7302_s15 + $0x38] sm:$0xff] }
 0x629   : > { %v3359_v6 = vadd.f32 %v6960_v25, %v3358_v38  ;;  %v3454_v40 = vadd.f32 %v3422_v8, %v3356_v36  ;;  %v4527_v7 = vpack.c.bf16 %v3973_v31, %v3972_v15  ;;  %v4530_v41 = vpack.c.bf16 %v3975_v13, %v3974_v54  ;;  %v7042_v36 = vld [vmem:[%s7301_s14] ss:$0 sm:$0xff] }
 0x62a   : > { %v3457_v37 = vadd.f32 %v3425_v59, %v3367_v2 }
 0x62b   : > { %v3455_v45 = vadd.f32 %v3423_v43, %v3359_v6 }
 0x62c   : > { %v3477_v50 = vpack.c.bf16 %v3457_v37, %v3456_v16 }
 0x62d   : > { %v3476_v56 = vpack.c.bf16 %v3455_v45, %v3454_v40  ;;  %v4449_v26 = vpop.f32.mrb[60].mxu1 }
 0x62e   : > { %v3380_v4 = vadd.f32 %v4449_v26, %v6960_v25  ;;  %v3371_v9 = vpop.f32.mrb[61].mxu1 }
 0x62f   : > { %v3372_v60 = vadd.f32 %v6960_v25, %v3371_v9  ;;  %v4450_v47 = vpop.f32.mrb[62].mxu1  ;;  %4477 = vmatprep.mubr.msk.bf16.mxu0 %vm1090_vm3, %v3476_v56 }
 0x630   : > { %v3383_v29 = vadd.f32 %v4450_v47, %v6960_v25  ;;  %v3374_v63 = vpop.f32.mrb[63].mxu1  ;;  %4478 = vmatmul.mubr.msk.bf16.gmra.mrb[56].mxu0 %vm1090_vm3, %v3477_v50  ;;  %v3460_v52 = vadd.f32 %v3428_v46, %v3380_v4 }
 0x631   : > { %v3375_v14 = vadd.f32 %v6960_v25, %v3374_v63  ;;  %v3458_v18 = vadd.f32 %v3426_v1, %v3372_v60 }
 0x632   : > { %v3461_v32 = vadd.f32 %v3429_v49, %v3383_v29 }
 0x633   : > { %v3459_v17 = vadd.f32 %v3427_v33, %v3375_v14 }
 0x634   : > { %v3479_v3 = vpack.c.bf16 %v3461_v32, %v3460_v52 }
 0x635   : > { %v3478_v39 = vpack.c.bf16 %v3459_v17, %v3458_v18  ;;  %v4453_v57 = vpop.f32.mrb[64].mxu1 }
 0x636   : > { %v3396_v10 = vadd.f32 %v4453_v57, %v6960_v25  ;;  %v3387_v48 = vpop.f32.mrb[65].mxu1 }
 0x637   : > { %v3388_v21 = vadd.f32 %v6960_v25, %v3387_v48  ;;  %v4454_v53 = vpop.f32.mrb[66].mxu1  ;;  %4481 = vmatprep.mubr.msk.bf16.mxu0 %vm1090_vm3, %v3478_v39 }
 0x638   : > { %v3399_v35 = vadd.f32 %v4454_v53, %v6960_v25  ;;  %v3390_v24 = vpop.f32.mrb[67].mxu1  ;;  %4482 = vmatmul.mubr.msk.bf16.gmra.mrb[60].mxu0 %vm1090_vm3, %v3479_v3  ;;  %v3464_v55 = vadd.f32 %v3432_v23, %v3396_v10 }
 0x639   : > { %v3391_v58 = vadd.f32 %v6960_v25, %v3390_v24  ;;  %v3462_v22 = vadd.f32 %v3430_v62, %v3388_v21  ;;  %v3969_v25 = vld [vmem:[%s7302_s15 + $0x8] sm:$0xff] }
 0x63a   : > { %v3465_v44 = vadd.f32 %v3433_v27, %v3399_v35  ;;  %v4521_v0 = vpack.c.bf16 %v3969_v25, %v3968_v51 }
 0x63b   : > { %v3463_v42 = vadd.f32 %v3431_v12, %v3391_v58 }
 0x63c   : > { %v3481_v20 = vpack.c.bf16 %v3465_v44, %v3464_v55  ;;  %4522 = vmatpush3.bf16.msra.mxu0 %v4521_v0 }
 0x63d   : > { %v3480_v11 = vpack.c.bf16 %v3463_v42, %v3462_v22  ;;  %4523 = vmatprep.subr.bf16.mxu0 %v5187_v34 }
 0x63f   : > { %4485 = vmatprep.mubr.msk.bf16.mxu0 %vm1090_vm3, %v3480_v11 }
 0x640   : > { %4486 = vmatmul.mubr.msk.bf16.gmra.mrb[64].mxu0 %vm1090_vm3, %v3481_v20 }
 0x641   : > { %4505 = vmatprep.mubr.msk.f32.mxu0 %vm5188_vm6, %v7378_v19  ;;  %v3971_v19 = vld [vmem:[%s7302_s15 + $0x18] sm:$0xff] }
 0x642   : > { %v4524_v5 = vpack.c.bf16 %v3971_v19, %v3970_v30 }
 0x644   : > { %4525 = vmatpush3.bf16.msra.mxu0 %v4524_v5 }
 0x645   : > { %4526 = vmatprep.subr.bf16.mxu0 %v5187_v34 }
 0x648   : > { %4528 = vmatpush3.bf16.msra.mxu0 %v4527_v7 }
 0x649   : > { %4529 = vmatprep.subr.bf16.mxu0 %v5187_v34 }
 0x64c   : > { %4531 = vmatpush3.bf16.msra.mxu0 %v4530_v41 }
 0x6db   : > { %v4459_v28 = vpop.f32.mrb[36].mxu0 }
 0x6dc   : > { %v7045_v2 = vadd.f32 %v4459_v28, %v7042_v36  ;;  %v3579_v34 = vpop.f32.mrb[37].mxu0 }
 0x6dd   : > { %v7048_v38 = vadd.f32 %v7042_v36, %v3579_v34  ;;  %v4460_v61 = vpop.f32.mrb[38].mxu0 }
 0x6de   : > { %v3708_v59 = vsub.f32 0.0, %v7045_v2  ;;  %v7052_v6 = vadd.f32 %v4460_v61, %v7042_v36  ;;  %v3582_v16 = vpop.f32.mrb[39].mxu0 }
 0x6df   : > { %v3706_v8 = vsub.f32 0.0, %v7048_v38  ;;  %v7056_v37 = vadd.f32 %v7042_v36, %v3582_v16 }
 0x6e0   : > { %v3742_v43 = vmul.f32 1.442695, %v3708_v59  ;;  %v3709_v40 = vsub.f32 0.0, %v7052_v6 }
 0x6e1   : > { %v3738_v45 = vmul.f32 1.442695, %v3706_v8  ;;  %v3707_v50 = vsub.f32 0.0, %v7056_v37 }
 0x6e2   : > { %4991 = vpow2.f32 %v3742_v43  ;;  %v3744_v56 = vmul.f32 1.442695, %v3709_v40 }
 0x6e3   : > { %4993 = vpow2.f32 %v3738_v45  ;;  %v3740_v26 = vmul.f32 1.442695, %v3707_v50  ;;  %v4463_v4 = vpop.f32.mrb[40].mxu0 }
 0x6e4   : > { %4995 = vpow2.f32 %v3744_v56  ;;  %v7061_v9 = vadd.f32 %v4463_v4, %v7042_v36  ;;  %v3595_v60 = vpop.f32.mrb[41].mxu0 }
 0x6e5   : > { %4997 = vpow2.f32 %v3740_v26  ;;  %v7064_v47 = vadd.f32 %v7042_v36, %v3595_v60  ;;  %v4464_v29 = vpop.f32.mrb[42].mxu0 }
 0x6e6   : > { %v3712_v63 = vsub.f32 0.0, %v7061_v9  ;;  %v7068_v46 = vadd.f32 %v4464_v29, %v7042_v36  ;;  %v3598_v49 = vpop.f32.mrb[43].mxu0 }
 0x6e7   : > { %v3710_v14 = vsub.f32 0.0, %v7064_v47  ;;  %v7072_v52 = vadd.f32 %v7042_v36, %v3598_v49 }
 0x6e8   : > { %v3750_v1 = vmul.f32 1.442695, %v3712_v63  ;;  %v3713_v32 = vsub.f32 0.0, %v7068_v46 }
 0x6e9   : > { %v3746_v33 = vmul.f32 1.442695, %v3710_v14  ;;  %v3711_v18 = vsub.f32 0.0, %v7072_v52 }
 0x6ea   : > { %4999 = vpow2.f32 %v3750_v1  ;;  %v3752_v17 = vmul.f32 1.442695, %v3713_v32 }
 0x6eb   : > { %5001 = vpow2.f32 %v3746_v33  ;;  %v3748_v3 = vmul.f32 1.442695, %v3711_v18  ;;  %v4467_v39 = vpop.f32.mrb[44].mxu0 }
 0x6ec   : > { %v4992_v57 = vpop.eup %4991  ;;  %5003 = vpow2.f32 %v3752_v17  ;;  %v7077_v10 = vadd.f32 %v4467_v39, %v7042_v36  ;;  %v3611_v48 = vpop.f32.mrb[45].mxu0 }
 0x6ed   : > { %v4994_v21 = vpop.eup %4993  ;;  %v3804_v53 = vadd.f32 1.0, %v4992_v57  ;;  %5005 = vpow2.f32 %v3748_v3  ;;  %v7080_v35 = vadd.f32 %v7042_v36, %v3611_v48  ;;  %v4468_v24 = vpop.f32.mrb[46].mxu0 }
 0x6ee   : > { %v4996_v23 = vpop.eup %4995  ;;  %v3802_v27 = vadd.f32 1.0, %v4994_v21  ;;  %v3716_v58 = vsub.f32 0.0, %v7077_v10  ;;  %v7084_v55 = vadd.f32 %v4468_v24, %v7042_v36  ;;  %v3614_v62 = vpop.f32.mrb[47].mxu0 }
 0x6ef   : > { %v4998_v44 = vpop.eup %4997  ;;  %5007 = vrcp.f32 %v3804_v53  ;;  %v3805_v12 = vadd.f32 1.0, %v4996_v23  ;;  %v3714_v22 = vsub.f32 0.0, %v7080_v35  ;;  %v7088_v42 = vadd.f32 %v7042_v36, %v3614_v62 }
 0x6f0   : > { %5009 = vrcp.f32 %v3802_v27  ;;  %v3803_v20 = vadd.f32 1.0, %v4998_v44  ;;  %v3758_v11 = vmul.f32 1.442695, %v3716_v58  ;;  %v3717_v51 = vsub.f32 0.0, %v7084_v55 }
 0x6f1   : > { %5011 = vrcp.f32 %v3805_v12  ;;  %v3754_v25 = vmul.f32 1.442695, %v3714_v22  ;;  %v3715_v0 = vsub.f32 0.0, %v7088_v42 }
 0x6f2   : > { %5013 = vrcp.f32 %v3803_v20  ;;  %v3760_v30 = vmul.f32 1.442695, %v3717_v51 }
 0x6f3   : > { %5015 = vpow2.f32 %v3758_v11  ;;  %v3756_v19 = vmul.f32 1.442695, %v3715_v0  ;;  %v4471_v5 = vpop.f32.mrb[48].mxu0 }
 0x6f4   : > { %v5000_v15 = vpop.eup %4999  ;;  %5017 = vpow2.f32 %v3754_v25  ;;  %v7093_v31 = vadd.f32 %v4471_v5, %v7042_v36  ;;  %v3627_v7 = vpop.f32.mrb[49].mxu0 }
 0x6f5   : > { %v5002_v54 = vpop.eup %5001  ;;  %v3808_v13 = vadd.f32 1.0, %v5000_v15  ;;  %5019 = vpow2.f32 %v3760_v30  ;;  %v7096_v41 = vadd.f32 %v7042_v36, %v3627_v7  ;;  %v4472_v28 = vpop.f32.mrb[50].mxu0 }
 0x6f6   : > { %v5004_v34 = vpop.eup %5003  ;;  %v3806_v61 = vadd.f32 1.0, %v5002_v54  ;;  %5021 = vpow2.f32 %v3756_v19  ;;  %v3720_v59 = vsub.f32 0.0, %v7093_v31  ;;  %v7100_v16 = vadd.f32 %v4472_v28, %v7042_v36  ;;  %v3630_v8 = vpop.f32.mrb[51].mxu0 }
 0x6f7   : > { %v5006_v43 = vpop.eup %5005  ;;  %5023 = vrcp.f32 %v3808_v13  ;;  %v3809_v40 = vadd.f32 1.0, %v5004_v34  ;;  %v3718_v45 = vsub.f32 0.0, %v7096_v41  ;;  %v7104_v50 = vadd.f32 %v7042_v36, %v3630_v8 }
 0x6f8   : > { %5025 = vrcp.f32 %v3806_v61  ;;  %v3807_v56 = vadd.f32 1.0, %v5006_v43  ;;  %v3766_v26 = vmul.f32 1.442695, %v3720_v59  ;;  %v3721_v4 = vsub.f32 0.0, %v7100_v16 }
 0x6f9   : > { %v5008_v60 = vpop.eup %5007  ;;  %5027 = vrcp.f32 %v3809_v40  ;;  %v3762_v29 = vmul.f32 1.442695, %v3718_v45  ;;  %v3719_v63 = vsub.f32 0.0, %v7104_v50 }
 0x6fa   : > { %v5010_v49 = vpop.eup %5009  ;;  %v3868_v14 = vmul.f32 %v5008_v60, %v7045_v2  ;;  %5029 = vrcp.f32 %v3807_v56  ;;  %v3768_v1 = vmul.f32 1.442695, %v3721_v4 }
 0x6fb   : > { %v5012_v32 = vpop.eup %5011  ;;  %v3866_v33 = vmul.f32 %v5010_v49, %v7048_v38  ;;  %5031 = vpow2.f32 %v3766_v26  ;;  %v3764_v18 = vmul.f32 1.442695, %v3719_v63  ;;  %v4475_v17 = vpop.f32.mrb[52].mxu0 }
 0x6fc   : > { %v5014_v3 = vpop.eup %5013  ;;  %v3901_v39 = vsel %vm1555_vm4, %v3868_v14, 0.0  ;;  %5033 = vpow2.f32 %v3762_v29  ;;  %v7112_v57 = vadd.f32 %v4475_v17, %v7042_v36  ;;  %v3643_v48 = vpop.f32.mrb[53].mxu0  ;;  %v3869_v53 = vmul.f32 %v5012_v32, %v7052_v6 }
 0x6fd   : > { %v5016_v21 = vpop.eup %5015  ;;  %v3867_v2 = vmul.f32 %v5014_v3, %v7056_v37  ;;  %5035 = vpow2.f32 %v3768_v1  ;;  %v7117_v24 = vadd.f32 %v7042_v36, %v3643_v48  ;;  %v4476_v38 = vpop.f32.mrb[54].mxu0  ;;  %v3898_v27 = vsel %vm1555_vm4, %v3866_v33, 0.0 }
 0x6fe   : > { %v5018_v23 = vpop.eup %5017  ;;  %v3812_v58 = vadd.f32 1.0, %v5016_v21  ;;  %5037 = vpow2.f32 %v3764_v18  ;;  %v3724_v62 = vsub.f32 0.0, %v7112_v57  ;;  %v3646_v44 = vpop.f32.mrb[55].mxu0  ;;  %v7124_v37 = vadd.f32 %v4476_v38, %v7042_v36 }
 0x6ff   : > { %v5020_v12 = vpop.eup %5019  ;;  %v3899_v22 = vsel %vm1555_vm4, %v3867_v2, 0.0  ;;  %v3810_v20 = vadd.f32 1.0, %v5018_v23  ;;  %v3722_v6 = vsub.f32 0.0, %v7117_v24  ;;  %v7129_v28 = vadd.f32 %v7042_v36, %v3646_v44 }
 0x700   : > { %v5022_v11 = vpop.eup %5021  ;;  %v3900_v51 = vadd.f32 %v3899_v22, %v3898_v27  ;;  %5039 = vrcp.f32 %v3812_v58  ;;  %v3813_v25 = vadd.f32 1.0, %v5020_v12  ;;  %v3774_v0 = vmul.f32 1.442695, %v3724_v62 }
 0x701   : > { %v5024_v30 = vpop.eup %5023  ;;  %5041 = vrcp.f32 %v3810_v20  ;;  %v3811_v19 = vadd.f32 1.0, %v5022_v11  ;;  %v3770_v5 = vmul.f32 1.442695, %v3722_v6  ;;  %v3725_v15 = vsub.f32 0.0, %v7124_v37 }
 0x702   : > { %v5026_v7 = vpop.eup %5025  ;;  %v3902_v54 = vadd.f32 %v3901_v39, %v3900_v51  ;;  %v3872_v13 = vmul.f32 %v5024_v30, %v7061_v9  ;;  %5043 = vrcp.f32 %v3813_v25  ;;  %v3903_v61 = vsel %vm1555_vm4, %v3869_v53, 0.0 }
 0x703   : > { %v5028_v34 = vpop.eup %5027  ;;  %v3870_v59 = vmul.f32 %v5026_v7, %v7064_v47  ;;  %5045 = vrcp.f32 %v3811_v19  ;;  %v3776_v8 = vmul.f32 1.442695, %v3725_v15  ;;  %v4479_v43 = vpop.f32.mrb[56].mxu0  ;;  %v3723_v29 = vsub.f32 0.0, %v7129_v28 }
 0x704   : > { %v5030_v40 = vpop.eup %5029  ;;  %v3909_v45 = vsel %vm1555_vm4, %v3872_v13, 0.0  ;;  %v3904_v56 = vadd.f32 %v3903_v61, %v3902_v54  ;;  %5047 = vpow2.f32 %v3774_v0  ;;  %v3659_v26 = vpop.f32.mrb[57].mxu0  ;;  %v3873_v14 = vmul.f32 %v5028_v34, %v7068_v46 }
 0x705   : > { %v5032_v4 = vpop.eup %5031  ;;  %v3905_v9 = vsel %vm1555_vm4, %v3870_v59, 0.0  ;;  %v3871_v60 = vmul.f32 %v5030_v40, %v7072_v52  ;;  %5049 = vpow2.f32 %v3770_v5  ;;  %v4480_v63 = vpop.f32.mrb[58].mxu0  ;;  %v3772_v3 = vmul.f32 1.442695, %v3723_v29 }
 0x706   : > { %v5034_v49 = vpop.eup %5033  ;;  %v3906_v47 = vadd.f32 %v3905_v9, %v3904_v56  ;;  %v3816_v1 = vadd.f32 1.0, %v5032_v4  ;;  %5051 = vpow2.f32 %v3776_v8  ;;  %v3662_v32 = vpop.f32.mrb[59].mxu0  ;;  %v7140_v39 = vadd.f32 %v4479_v43, %v7042_v36 }
 0x707   : > { %v5036_v33 = vpop.eup %5035  ;;  %v3907_v18 = vsel %vm1555_vm4, %v3871_v60, 0.0  ;;  %v3814_v17 = vadd.f32 1.0, %v5034_v49  ;;  %v7143_v53 = vadd.f32 %v7042_v36, %v3659_v26  ;;  %v7147_v38 = vadd.f32 %v4480_v63, %v7042_v36 }
 0x708   : > { %v5038_v52 = vpop.eup %5037  ;;  %v3908_v48 = vadd.f32 %v3907_v18, %v3906_v47  ;;  %5053 = vrcp.f32 %v3816_v1  ;;  %v3817_v21 = vadd.f32 1.0, %v5036_v33  ;;  %v3728_v2 = vsub.f32 0.0, %v7140_v39 }
 0x709   : > { %5055 = vrcp.f32 %v3814_v17  ;;  %v3815_v46 = vadd.f32 1.0, %v5038_v52  ;;  %v3726_v58 = vsub.f32 0.0, %v7143_v53  ;;  %v7151_v62 = vadd.f32 %v7042_v36, %v3662_v32 }
 0x70a   : > { %v5040_v23 = vpop.eup %5039  ;;  %v3910_v27 = vadd.f32 %v3909_v45, %v3908_v48  ;;  %5057 = vrcp.f32 %v3817_v21  ;;  %v3911_v12 = vsel %vm1555_vm4, %v3873_v14, 0.0  ;;  %v3782_v22 = vmul.f32 1.442695, %v3728_v2 }
 0x70b   : > { %v5042_v44 = vpop.eup %5041  ;;  %5059 = vrcp.f32 %v3815_v46  ;;  %v3729_v20 = vsub.f32 0.0, %v7147_v38  ;;  %v4483_v6 = vpop.f32.mrb[60].mxu0  ;;  %v3778_v0 = vmul.f32 1.442695, %v3726_v58  ;;  %v3876_v5 = vmul.f32 %v5040_v23, %v7077_v10 }
 0x70c   : > { %v5044_v11 = vpop.eup %5043  ;;  %v3874_v51 = vmul.f32 %v5042_v44, %v7080_v35  ;;  %v3912_v25 = vadd.f32 %v3911_v12, %v3910_v27  ;;  %5061 = vpow2.f32 %v3772_v3  ;;  %v3675_v30 = vpop.f32.mrb[61].mxu0  ;;  %v3727_v35 = vsub.f32 0.0, %v7151_v62 }
 0x70d   : > { %v5046_v19 = vpop.eup %5045  ;;  %v3877_v15 = vmul.f32 %v5044_v11, %v7084_v55  ;;  %5063 = vpow2.f32 %v3782_v22  ;;  %v3784_v7 = vmul.f32 1.442695, %v3729_v20  ;;  %v4484_v54 = vpop.f32.mrb[62].mxu0  ;;  %v7163_v26 = vadd.f32 %v4483_v6, %v7042_v36 }
 0x70e   : > { %v5048_v13 = vpop.eup %5047  ;;  %v3913_v34 = vsel %vm1555_vm4, %v3874_v51, 0.0  ;;  %v3875_v61 = vmul.f32 %v5046_v19, %v7088_v42  ;;  %5065 = vpow2.f32 %v3778_v0  ;;  %v3678_v59 = vpop.f32.mrb[63].mxu0  ;;  %v3780_v56 = vmul.f32 1.442695, %v3727_v35 }
 0x70f   : > { %v5050_v8 = vpop.eup %5049  ;;  %v3914_v43 = vadd.f32 %v3913_v34, %v3912_v25  ;;  %v3820_v40 = vadd.f32 1.0, %v5048_v13  ;;  %5067 = vpow2.f32 %v3784_v7  ;;  %v3917_v4 = vsel %vm1555_vm4, %v3876_v5, 0.0 }
 0x710   : > { %v5052_v45 = vpop.eup %5051  ;;  %v3915_v10 = vsel %vm1555_vm4, %v3875_v61, 0.0  ;;  %v3818_v55 = vadd.f32 1.0, %v5050_v8  ;;  %v7167_v60 = vadd.f32 %v7042_v36, %v3675_v30  ;;  %v3919_v63 = vsel %vm1555_vm4, %v3877_v15, 0.0 }
 0x711   : > { %v3916_v9 = vadd.f32 %v3915_v10, %v3914_v43  ;;  %v3821_v42 = vadd.f32 1.0, %v5052_v45  ;;  %v3732_v49 = vsub.f32 0.0, %v7163_v26  ;;  %v7172_v47 = vadd.f32 %v4484_v54, %v7042_v36 }
 0x712   : > { %v5054_v29 = vpop.eup %5053  ;;  %5069 = vrcp.f32 %v3818_v55  ;;  %v3730_v32 = vsub.f32 0.0, %v7167_v60  ;;  %v7176_v33 = vadd.f32 %v7042_v36, %v3678_v59 }
 0x713   : > { %v5056_v14 = vpop.eup %5055  ;;  %v3918_v1 = vadd.f32 %v3917_v4, %v3916_v9  ;;  %5071 = vrcp.f32 %v3820_v40  ;;  %v4487_v18 = vpop.f32.mrb[64].mxu0  ;;  %v3790_v52 = vmul.f32 1.442695, %v3732_v49  ;;  %v3733_v48 = vsub.f32 0.0, %v7172_v47 }
 0x714   : > { %v5058_v17 = vpop.eup %5057  ;;  %v3878_v3 = vmul.f32 %v5056_v14, %v7096_v41  ;;  %5073 = vpow2.f32 %v3780_v56  ;;  %v3691_v21 = vpop.f32.mrb[65].mxu0  ;;  %v3880_v2 = vmul.f32 %v5054_v29, %v7093_v31  ;;  %v3786_v27 = vmul.f32 1.442695, %v3730_v32 }
 0x715   : > { %v5060_v46 = vpop.eup %5059  ;;  %v3920_v23 = vadd.f32 %v3919_v63, %v3918_v1  ;;  %5075 = vrcp.f32 %v3821_v42  ;;  %v4488_v58 = vpop.f32.mrb[66].mxu0  ;;  %v3792_v20 = vmul.f32 1.442695, %v3733_v48  ;;  %v3881_v51 = vmul.f32 %v5058_v17, %v7100_v16 }
 0x716   : > { %v5062_v44 = vpop.eup %5061  ;;  %v3921_v12 = vsel %vm1555_vm4, %v3878_v3, 0.0  ;;  %v3879_v22 = vmul.f32 %v5060_v46, %v7104_v50  ;;  %5077 = vpow2.f32 %v3790_v52  ;;  %v3694_v41 = vpop.f32.mrb[67].mxu0  ;;  %v3731_v19 = vsub.f32 0.0, %v7176_v33 }
 0x717   : > { %v5064_v6 = vpop.eup %5063  ;;  %v3922_v11 = vadd.f32 %v3921_v12, %v3920_v23  ;;  %v3819_v25 = vadd.f32 1.0, %v5062_v44  ;;  %5079 = vpow2.f32 %v3786_v27  ;;  %v7187_v7 = vadd.f32 %v4487_v18, %v7042_v36 }
 0x718   : > { %v5066_v0 = vpop.eup %5065  ;;  %v3923_v31 = vsel %vm1555_vm4, %v3879_v22, 0.0  ;;  %v3824_v30 = vadd.f32 1.0, %v5064_v6  ;;  %5081 = vpow2.f32 %v3792_v20  ;;  %v3925_v54 = vsel %vm1555_vm4, %v3880_v2, 0.0 }
 0x719   : > { %v5068_v5 = vpop.eup %5067  ;;  %v3924_v15 = vadd.f32 %v3923_v31, %v3922_v11  ;;  %5083 = vrcp.f32 %v3819_v25  ;;  %v3822_v50 = vadd.f32 1.0, %v5066_v0  ;;  %v3788_v16 = vmul.f32 1.442695, %v3731_v19 }
 0x71a   : > { %v3825_v13 = vadd.f32 1.0, %v5068_v5  ;;  %v7191_v34 = vadd.f32 %v7042_v36, %v3691_v21  ;;  %v3736_v35 = vsub.f32 0.0, %v7187_v7  ;;  %v7195_v59 = vadd.f32 %v4488_v58, %v7042_v36 }
 0x71b   : > { %v3926_v61 = vadd.f32 %v3925_v54, %v3924_v15  ;;  %5085 = vrcp.f32 %v3822_v50  ;;  %v3927_v43 = vsel %vm1555_vm4, %v3881_v51, 0.0  ;;  %v7200_v45 = vadd.f32 %v7042_v36, %v3694_v41 }
 0x71c   : > { %v5070_v8 = vpop.eup %5069  ;;  %5087 = vrcp.f32 %v3824_v30  ;;  %v3734_v40 = vsub.f32 0.0, %v7191_v34  ;;  %v3798_v4 = vmul.f32 1.442695, %v3736_v35  ;;  %v3737_v29 = vsub.f32 0.0, %v7195_v59 }
 0x71d   : > { %v5072_v10 = vpop.eup %5071  ;;  %v3882_v55 = vmul.f32 %v5070_v8, %v7117_v24  ;;  %v3928_v56 = vadd.f32 %v3927_v43, %v3926_v61  ;;  %5089 = vpow2.f32 %v3788_v16  ;;  %v3735_v1 = vsub.f32 0.0, %v7200_v45 }
 0x71e   : > { %v5074_v9 = vpop.eup %5073  ;;  %5091 = vrcp.f32 %v3825_v13  ;;  %v3794_v42 = vmul.f32 1.442695, %v3734_v40  ;;  %v3800_v18 = vmul.f32 1.442695, %v3737_v29  ;;  %v3884_v21 = vmul.f32 %v5072_v10, %v7112_v57 }
 0x71f   : > { %v5076_v63 = vpop.eup %5075  ;;  %v3929_v49 = vsel %vm1555_vm4, %v3882_v55, 0.0  ;;  %v3823_v14 = vadd.f32 1.0, %v5074_v9  ;;  %5093 = vpow2.f32 %v3798_v4  ;;  %v3796_v52 = vmul.f32 1.442695, %v3735_v1 }
 0x720   : > { %v5078_v36 = vpop.eup %5077  ;;  %v3930_v32 = vadd.f32 %v3929_v49, %v3928_v56  ;;  %5095 = vpow2.f32 %v3794_v42  ;;  %v3885_v44 = vmul.f32 %v5076_v63, %v7124_v37  ;;  %v3933_v11 = vsel %vm1555_vm4, %v3884_v21, 0.0 }
 0x721   : > { %v5080_v24 = vpop.eup %5079  ;;  %5097 = vrcp.f32 %v3823_v14  ;;  %v3828_v2 = vadd.f32 1.0, %v5078_v36 }
 0x722   : > { %v5082_v17 = vpop.eup %5081  ;;  %v3826_v3 = vadd.f32 1.0, %v5080_v24  ;;  %5099 = vpow2.f32 %v3800_v18  ;;  %v3935_v0 = vsel %vm1555_vm4, %v3885_v44, 0.0 }
 0x723   : > { %v5084_v48 = vpop.eup %5083  ;;  %v3829_v27 = vadd.f32 1.0, %v5082_v17 }
 0x724   : > { %v3883_v46 = vmul.f32 %v5084_v48, %v7129_v28  ;;  %5101 = vrcp.f32 %v3826_v3 }
 0x725   : > { %v5086_v23 = vpop.eup %5085  ;;  %5103 = vpow2.f32 %v3796_v52 }
 0x726   : > { %v5088_v58 = vpop.eup %5087  ;;  %v3931_v12 = vsel %vm1555_vm4, %v3883_v46, 0.0  ;;  %v3886_v22 = vmul.f32 %v5086_v23, %v7143_v53  ;;  %5105 = vrcp.f32 %v3828_v2 }
 0x727   : > { %v5090_v20 = vpop.eup %5089  ;;  %v3932_v41 = vadd.f32 %v3931_v12, %v3930_v32  ;;  %5107 = vrcp.f32 %v3829_v27  ;;  %v3888_v5 = vmul.f32 %v5088_v58, %v7140_v39 }
 0x728   : > { %v5092_v6 = vpop.eup %5091  ;;  %v3827_v57 = vadd.f32 1.0, %v5090_v20  ;;  %v3937_v37 = vsel %vm1555_vm4, %v3886_v22, 0.0 }
 0x729   : > { %v5094_v28 = vpop.eup %5093  ;;  %v3934_v51 = vadd.f32 %v3933_v11, %v3932_v41  ;;  %v3889_v16 = vmul.f32 %v5092_v6, %v7147_v38  ;;  %v3941_v10 = vsel %vm1555_vm4, %v3888_v5, 0.0 }
 0x72a   : > { %v5096_v25 = vpop.eup %5095  ;;  %5109 = vrcp.f32 %v3827_v57  ;;  %v3832_v54 = vadd.f32 1.0, %v5094_v28 }
 0x72b   : > { %v5098_v31 = vpop.eup %5097  ;;  %v3936_v30 = vadd.f32 %v3935_v0, %v3934_v51  ;;  %v3830_v53 = vadd.f32 1.0, %v5096_v25 }
 0x72c   : > { %v5100_v19 = vpop.eup %5099  ;;  %v3887_v15 = vmul.f32 %v5098_v31, %v7151_v62  ;;  %v3943_v62 = vsel %vm1555_vm4, %v3889_v16, 0.0 }
 0x72d   : > { %v3938_v50 = vadd.f32 %v3937_v37, %v3936_v30  ;;  %5111 = vrcp.f32 %v3830_v53  ;;  %v3833_v35 = vadd.f32 1.0, %v5100_v19 }
 0x72e   : > { %v5102_v13 = vpop.eup %5101  ;;  %v3939_v61 = vsel %vm1555_vm4, %v3887_v15, 0.0  ;;  %5113 = vrcp.f32 %v3832_v54 }
 0x72f   : > { %v3940_v8 = vadd.f32 %v3939_v61, %v3938_v50  ;;  %v3890_v43 = vmul.f32 %v5102_v13, %v7167_v60  ;;  %v5104_v40 = vpop.eup %5103  ;;  %5115 = vrcp.f32 %v3833_v35 }
 0x730   : > { %v3831_v39 = vadd.f32 1.0, %v5104_v40  ;;  %v5106_v56 = vpop.eup %5105 }
 0x731   : > { %v3942_v55 = vadd.f32 %v3941_v10, %v3940_v8  ;;  %v3945_v4 = vsel %vm1555_vm4, %v3890_v43, 0.0  ;;  %v5108_v9 = vpop.eup %5107  ;;  %v3892_v29 = vmul.f32 %v5106_v56, %v7163_v26 }
 0x732   : > { %5117 = vrcp.f32 %v3831_v39  ;;  %v3893_v14 = vmul.f32 %v5108_v9, %v7172_v47 }
 0x733   : > { %v3944_v38 = vadd.f32 %v3943_v62, %v3942_v55  ;;  %v3949_v18 = vsel %vm1555_vm4, %v3892_v29, 0.0 }
 0x734   : > { %v5110_v42 = vpop.eup %5109  ;;  %v3951_v3 = vsel %vm1555_vm4, %v3893_v14, 0.0 }
 0x735   : > { %v3946_v63 = vadd.f32 %v3945_v4, %v3944_v38  ;;  %v3891_v60 = vmul.f32 %v5110_v42, %v7176_v33 }
 0x737   : > { %v5112_v49 = vpop.eup %5111  ;;  %v3947_v1 = vsel %vm1555_vm4, %v3891_v60, 0.0 }
 0x738   : > { %v3948_v36 = vadd.f32 %v3947_v1, %v3946_v63  ;;  %v3894_v32 = vmul.f32 %v5112_v49, %v7191_v34  ;;  %v5114_v17 = vpop.eup %5113 }
 0x739   : > { %v5116_v26 = vpop.eup %5115  ;;  %v3896_v33 = vmul.f32 %v5114_v17, %v7187_v7 }
 0x73a   : > { %v3950_v24 = vadd.f32 %v3949_v18, %v3948_v36  ;;  %v3953_v52 = vsel %vm1555_vm4, %v3894_v32, 0.0  ;;  %v3897_v2 = vmul.f32 %v5116_v26, %v7195_v59  ;;  %v3976_v59 = vld [vmem:[%s7303_s16] sm:$0x1] }
 0x73b   : > { %v3957_v27 = vsel %vm1555_vm4, %v3896_v33, 0.0 }
 0x73c   : > { %v3952_v48 = vadd.f32 %v3951_v3, %v3950_v24  ;;  %v5118_v21 = vpop.eup %5117  ;;  %v3959_v44 = vsel %vm1555_vm4, %v3897_v2, 0.0 }
 0x73d   : > { %v3895_v47 = vmul.f32 %v5118_v21, %v7200_v45 }
 0x73e   : > { %v3954_v46 = vadd.f32 %v3953_v52, %v3952_v48 }
 0x73f   : > { %v3955_v34 = vsel %vm1555_vm4, %v3895_v47, 0.0 }
 0x740   : > { %v3956_v23 = vadd.f32 %v3955_v34, %v3954_v46 }
 0x742   : > { %v3958_v58 = vadd.f32 %v3957_v27, %v3956_v23 }
 0x744   : > { %v3960_v12 = vadd.f32 %v3959_v44, %v3958_v58 }
 0x746   : > { %v3961_v22 = vrot.slane %v3960_v12, 4 }
 0x748   : > { %v3962_v20 = vadd.f32 %v3961_v22, %v3960_v12 }
 0x74a   : > { %v3963_v41 = vrot.slane %v3962_v20, 2 }
 0x74c   : > { %v3964_v7 = vadd.f32 %v3963_v41, %v3962_v20 }
 0x74e   : > { %v3965_v6 = vrot.slane %v3964_v7, 1 }
 0x750   : > { %v3966_v11 = vadd.f32 %v3965_v6, %v3964_v7 }
 0x752   : > { %v3967_v45 = vmul.f32 0.00390625, %v3966_v11 }
 0x754   : > { %4506 = vmatmul.mubr.msk.f32.vlgmr.msra.gmra.mrb[34].mxu0 %vm1555_vm4, %v3967_v45 }
 0x827   : > { %v4046_v57 = vpop.f32.mrb[34].mxu0 }
 0x828   : > { %v4047_v28 = vadd.f32 %v4046_v57, %v3976_v59  ;;  %v4507_v51 = vpop.f32.mrb[35].mxu0 }
 0x82a   : > { %4051 = vst.msk [vmem:[%s540_s29] sm:$0x1] %vm4050_vm9, %v4047_v28 }
 0x82b   : > { %5134 = shalt.err (!%p5131_p3)
}
 0x82c   : > { %s5135_s21 = scalar_lea.hbm %s7245_s2, 16  ;;  %s5139_s0 = scalar_lea.hbm %s7304_s17, 32 }
 0x82d   : > { %p5136_p4 = scmp.ne.s32.totalorder %s7245_s2, %s5135_s21  ;;  %p5140_p9 = scmp.lt.u32.totalorder %s7245_s2, %s7304_s17 }
 0x82e   : > { %p5141_p10 = scmp.lt.u32.totalorder %s5139_s0, %s5135_s21  ;;  %p5143_p12 = scmp.lt.u32.totalorder %s5135_s21, %s7245_s2 }
 0x82f   : > { %p5137_p7 = pnand %p5136_p4, %p5318_p5 }
 0x830   : > { %p5142_p11 = por %p5141_p10, %p5140_p9 }
 0x831   : > { %p5138_p8 = pneg %p5137_p7 }
 0x832   : > { %p5144_p13 = por %p5143_p12, %p5142_p11 }
 0x834   : > { %p5145_p0 = pnand %p5144_p13, %p5138_p8 }
 0x836   : > { %5148 = shalt.err (!%p5145_p0)
}
 0x837   : > { %4532 = dma.vmem_to_hbm [thread:$0]  (%p5318_p5), %s7247_s30, 16, %s7245_s2, %s4053_s22  }
 0x838 PF: > { %p4538_p1 = scmp.ge.s32.totalorder %s5183_s27, 2  ;;  %s4077_s4 = sand.u32 1, %s5171_s24  }
 0x839   : > { %s4078_s26 = scalar_lea.sflag [#allocation6], %s4077_s4 }
 0x83a   : > { %p4535_p2 = pnand %p4538_p1, %p5322_p6 }
 0x83c   : > { %5166 = dma.done.wait (!%p4535_p2), %s4078_s26, 16  }
 0x83d   : > { %5168 = vsyncadd (!%p4535_p2), %s4078_s26, 4294967280  ;;  %s7381_s27 = sld [smem:[#allocation9_spill]]  ;;  %s7382_s28 = sld [smem:[#allocation8_spill]] }
 0x83e   : > { %s7383_s26 = sld [smem:[#allocation10_spill]]  ;;  %s7384_s24 = smov %s5175_s25 }
 0x843   : > { %p27_p3 = scmp.ge.s32.totalorder %s7381_s27, 4   ;;  %s7385_s25 = smov %s7382_s28 }
 0x845   :  { %29 = sbr.rel (!%p27_p3) target bundleno = 9 (0x9), region = 139 }
 0x84c   :  { %4082 = vsyncpa [#allocation6], 1 }
 0x84d   :  { %4084 = vsyncpa [#allocation6 + $0x1], 1 }

</bundles_post_ra>
